<compile_context>
chip_gen: v5e
topology: v5e:2x2
jax: 0.10.0
libtpu: 0.0.40
codegen_flags: <defaults>
</compile_context>

<pallas_src>
import math

import jax
import jax.numpy as jnp
from jax.experimental import pallas as pl
from jax.experimental.pallas import tpu as pltpu

# Model hyper-parameters (match the nn.Module defaults).
EMBED = 64
HEADS = 4
HEAD_DIM = EMBED // HEADS
DFF = 512
LAYERS = 3
EPS = 1e-5


# ----------------------------- Pallas kernel ------------------------------- #
def _layernorm(x, g, b):
    mu = jnp.mean(x, axis=-1, keepdims=True)
    var = jnp.mean((x - mu) ** 2, axis=-1, keepdims=True)
    return (x - mu) * jax.lax.rsqrt(var + EPS) * g + b


def _fused_forward_kernel(
    x_ref, emb_w_ref, emb_b_ref,
    wq_ref, bq_ref, wk_ref, bk_ref, wv_ref, bv_ref,
    wo_ref, bo_ref, g1_ref, be1_ref,
    w1_ref, b1_ref, w2_ref, b2_ref, g2_ref, be2_ref,
    fc_w_ref, fc_b_ref,
    attn_ref, pred_ref,
):
    # One batch element per grid step.
    x = x_ref[0]                                   # (T, D_in)
    T = x.shape[0]

    # Embedding: weights pre-transposed to (D_in, E) -> plain x @ W.
    h = jnp.dot(x, emb_w_ref[...], preferred_element_type=jnp.float32) + emb_b_ref[...]

    scale = 1.0 / math.sqrt(HEAD_DIM)
    for l in range(LAYERS):                        # static unroll over the 3 layers
        # -------- multi-head self-attention (heads batched, post-norm) --------
        hb = jnp.broadcast_to(h, (HEADS, T, EMBED))                         # (H, T, E)
        qh = jnp.einsum('hte,hed->htd', hb, wq_ref[l],
                        preferred_element_type=jnp.float32) + bq_ref[l]     # (H, T, Dh)
        kh = jnp.einsum('hte,hed->htd', hb, wk_ref[l],
                        preferred_element_type=jnp.float32) + bk_ref[l]
        vh = jnp.einsum('hte,hed->htd', hb, wv_ref[l],
                        preferred_element_type=jnp.float32) + bv_ref[l]

        s = jnp.einsum('hqd,hkd->hqk', qh, kh,
                       preferred_element_type=jnp.float32) * scale          # (H, T, T)
        s = s - jnp.max(s, axis=-1, keepdims=True)
        p = jnp.exp(s)
        p = p / jnp.sum(p, axis=-1, keepdims=True)

        a = jnp.einsum('hqk,hkd->hqd', p, vh,
                       preferred_element_type=jnp.float32)                  # (H, T, Dh)
        # Per-head output projection + sum over heads == concat(heads) @ Wo.T
        o = jnp.einsum('htd,hde->hte', a, wo_ref[l],
                       preferred_element_type=jnp.float32)                  # (H, T, E)
        attn_out = jnp.sum(o, axis=0) + bo_ref[l]                           # (T, E)
        h = _layernorm(h + attn_out, g1_ref[l], be1_ref[l])

        # ------------------------- feed-forward (relu) -------------------------
        ff = jnp.maximum(
            jnp.dot(h, w1_ref[l], preferred_element_type=jnp.float32) + b1_ref[l],
            0.0)
        ff = jnp.dot(ff, w2_ref[l], preferred_element_type=jnp.float32) + b2_ref[l]
        h = _layernorm(h + ff, g2_ref[l], be2_ref[l])

    # Encoder output == PyTorch attention_weights.transpose(0, 1).
    attn_ref[0] = h

    # mean over seq, then Linear(E, 1); result broadcast over lanes, column 0 is
    # extracted by the wrapper (keeps the store a single full-tile write).
    pooled = jnp.mean(h, axis=0, keepdims=True)                             # (1, E)
    val = jnp.dot(pooled, fc_w_ref[...],
                  preferred_element_type=jnp.float32) + fc_b_ref[...]       # (1, 1)
    pred_ref[0] = jnp.broadcast_to(val, (1, EMBED))


# ------------------------------ model wrapper ------------------------------ #
def _const_index_map(ndim):
    return lambda b: (0,) * ndim


def _full_spec(a):
    return pl.BlockSpec(a.shape, _const_index_map(a.ndim))


def forward(x, packed):
    B, T, D = x.shape
    params = packed  # 20 pre-packed weight arrays (see pack_params)

    attn, pred = pl.pallas_call(
        _fused_forward_kernel,
        out_shape=(
            jax.ShapeDtypeStruct((B, T, EMBED), jnp.float32),
            jax.ShapeDtypeStruct((B, 1, EMBED), jnp.float32),
        ),
        grid=(B,),
        in_specs=[pl.BlockSpec((1, T, D), lambda b: (b, 0, 0))]
                 + [_full_spec(p) for p in params],
        out_specs=(
            pl.BlockSpec((1, T, EMBED), lambda b: (b, 0, 0)),
            pl.BlockSpec((1, 1, EMBED), lambda b: (b, 0, 0)),
        ),
        compiler_params=pltpu.CompilerParams(
            dimension_semantics=("parallel",)),
    )(x, *params)
    return pred[:, 0, 0], attn


# ------------------- parameter init (PyTorch layout) ------------------------ #
def init_params(key, input_dim):
    def lin(k, out_f, in_f):
        k1, k2 = jax.random.split(k)
        bound = 1.0 / math.sqrt(in_f)
        w = jax.random.uniform(k1, (out_f, in_f), jnp.float32, -bound, bound)
        b = jax.random.uniform(k2, (out_f,), jnp.float32, -bound, bound)
        return w, b

    keys = jax.random.split(key, 2 + LAYERS)
    emb_w, emb_b = lin(keys[0], EMBED, input_dim)
    fc_w, fc_b = lin(keys[1], 1, EMBED)
    layers = []
    for l in range(LAYERS):
        ks = jax.random.split(keys[2 + l], 4)
        wqkv, bqkv = lin(ks[0], 3 * EMBED, EMBED)
        wo, bo = lin(ks[1], EMBED, EMBED)
        w1, b1 = lin(ks[2], DFF, EMBED)
        w2, b2 = lin(ks[3], EMBED, DFF)
        g1 = jnp.ones((EMBED,), jnp.float32)
        be1 = jnp.zeros((EMBED,), jnp.float32)
        g2 = jnp.ones((EMBED,), jnp.float32)
        be2 = jnp.zeros((EMBED,), jnp.float32)
        layers.append((wqkv, bqkv, wo, bo, g1, be1, w1, b1, w2, b2, g2, be2))
    return emb_w, emb_b, tuple(layers), fc_w, fc_b


# -------- trace-time repack: transpose, split heads, stack layers ----------- #
def pack_params(params):
    emb_w, emb_b, layers, fc_w, fc_b = params

    def split_heads_w(w):      # w: (E, E) PyTorch (out, in); head h -> (E, Dh)
        return jnp.stack(
            [w[h * HEAD_DIM:(h + 1) * HEAD_DIM, :].T for h in range(HEADS)])

    def split_heads_b(b):      # (E,) -> (H, 1, Dh)
        return b.reshape(HEADS, 1, HEAD_DIM)

    wq_l, bq_l, wk_l, bk_l, wv_l, bv_l = [], [], [], [], [], []
    wo_l, bo_l, g1_l, be1_l = [], [], [], []
    w1_l, b1_l, w2_l, b2_l, g2_l, be2_l = [], [], [], [], [], []
    for (wqkv, bqkv, wo, bo, g1, be1, w1, b1, w2, b2, g2, be2) in layers:
        wq_l.append(split_heads_w(wqkv[:EMBED]))
        wk_l.append(split_heads_w(wqkv[EMBED:2 * EMBED]))
        wv_l.append(split_heads_w(wqkv[2 * EMBED:]))
        bq_l.append(split_heads_b(bqkv[:EMBED]))
        bk_l.append(split_heads_b(bqkv[EMBED:2 * EMBED]))
        bv_l.append(split_heads_b(bqkv[2 * EMBED:]))
        # concat(a_h) @ Wo.T == sum_h a_h @ Wo[:, h*Dh:(h+1)*Dh].T
        wo_l.append(jnp.stack(
            [wo[:, h * HEAD_DIM:(h + 1) * HEAD_DIM].T for h in range(HEADS)]))
        bo_l.append(bo.reshape(1, EMBED))
        g1_l.append(g1.reshape(1, EMBED))
        be1_l.append(be1.reshape(1, EMBED))
        w1_l.append(w1.T)
        b1_l.append(b1.reshape(1, DFF))
        w2_l.append(w2.T)
        b2_l.append(b2.reshape(1, EMBED))
        g2_l.append(g2.reshape(1, EMBED))
        be2_l.append(be2.reshape(1, EMBED))

    stk = jnp.stack
    return (emb_w.T, emb_b.reshape(1, EMBED),
            stk(wq_l), stk(bq_l), stk(wk_l), stk(bk_l), stk(wv_l), stk(bv_l),
            stk(wo_l), stk(bo_l), stk(g1_l), stk(be1_l),
            stk(w1_l), stk(b1_l), stk(w2_l), stk(b2_l), stk(g2_l), stk(be2_l),
            fc_w.T, fc_b.reshape(1, 1))


# --------------------------- pure-JAX reference ----------------------------- #
def reference_forward(x, params):
    P = jax.lax.Precision.HIGHEST
    emb_w, emb_b, layers, fc_w, fc_b = params
    B, T, _ = x.shape

    def ln(v, g, b):
        mu = v.mean(-1, keepdims=True)
        var = ((v - mu) ** 2).mean(-1, keepdims=True)
        return (v - mu) * jax.lax.rsqrt(var + EPS) * g + b

    h = jnp.einsum("btd,ed->bte", x, emb_w, precision=P) + emb_b
    for (wqkv, bqkv, wo, bo, g1, be1, w1, b1, w2, b2, g2, be2) in layers:
        qkv = jnp.einsum("bte,fe->btf", h, wqkv, precision=P) + bqkv
        q, k, v = qkv[..., :EMBED], qkv[..., EMBED:2 * EMBED], qkv[..., 2 * EMBED:]
        q = q.reshape(B, T, HEADS, HEAD_DIM)
        k = k.reshape(B, T, HEADS, HEAD_DIM)
        v = v.reshape(B, T, HEADS, HEAD_DIM)
        s = jnp.einsum("bqhd,bkhd->bhqk", q, k, precision=P) / math.sqrt(HEAD_DIM)
        p = jax.nn.softmax(s, axis=-1)
        a = jnp.einsum("bhqk,bkhd->bqhd", p, v, precision=P).reshape(B, T, EMBED)
        a = jnp.einsum("bte,fe->btf", a, wo, precision=P) + bo
        h = ln(h + a, g1, be1)
        f = jax.nn.relu(jnp.einsum("bte,fe->btf", h, w1, precision=P) + b1)
        f = jnp.einsum("btf,ef->bte", f, w2, precision=P) + b2
        h = ln(h + f, g2, be2)
    pooled = h.mean(axis=1)
    out = jnp.einsum("be,oe->bo", pooled, fc_w, precision=P) + fc_b
    return out[:, 0], h


# ---------------------------------- main ------------------------------------ #
if __name__ == "__main__":
    BATCH, NUM_TILES, INPUT_DIM = 2, 8, 32

    key = jax.random.PRNGKey(0)
    k_x, k_p = jax.random.split(key)
    x = jax.random.normal(k_x, (BATCH, NUM_TILES, INPUT_DIM), jnp.float32)
    params = init_params(k_p, INPUT_DIM)
    packed = pack_params(params)

    fwd = jax.jit(forward)
    preds, attn = fwd(x, packed)
    preds = jax.block_until_ready(preds)
    attn = jax.block_until_ready(attn)

    ref_preds, ref_attn = reference_forward(x, params)
    assert preds.shape == (BATCH,)
    assert attn.shape == (BATCH, NUM_TILES, EMBED)
    assert jnp.allclose(preds, ref_preds, rtol=2e-3, atol=2e-3)
    assert jnp.allclose(attn, ref_attn, rtol=2e-3, atol=2e-3)

    print("KERNEL_OK")
</pallas_src>

<mosaic_0001>
module attributes {stable_mosaic.version = 11 : i64} {
  func.func @_fused_forward_kernel(%arg0: i32, %arg1: memref<1x8x32xf32, #tpu.memory_space<vmem>>, %arg2: memref<32x64xf32, #tpu.memory_space<vmem>>, %arg3: memref<1x64xf32, #tpu.memory_space<vmem>>, %arg4: memref<3x4x64x16xf32, #tpu.memory_space<vmem>>, %arg5: memref<3x4x1x16xf32, #tpu.memory_space<vmem>>, %arg6: memref<3x4x64x16xf32, #tpu.memory_space<vmem>>, %arg7: memref<3x4x1x16xf32, #tpu.memory_space<vmem>>, %arg8: memref<3x4x64x16xf32, #tpu.memory_space<vmem>>, %arg9: memref<3x4x1x16xf32, #tpu.memory_space<vmem>>, %arg10: memref<3x4x16x64xf32, #tpu.memory_space<vmem>>, %arg11: memref<3x1x64xf32, #tpu.memory_space<vmem>>, %arg12: memref<3x1x64xf32, #tpu.memory_space<vmem>>, %arg13: memref<3x1x64xf32, #tpu.memory_space<vmem>>, %arg14: memref<3x64x512xf32, #tpu.memory_space<vmem>>, %arg15: memref<3x1x512xf32, #tpu.memory_space<vmem>>, %arg16: memref<3x512x64xf32, #tpu.memory_space<vmem>>, %arg17: memref<3x1x64xf32, #tpu.memory_space<vmem>>, %arg18: memref<3x1x64xf32, #tpu.memory_space<vmem>>, %arg19: memref<3x1x64xf32, #tpu.memory_space<vmem>>, %arg20: memref<64x1xf32, #tpu.memory_space<vmem>>, %arg21: memref<1x1xf32, #tpu.memory_space<vmem>>, %arg22: memref<1x8x64xf32, #tpu.memory_space<vmem>>, %arg23: memref<1x1x64xf32, #tpu.memory_space<vmem>>) attributes {dimension_semantics = [#tpu.dimension_semantics<parallel>], iteration_bounds = array<i64: 2>, scalar_prefetch = 0 : i64, scratch_operands = 0 : i64, tpu.core_type = #tpu.core_type<tc>, window_params = [{transform_indices = @transform_0, window_bounds = array<i64: 1, 8, 32>}, {pipeline_mode = #tpu.pipeline_mode<synchronous>, transform_indices = @transform_1, window_bounds = array<i64: 32, 64>}, {pipeline_mode = #tpu.pipeline_mode<synchronous>, transform_indices = @transform_2, window_bounds = array<i64: 1, 64>}, {pipeline_mode = #tpu.pipeline_mode<synchronous>, transform_indices = @transform_3, window_bounds = array<i64: 3, 4, 64, 16>}, {pipeline_mode = #tpu.pipeline_mode<synchronous>, transform_indices = @transform_4, window_bounds = array<i64: 3, 4, 1, 16>}, {pipeline_mode = #tpu.pipeline_mode<synchronous>, transform_indices = @transform_5, window_bounds = array<i64: 3, 4, 64, 16>}, {pipeline_mode = #tpu.pipeline_mode<synchronous>, transform_indices = @transform_6, window_bounds = array<i64: 3, 4, 1, 16>}, {pipeline_mode = #tpu.pipeline_mode<synchronous>, transform_indices = @transform_7, window_bounds = array<i64: 3, 4, 64, 16>}, {pipeline_mode = #tpu.pipeline_mode<synchronous>, transform_indices = @transform_8, window_bounds = array<i64: 3, 4, 1, 16>}, {pipeline_mode = #tpu.pipeline_mode<synchronous>, transform_indices = @transform_9, window_bounds = array<i64: 3, 4, 16, 64>}, {pipeline_mode = #tpu.pipeline_mode<synchronous>, transform_indices = @transform_10, window_bounds = array<i64: 3, 1, 64>}, {pipeline_mode = #tpu.pipeline_mode<synchronous>, transform_indices = @transform_11, window_bounds = array<i64: 3, 1, 64>}, {pipeline_mode = #tpu.pipeline_mode<synchronous>, transform_indices = @transform_12, window_bounds = array<i64: 3, 1, 64>}, {pipeline_mode = #tpu.pipeline_mode<synchronous>, transform_indices = @transform_13, window_bounds = array<i64: 3, 64, 512>}, {pipeline_mode = #tpu.pipeline_mode<synchronous>, transform_indices = @transform_14, window_bounds = array<i64: 3, 1, 512>}, {pipeline_mode = #tpu.pipeline_mode<synchronous>, transform_indices = @transform_15, window_bounds = array<i64: 3, 512, 64>}, {pipeline_mode = #tpu.pipeline_mode<synchronous>, transform_indices = @transform_16, window_bounds = array<i64: 3, 1, 64>}, {pipeline_mode = #tpu.pipeline_mode<synchronous>, transform_indices = @transform_17, window_bounds = array<i64: 3, 1, 64>}, {pipeline_mode = #tpu.pipeline_mode<synchronous>, transform_indices = @transform_18, window_bounds = array<i64: 3, 1, 64>}, {pipeline_mode = #tpu.pipeline_mode<synchronous>, transform_indices = @transform_19, window_bounds = array<i64: 64, 1>}, {pipeline_mode = #tpu.pipeline_mode<synchronous>, transform_indices = @transform_20, window_bounds = array<i64: 1, 1>}, {transform_indices = @transform_21, window_bounds = array<i64: 1, 8, 64>}, {transform_indices = @transform_22, window_bounds = array<i64: 1, 1, 64>}]} {
    %c0 = arith.constant 0 : index
    %c0_0 = arith.constant 0 : index
    %c0_1 = arith.constant 0 : index
    %0 = vector.load %arg1[%c0, %c0_0, %c0_1] : memref<1x8x32xf32, #tpu.memory_space<vmem>>, vector<1x8x32xf32>
    %1 = vector.shape_cast %0 : vector<1x8x32xf32> to vector<8x32xf32>
    %c0_2 = arith.constant 0 : index
    %c0_3 = arith.constant 0 : index
    %2 = vector.load %arg2[%c0_2, %c0_3] : memref<32x64xf32, #tpu.memory_space<vmem>>, vector<32x64xf32>
    %cst = arith.constant dense<0.000000e+00> : vector<8x64xf32>
    %3 = tpu.matmul %1, %2, %cst {dimension_numbers = #tpu.dot_dimension_numbers<[1], [0], [0], [1], [0, 0, 1, 1], [], []>} : vector<8x32xf32>, vector<32x64xf32>, vector<8x64xf32> -> vector<8x64xf32>
    %c0_4 = arith.constant 0 : index
    %c0_5 = arith.constant 0 : index
    %4 = vector.load %arg3[%c0_4, %c0_5] : memref<1x64xf32, #tpu.memory_space<vmem>>, vector<1x64xf32>
    %5 = vector.broadcast %4 : vector<1x64xf32> to vector<8x64xf32>
    %6 = arith.addf %3, %5 : vector<8x64xf32>
    %7 = vector.shape_cast %6 : vector<8x64xf32> to vector<1x8x64xf32>
    %8 = vector.broadcast %7 : vector<1x8x64xf32> to vector<4x8x64xf32>
    %c0_6 = arith.constant 0 : index
    %c0_7 = arith.constant 0 : index
    %c0_8 = arith.constant 0 : index
    %c0_9 = arith.constant 0 : index
    %9 = vector.load %arg4[%c0_6, %c0_7, %c0_8, %c0_9] : memref<3x4x64x16xf32, #tpu.memory_space<vmem>>, vector<1x4x64x16xf32>
    %10 = vector.shape_cast %9 : vector<1x4x64x16xf32> to vector<4x64x16xf32>
    "tpu.trace_start"() <{level = 10 : i32, message = "hte,hed->htd"}> : () -> ()
    %cst_10 = arith.constant dense<0.000000e+00> : vector<4x8x16xf32>
    %11 = tpu.matmul %8, %10, %cst_10 {dimension_numbers = #tpu.dot_dimension_numbers<[2], [1], [1], [2], [0, 0, 0, 1, 1, 2], [0], [0]>} : vector<4x8x64xf32>, vector<4x64x16xf32>, vector<4x8x16xf32> -> vector<4x8x16xf32>
    "tpu.trace_stop"() : () -> ()
    %c0_11 = arith.constant 0 : index
    %c0_12 = arith.constant 0 : index
    %c0_13 = arith.constant 0 : index
    %c0_14 = arith.constant 0 : index
    %12 = vector.load %arg5[%c0_11, %c0_12, %c0_13, %c0_14] : memref<3x4x1x16xf32, #tpu.memory_space<vmem>>, vector<1x4x1x16xf32>
    %13 = vector.shape_cast %12 : vector<1x4x1x16xf32> to vector<4x1x16xf32>
    %14 = vector.broadcast %13 : vector<4x1x16xf32> to vector<4x8x16xf32>
    %15 = arith.addf %11, %14 : vector<4x8x16xf32>
    %c0_15 = arith.constant 0 : index
    %c0_16 = arith.constant 0 : index
    %c0_17 = arith.constant 0 : index
    %c0_18 = arith.constant 0 : index
    %16 = vector.load %arg6[%c0_15, %c0_16, %c0_17, %c0_18] : memref<3x4x64x16xf32, #tpu.memory_space<vmem>>, vector<1x4x64x16xf32>
    %17 = vector.shape_cast %16 : vector<1x4x64x16xf32> to vector<4x64x16xf32>
    "tpu.trace_start"() <{level = 10 : i32, message = "hte,hed->htd"}> : () -> ()
    %cst_19 = arith.constant dense<0.000000e+00> : vector<4x8x16xf32>
    %18 = tpu.matmul %8, %17, %cst_19 {dimension_numbers = #tpu.dot_dimension_numbers<[2], [1], [1], [2], [0, 0, 0, 1, 1, 2], [0], [0]>} : vector<4x8x64xf32>, vector<4x64x16xf32>, vector<4x8x16xf32> -> vector<4x8x16xf32>
    "tpu.trace_stop"() : () -> ()
    %c0_20 = arith.constant 0 : index
    %c0_21 = arith.constant 0 : index
    %c0_22 = arith.constant 0 : index
    %c0_23 = arith.constant 0 : index
    %19 = vector.load %arg7[%c0_20, %c0_21, %c0_22, %c0_23] : memref<3x4x1x16xf32, #tpu.memory_space<vmem>>, vector<1x4x1x16xf32>
    %20 = vector.shape_cast %19 : vector<1x4x1x16xf32> to vector<4x1x16xf32>
    %21 = vector.broadcast %20 : vector<4x1x16xf32> to vector<4x8x16xf32>
    %22 = arith.addf %18, %21 : vector<4x8x16xf32>
    %c0_24 = arith.constant 0 : index
    %c0_25 = arith.constant 0 : index
    %c0_26 = arith.constant 0 : index
    %c0_27 = arith.constant 0 : index
    %23 = vector.load %arg8[%c0_24, %c0_25, %c0_26, %c0_27] : memref<3x4x64x16xf32, #tpu.memory_space<vmem>>, vector<1x4x64x16xf32>
    %24 = vector.shape_cast %23 : vector<1x4x64x16xf32> to vector<4x64x16xf32>
    "tpu.trace_start"() <{level = 10 : i32, message = "hte,hed->htd"}> : () -> ()
    %cst_28 = arith.constant dense<0.000000e+00> : vector<4x8x16xf32>
    %25 = tpu.matmul %8, %24, %cst_28 {dimension_numbers = #tpu.dot_dimension_numbers<[2], [1], [1], [2], [0, 0, 0, 1, 1, 2], [0], [0]>} : vector<4x8x64xf32>, vector<4x64x16xf32>, vector<4x8x16xf32> -> vector<4x8x16xf32>
    "tpu.trace_stop"() : () -> ()
    %c0_29 = arith.constant 0 : index
    %c0_30 = arith.constant 0 : index
    %c0_31 = arith.constant 0 : index
    %c0_32 = arith.constant 0 : index
    %26 = vector.load %arg9[%c0_29, %c0_30, %c0_31, %c0_32] : memref<3x4x1x16xf32, #tpu.memory_space<vmem>>, vector<1x4x1x16xf32>
    %27 = vector.shape_cast %26 : vector<1x4x1x16xf32> to vector<4x1x16xf32>
    %28 = vector.broadcast %27 : vector<4x1x16xf32> to vector<4x8x16xf32>
    %29 = arith.addf %25, %28 : vector<4x8x16xf32>
    "tpu.trace_start"() <{level = 10 : i32, message = "hqd,hkd->hqk"}> : () -> ()
    %cst_33 = arith.constant dense<0.000000e+00> : vector<4x8x8xf32>
    %30 = tpu.matmul %15, %22, %cst_33 {dimension_numbers = #tpu.dot_dimension_numbers<[2], [2], [1], [1], [0, 0, 0, 1, 1, 1], [0], [0]>} : vector<4x8x16xf32>, vector<4x8x16xf32>, vector<4x8x8xf32> -> vector<4x8x8xf32>
    "tpu.trace_stop"() : () -> ()
    %cst_34 = arith.constant 2.500000e-01 : f32
    %31 = vector.broadcast %cst_34 : f32 to vector<4x8x8xf32>
    %32 = arith.mulf %30, %31 : vector<4x8x8xf32>
    %cst_35 = arith.constant dense<0xFF800000> : vector<4x8xf32>
    %33 = vector.multi_reduction <maximumf>, %32, %cst_35 [2] : vector<4x8x8xf32> to vector<4x8xf32>
    %34 = vector.shape_cast %33 : vector<4x8xf32> to vector<4x8x1xf32>
    %35 = vector.broadcast %34 : vector<4x8x1xf32> to vector<4x8x8xf32>
    %36 = arith.subf %32, %35 : vector<4x8x8xf32>
    %37 = math.exp %36 : vector<4x8x8xf32>
    %cst_36 = arith.constant dense<0.000000e+00> : vector<4x8xf32>
    %38 = vector.multi_reduction <add>, %37, %cst_36 [2] : vector<4x8x8xf32> to vector<4x8xf32>
    %39 = vector.shape_cast %38 : vector<4x8xf32> to vector<4x8x1xf32>
    %40 = vector.broadcast %39 : vector<4x8x1xf32> to vector<4x8x8xf32>
    %41 = arith.divf %37, %40 : vector<4x8x8xf32>
    "tpu.trace_start"() <{level = 10 : i32, message = "hqk,hkd->hqd"}> : () -> ()
    %cst_37 = arith.constant dense<0.000000e+00> : vector<4x8x16xf32>
    %42 = tpu.matmul %41, %29, %cst_37 {dimension_numbers = #tpu.dot_dimension_numbers<[2], [1], [1], [2], [0, 0, 0, 1, 1, 2], [0], [0]>} : vector<4x8x8xf32>, vector<4x8x16xf32>, vector<4x8x16xf32> -> vector<4x8x16xf32>
    "tpu.trace_stop"() : () -> ()
    %c0_38 = arith.constant 0 : index
    %c0_39 = arith.constant 0 : index
    %c0_40 = arith.constant 0 : index
    %c0_41 = arith.constant 0 : index
    %43 = vector.load %arg10[%c0_38, %c0_39, %c0_40, %c0_41] : memref<3x4x16x64xf32, #tpu.memory_space<vmem>>, vector<1x4x16x64xf32>
    %44 = vector.shape_cast %43 : vector<1x4x16x64xf32> to vector<4x16x64xf32>
    "tpu.trace_start"() <{level = 10 : i32, message = "htd,hde->hte"}> : () -> ()
    %cst_42 = arith.constant dense<0.000000e+00> : vector<4x8x64xf32>
    %45 = tpu.matmul %42, %44, %cst_42 {dimension_numbers = #tpu.dot_dimension_numbers<[2], [1], [1], [2], [0, 0, 0, 1, 1, 2], [0], [0]>} : vector<4x8x16xf32>, vector<4x16x64xf32>, vector<4x8x64xf32> -> vector<4x8x64xf32>
    "tpu.trace_stop"() : () -> ()
    %cst_43 = arith.constant dense<0.000000e+00> : vector<8x64xf32>
    %46 = vector.multi_reduction <add>, %45, %cst_43 [0] : vector<4x8x64xf32> to vector<8x64xf32>
    %c0_44 = arith.constant 0 : index
    %c0_45 = arith.constant 0 : index
    %c0_46 = arith.constant 0 : index
    %47 = vector.load %arg11[%c0_44, %c0_45, %c0_46] : memref<3x1x64xf32, #tpu.memory_space<vmem>>, vector<1x1x64xf32>
    %48 = vector.shape_cast %47 : vector<1x1x64xf32> to vector<1x64xf32>
    %49 = vector.broadcast %48 : vector<1x64xf32> to vector<8x64xf32>
    %50 = arith.addf %46, %49 : vector<8x64xf32>
    %51 = arith.addf %6, %50 : vector<8x64xf32>
    %c0_47 = arith.constant 0 : index
    %c0_48 = arith.constant 0 : index
    %c0_49 = arith.constant 0 : index
    %52 = vector.load %arg12[%c0_47, %c0_48, %c0_49] : memref<3x1x64xf32, #tpu.memory_space<vmem>>, vector<1x1x64xf32>
    %53 = vector.shape_cast %52 : vector<1x1x64xf32> to vector<1x64xf32>
    %c0_50 = arith.constant 0 : index
    %c0_51 = arith.constant 0 : index
    %c0_52 = arith.constant 0 : index
    %54 = vector.load %arg13[%c0_50, %c0_51, %c0_52] : memref<3x1x64xf32, #tpu.memory_space<vmem>>, vector<1x1x64xf32>
    %55 = vector.shape_cast %54 : vector<1x1x64xf32> to vector<1x64xf32>
    %cst_53 = arith.constant dense<0.000000e+00> : vector<8xf32>
    %56 = vector.multi_reduction <add>, %51, %cst_53 [1] : vector<8x64xf32> to vector<8xf32>
    %57 = vector.shape_cast %56 : vector<8xf32> to vector<8x1xf32>
    %cst_54 = arith.constant 6.400000e+01 : f32
    %58 = vector.broadcast %cst_54 : f32 to vector<8x1xf32>
    %59 = arith.divf %57, %58 : vector<8x1xf32>
    %60 = vector.broadcast %59 : vector<8x1xf32> to vector<8x64xf32>
    %61 = arith.subf %51, %60 : vector<8x64xf32>
    %62 = arith.mulf %61, %61 : vector<8x64xf32>
    %cst_55 = arith.constant dense<0.000000e+00> : vector<8xf32>
    %63 = vector.multi_reduction <add>, %62, %cst_55 [1] : vector<8x64xf32> to vector<8xf32>
    %64 = vector.shape_cast %63 : vector<8xf32> to vector<8x1xf32>
    %cst_56 = arith.constant 6.400000e+01 : f32
    %65 = vector.broadcast %cst_56 : f32 to vector<8x1xf32>
    %66 = arith.divf %64, %65 : vector<8x1xf32>
    %67 = vector.broadcast %59 : vector<8x1xf32> to vector<8x64xf32>
    %68 = arith.subf %51, %67 : vector<8x64xf32>
    %cst_57 = arith.constant 9.99999974E-6 : f32
    %69 = vector.broadcast %cst_57 : f32 to vector<8x1xf32>
    %70 = arith.addf %66, %69 : vector<8x1xf32>
    %71 = math.rsqrt %70 : vector<8x1xf32>
    %72 = vector.broadcast %71 : vector<8x1xf32> to vector<8x64xf32>
    %73 = arith.mulf %68, %72 : vector<8x64xf32>
    %74 = vector.broadcast %53 : vector<1x64xf32> to vector<8x64xf32>
    %75 = arith.mulf %73, %74 : vector<8x64xf32>
    %76 = vector.broadcast %55 : vector<1x64xf32> to vector<8x64xf32>
    %77 = arith.addf %75, %76 : vector<8x64xf32>
    %c0_58 = arith.constant 0 : index
    %c0_59 = arith.constant 0 : index
    %c0_60 = arith.constant 0 : index
    %78 = vector.load %arg14[%c0_58, %c0_59, %c0_60] : memref<3x64x512xf32, #tpu.memory_space<vmem>>, vector<1x64x512xf32>
    %79 = vector.shape_cast %78 : vector<1x64x512xf32> to vector<64x512xf32>
    %cst_61 = arith.constant dense<0.000000e+00> : vector<8x512xf32>
    %80 = tpu.matmul %77, %79, %cst_61 {dimension_numbers = #tpu.dot_dimension_numbers<[1], [0], [0], [1], [0, 0, 1, 1], [], []>} : vector<8x64xf32>, vector<64x512xf32>, vector<8x512xf32> -> vector<8x512xf32>
    %c0_62 = arith.constant 0 : index
    %c0_63 = arith.constant 0 : index
    %c0_64 = arith.constant 0 : index
    %81 = vector.load %arg15[%c0_62, %c0_63, %c0_64] : memref<3x1x512xf32, #tpu.memory_space<vmem>>, vector<1x1x512xf32>
    %82 = vector.shape_cast %81 : vector<1x1x512xf32> to vector<1x512xf32>
    %83 = vector.broadcast %82 : vector<1x512xf32> to vector<8x512xf32>
    %84 = arith.addf %80, %83 : vector<8x512xf32>
    %cst_65 = arith.constant 0.000000e+00 : f32
    %85 = vector.broadcast %cst_65 : f32 to vector<8x512xf32>
    %86 = arith.maximumf %84, %85 : vector<8x512xf32>
    %c0_66 = arith.constant 0 : index
    %c0_67 = arith.constant 0 : index
    %c0_68 = arith.constant 0 : index
    %87 = vector.load %arg16[%c0_66, %c0_67, %c0_68] : memref<3x512x64xf32, #tpu.memory_space<vmem>>, vector<1x512x64xf32>
    %88 = vector.shape_cast %87 : vector<1x512x64xf32> to vector<512x64xf32>
    %cst_69 = arith.constant dense<0.000000e+00> : vector<8x64xf32>
    %89 = tpu.matmul %86, %88, %cst_69 {dimension_numbers = #tpu.dot_dimension_numbers<[1], [0], [0], [1], [0, 0, 1, 1], [], []>} : vector<8x512xf32>, vector<512x64xf32>, vector<8x64xf32> -> vector<8x64xf32>
    %c0_70 = arith.constant 0 : index
    %c0_71 = arith.constant 0 : index
    %c0_72 = arith.constant 0 : index
    %90 = vector.load %arg17[%c0_70, %c0_71, %c0_72] : memref<3x1x64xf32, #tpu.memory_space<vmem>>, vector<1x1x64xf32>
    %91 = vector.shape_cast %90 : vector<1x1x64xf32> to vector<1x64xf32>
    %92 = vector.broadcast %91 : vector<1x64xf32> to vector<8x64xf32>
    %93 = arith.addf %89, %92 : vector<8x64xf32>
    %94 = arith.addf %77, %93 : vector<8x64xf32>
    %c0_73 = arith.constant 0 : index
    %c0_74 = arith.constant 0 : index
    %c0_75 = arith.constant 0 : index
    %95 = vector.load %arg18[%c0_73, %c0_74, %c0_75] : memref<3x1x64xf32, #tpu.memory_space<vmem>>, vector<1x1x64xf32>
    %96 = vector.shape_cast %95 : vector<1x1x64xf32> to vector<1x64xf32>
    %c0_76 = arith.constant 0 : index
    %c0_77 = arith.constant 0 : index
    %c0_78 = arith.constant 0 : index
    %97 = vector.load %arg19[%c0_76, %c0_77, %c0_78] : memref<3x1x64xf32, #tpu.memory_space<vmem>>, vector<1x1x64xf32>
    %98 = vector.shape_cast %97 : vector<1x1x64xf32> to vector<1x64xf32>
    %cst_79 = arith.constant dense<0.000000e+00> : vector<8xf32>
    %99 = vector.multi_reduction <add>, %94, %cst_79 [1] : vector<8x64xf32> to vector<8xf32>
    %100 = vector.shape_cast %99 : vector<8xf32> to vector<8x1xf32>
    %cst_80 = arith.constant 6.400000e+01 : f32
    %101 = vector.broadcast %cst_80 : f32 to vector<8x1xf32>
    %102 = arith.divf %100, %101 : vector<8x1xf32>
    %103 = vector.broadcast %102 : vector<8x1xf32> to vector<8x64xf32>
    %104 = arith.subf %94, %103 : vector<8x64xf32>
    %105 = arith.mulf %104, %104 : vector<8x64xf32>
    %cst_81 = arith.constant dense<0.000000e+00> : vector<8xf32>
    %106 = vector.multi_reduction <add>, %105, %cst_81 [1] : vector<8x64xf32> to vector<8xf32>
    %107 = vector.shape_cast %106 : vector<8xf32> to vector<8x1xf32>
    %cst_82 = arith.constant 6.400000e+01 : f32
    %108 = vector.broadcast %cst_82 : f32 to vector<8x1xf32>
    %109 = arith.divf %107, %108 : vector<8x1xf32>
    %110 = vector.broadcast %102 : vector<8x1xf32> to vector<8x64xf32>
    %111 = arith.subf %94, %110 : vector<8x64xf32>
    %cst_83 = arith.constant 9.99999974E-6 : f32
    %112 = vector.broadcast %cst_83 : f32 to vector<8x1xf32>
    %113 = arith.addf %109, %112 : vector<8x1xf32>
    %114 = math.rsqrt %113 : vector<8x1xf32>
    %115 = vector.broadcast %114 : vector<8x1xf32> to vector<8x64xf32>
    %116 = arith.mulf %111, %115 : vector<8x64xf32>
    %117 = vector.broadcast %96 : vector<1x64xf32> to vector<8x64xf32>
    %118 = arith.mulf %116, %117 : vector<8x64xf32>
    %119 = vector.broadcast %98 : vector<1x64xf32> to vector<8x64xf32>
    %120 = arith.addf %118, %119 : vector<8x64xf32>
    %121 = vector.shape_cast %120 : vector<8x64xf32> to vector<1x8x64xf32>
    %122 = vector.broadcast %121 : vector<1x8x64xf32> to vector<4x8x64xf32>
    %c1 = arith.constant 1 : index
    %c0_84 = arith.constant 0 : index
    %c0_85 = arith.constant 0 : index
    %c0_86 = arith.constant 0 : index
    %123 = vector.load %arg4[%c1, %c0_84, %c0_85, %c0_86] : memref<3x4x64x16xf32, #tpu.memory_space<vmem>>, vector<1x4x64x16xf32>
    %124 = vector.shape_cast %123 : vector<1x4x64x16xf32> to vector<4x64x16xf32>
    "tpu.trace_start"() <{level = 10 : i32, message = "hte,hed->htd"}> : () -> ()
    %cst_87 = arith.constant dense<0.000000e+00> : vector<4x8x16xf32>
    %125 = tpu.matmul %122, %124, %cst_87 {dimension_numbers = #tpu.dot_dimension_numbers<[2], [1], [1], [2], [0, 0, 0, 1, 1, 2], [0], [0]>} : vector<4x8x64xf32>, vector<4x64x16xf32>, vector<4x8x16xf32> -> vector<4x8x16xf32>
    "tpu.trace_stop"() : () -> ()
    %c1_88 = arith.constant 1 : index
    %c0_89 = arith.constant 0 : index
    %c0_90 = arith.constant 0 : index
    %c0_91 = arith.constant 0 : index
    %126 = vector.load %arg5[%c1_88, %c0_89, %c0_90, %c0_91] : memref<3x4x1x16xf32, #tpu.memory_space<vmem>>, vector<1x4x1x16xf32>
    %127 = vector.shape_cast %126 : vector<1x4x1x16xf32> to vector<4x1x16xf32>
    %128 = vector.broadcast %127 : vector<4x1x16xf32> to vector<4x8x16xf32>
    %129 = arith.addf %125, %128 : vector<4x8x16xf32>
    %c1_92 = arith.constant 1 : index
    %c0_93 = arith.constant 0 : index
    %c0_94 = arith.constant 0 : index
    %c0_95 = arith.constant 0 : index
    %130 = vector.load %arg6[%c1_92, %c0_93, %c0_94, %c0_95] : memref<3x4x64x16xf32, #tpu.memory_space<vmem>>, vector<1x4x64x16xf32>
    %131 = vector.shape_cast %130 : vector<1x4x64x16xf32> to vector<4x64x16xf32>
    "tpu.trace_start"() <{level = 10 : i32, message = "hte,hed->htd"}> : () -> ()
    %cst_96 = arith.constant dense<0.000000e+00> : vector<4x8x16xf32>
    %132 = tpu.matmul %122, %131, %cst_96 {dimension_numbers = #tpu.dot_dimension_numbers<[2], [1], [1], [2], [0, 0, 0, 1, 1, 2], [0], [0]>} : vector<4x8x64xf32>, vector<4x64x16xf32>, vector<4x8x16xf32> -> vector<4x8x16xf32>
    "tpu.trace_stop"() : () -> ()
    %c1_97 = arith.constant 1 : index
    %c0_98 = arith.constant 0 : index
    %c0_99 = arith.constant 0 : index
    %c0_100 = arith.constant 0 : index
    %133 = vector.load %arg7[%c1_97, %c0_98, %c0_99, %c0_100] : memref<3x4x1x16xf32, #tpu.memory_space<vmem>>, vector<1x4x1x16xf32>
    %134 = vector.shape_cast %133 : vector<1x4x1x16xf32> to vector<4x1x16xf32>
    %135 = vector.broadcast %134 : vector<4x1x16xf32> to vector<4x8x16xf32>
    %136 = arith.addf %132, %135 : vector<4x8x16xf32>
    %c1_101 = arith.constant 1 : index
    %c0_102 = arith.constant 0 : index
    %c0_103 = arith.constant 0 : index
    %c0_104 = arith.constant 0 : index
    %137 = vector.load %arg8[%c1_101, %c0_102, %c0_103, %c0_104] : memref<3x4x64x16xf32, #tpu.memory_space<vmem>>, vector<1x4x64x16xf32>
    %138 = vector.shape_cast %137 : vector<1x4x64x16xf32> to vector<4x64x16xf32>
    "tpu.trace_start"() <{level = 10 : i32, message = "hte,hed->htd"}> : () -> ()
    %cst_105 = arith.constant dense<0.000000e+00> : vector<4x8x16xf32>
    %139 = tpu.matmul %122, %138, %cst_105 {dimension_numbers = #tpu.dot_dimension_numbers<[2], [1], [1], [2], [0, 0, 0, 1, 1, 2], [0], [0]>} : vector<4x8x64xf32>, vector<4x64x16xf32>, vector<4x8x16xf32> -> vector<4x8x16xf32>
    "tpu.trace_stop"() : () -> ()
    %c1_106 = arith.constant 1 : index
    %c0_107 = arith.constant 0 : index
    %c0_108 = arith.constant 0 : index
    %c0_109 = arith.constant 0 : index
    %140 = vector.load %arg9[%c1_106, %c0_107, %c0_108, %c0_109] : memref<3x4x1x16xf32, #tpu.memory_space<vmem>>, vector<1x4x1x16xf32>
    %141 = vector.shape_cast %140 : vector<1x4x1x16xf32> to vector<4x1x16xf32>
    %142 = vector.broadcast %141 : vector<4x1x16xf32> to vector<4x8x16xf32>
    %143 = arith.addf %139, %142 : vector<4x8x16xf32>
    "tpu.trace_start"() <{level = 10 : i32, message = "hqd,hkd->hqk"}> : () -> ()
    %cst_110 = arith.constant dense<0.000000e+00> : vector<4x8x8xf32>
    %144 = tpu.matmul %129, %136, %cst_110 {dimension_numbers = #tpu.dot_dimension_numbers<[2], [2], [1], [1], [0, 0, 0, 1, 1, 1], [0], [0]>} : vector<4x8x16xf32>, vector<4x8x16xf32>, vector<4x8x8xf32> -> vector<4x8x8xf32>
    "tpu.trace_stop"() : () -> ()
    %cst_111 = arith.constant 2.500000e-01 : f32
    %145 = vector.broadcast %cst_111 : f32 to vector<4x8x8xf32>
    %146 = arith.mulf %144, %145 : vector<4x8x8xf32>
    %cst_112 = arith.constant dense<0xFF800000> : vector<4x8xf32>
    %147 = vector.multi_reduction <maximumf>, %146, %cst_112 [2] : vector<4x8x8xf32> to vector<4x8xf32>
    %148 = vector.shape_cast %147 : vector<4x8xf32> to vector<4x8x1xf32>
    %149 = vector.broadcast %148 : vector<4x8x1xf32> to vector<4x8x8xf32>
    %150 = arith.subf %146, %149 : vector<4x8x8xf32>
    %151 = math.exp %150 : vector<4x8x8xf32>
    %cst_113 = arith.constant dense<0.000000e+00> : vector<4x8xf32>
    %152 = vector.multi_reduction <add>, %151, %cst_113 [2] : vector<4x8x8xf32> to vector<4x8xf32>
    %153 = vector.shape_cast %152 : vector<4x8xf32> to vector<4x8x1xf32>
    %154 = vector.broadcast %153 : vector<4x8x1xf32> to vector<4x8x8xf32>
    %155 = arith.divf %151, %154 : vector<4x8x8xf32>
    "tpu.trace_start"() <{level = 10 : i32, message = "hqk,hkd->hqd"}> : () -> ()
    %cst_114 = arith.constant dense<0.000000e+00> : vector<4x8x16xf32>
    %156 = tpu.matmul %155, %143, %cst_114 {dimension_numbers = #tpu.dot_dimension_numbers<[2], [1], [1], [2], [0, 0, 0, 1, 1, 2], [0], [0]>} : vector<4x8x8xf32>, vector<4x8x16xf32>, vector<4x8x16xf32> -> vector<4x8x16xf32>
    "tpu.trace_stop"() : () -> ()
    %c1_115 = arith.constant 1 : index
    %c0_116 = arith.constant 0 : index
    %c0_117 = arith.constant 0 : index
    %c0_118 = arith.constant 0 : index
    %157 = vector.load %arg10[%c1_115, %c0_116, %c0_117, %c0_118] : memref<3x4x16x64xf32, #tpu.memory_space<vmem>>, vector<1x4x16x64xf32>
    %158 = vector.shape_cast %157 : vector<1x4x16x64xf32> to vector<4x16x64xf32>
    "tpu.trace_start"() <{level = 10 : i32, message = "htd,hde->hte"}> : () -> ()
    %cst_119 = arith.constant dense<0.000000e+00> : vector<4x8x64xf32>
    %159 = tpu.matmul %156, %158, %cst_119 {dimension_numbers = #tpu.dot_dimension_numbers<[2], [1], [1], [2], [0, 0, 0, 1, 1, 2], [0], [0]>} : vector<4x8x16xf32>, vector<4x16x64xf32>, vector<4x8x64xf32> -> vector<4x8x64xf32>
    "tpu.trace_stop"() : () -> ()
    %cst_120 = arith.constant dense<0.000000e+00> : vector<8x64xf32>
    %160 = vector.multi_reduction <add>, %159, %cst_120 [0] : vector<4x8x64xf32> to vector<8x64xf32>
    %c1_121 = arith.constant 1 : index
    %c0_122 = arith.constant 0 : index
    %c0_123 = arith.constant 0 : index
    %161 = vector.load %arg11[%c1_121, %c0_122, %c0_123] : memref<3x1x64xf32, #tpu.memory_space<vmem>>, vector<1x1x64xf32>
    %162 = vector.shape_cast %161 : vector<1x1x64xf32> to vector<1x64xf32>
    %163 = vector.broadcast %162 : vector<1x64xf32> to vector<8x64xf32>
    %164 = arith.addf %160, %163 : vector<8x64xf32>
    %165 = arith.addf %120, %164 : vector<8x64xf32>
    %c1_124 = arith.constant 1 : index
    %c0_125 = arith.constant 0 : index
    %c0_126 = arith.constant 0 : index
    %166 = vector.load %arg12[%c1_124, %c0_125, %c0_126] : memref<3x1x64xf32, #tpu.memory_space<vmem>>, vector<1x1x64xf32>
    %167 = vector.shape_cast %166 : vector<1x1x64xf32> to vector<1x64xf32>
    %c1_127 = arith.constant 1 : index
    %c0_128 = arith.constant 0 : index
    %c0_129 = arith.constant 0 : index
    %168 = vector.load %arg13[%c1_127, %c0_128, %c0_129] : memref<3x1x64xf32, #tpu.memory_space<vmem>>, vector<1x1x64xf32>
    %169 = vector.shape_cast %168 : vector<1x1x64xf32> to vector<1x64xf32>
    %cst_130 = arith.constant dense<0.000000e+00> : vector<8xf32>
    %170 = vector.multi_reduction <add>, %165, %cst_130 [1] : vector<8x64xf32> to vector<8xf32>
    %171 = vector.shape_cast %170 : vector<8xf32> to vector<8x1xf32>
    %cst_131 = arith.constant 6.400000e+01 : f32
    %172 = vector.broadcast %cst_131 : f32 to vector<8x1xf32>
    %173 = arith.divf %171, %172 : vector<8x1xf32>
    %174 = vector.broadcast %173 : vector<8x1xf32> to vector<8x64xf32>
    %175 = arith.subf %165, %174 : vector<8x64xf32>
    %176 = arith.mulf %175, %175 : vector<8x64xf32>
    %cst_132 = arith.constant dense<0.000000e+00> : vector<8xf32>
    %177 = vector.multi_reduction <add>, %176, %cst_132 [1] : vector<8x64xf32> to vector<8xf32>
    %178 = vector.shape_cast %177 : vector<8xf32> to vector<8x1xf32>
    %cst_133 = arith.constant 6.400000e+01 : f32
    %179 = vector.broadcast %cst_133 : f32 to vector<8x1xf32>
    %180 = arith.divf %178, %179 : vector<8x1xf32>
    %181 = vector.broadcast %173 : vector<8x1xf32> to vector<8x64xf32>
    %182 = arith.subf %165, %181 : vector<8x64xf32>
    %cst_134 = arith.constant 9.99999974E-6 : f32
    %183 = vector.broadcast %cst_134 : f32 to vector<8x1xf32>
    %184 = arith.addf %180, %183 : vector<8x1xf32>
    %185 = math.rsqrt %184 : vector<8x1xf32>
    %186 = vector.broadcast %185 : vector<8x1xf32> to vector<8x64xf32>
    %187 = arith.mulf %182, %186 : vector<8x64xf32>
    %188 = vector.broadcast %167 : vector<1x64xf32> to vector<8x64xf32>
    %189 = arith.mulf %187, %188 : vector<8x64xf32>
    %190 = vector.broadcast %169 : vector<1x64xf32> to vector<8x64xf32>
    %191 = arith.addf %189, %190 : vector<8x64xf32>
    %c1_135 = arith.constant 1 : index
    %c0_136 = arith.constant 0 : index
    %c0_137 = arith.constant 0 : index
    %192 = vector.load %arg14[%c1_135, %c0_136, %c0_137] : memref<3x64x512xf32, #tpu.memory_space<vmem>>, vector<1x64x512xf32>
    %193 = vector.shape_cast %192 : vector<1x64x512xf32> to vector<64x512xf32>
    %cst_138 = arith.constant dense<0.000000e+00> : vector<8x512xf32>
    %194 = tpu.matmul %191, %193, %cst_138 {dimension_numbers = #tpu.dot_dimension_numbers<[1], [0], [0], [1], [0, 0, 1, 1], [], []>} : vector<8x64xf32>, vector<64x512xf32>, vector<8x512xf32> -> vector<8x512xf32>
    %c1_139 = arith.constant 1 : index
    %c0_140 = arith.constant 0 : index
    %c0_141 = arith.constant 0 : index
    %195 = vector.load %arg15[%c1_139, %c0_140, %c0_141] : memref<3x1x512xf32, #tpu.memory_space<vmem>>, vector<1x1x512xf32>
    %196 = vector.shape_cast %195 : vector<1x1x512xf32> to vector<1x512xf32>
    %197 = vector.broadcast %196 : vector<1x512xf32> to vector<8x512xf32>
    %198 = arith.addf %194, %197 : vector<8x512xf32>
    %cst_142 = arith.constant 0.000000e+00 : f32
    %199 = vector.broadcast %cst_142 : f32 to vector<8x512xf32>
    %200 = arith.maximumf %198, %199 : vector<8x512xf32>
    %c1_143 = arith.constant 1 : index
    %c0_144 = arith.constant 0 : index
    %c0_145 = arith.constant 0 : index
    %201 = vector.load %arg16[%c1_143, %c0_144, %c0_145] : memref<3x512x64xf32, #tpu.memory_space<vmem>>, vector<1x512x64xf32>
    %202 = vector.shape_cast %201 : vector<1x512x64xf32> to vector<512x64xf32>
    %cst_146 = arith.constant dense<0.000000e+00> : vector<8x64xf32>
    %203 = tpu.matmul %200, %202, %cst_146 {dimension_numbers = #tpu.dot_dimension_numbers<[1], [0], [0], [1], [0, 0, 1, 1], [], []>} : vector<8x512xf32>, vector<512x64xf32>, vector<8x64xf32> -> vector<8x64xf32>
    %c1_147 = arith.constant 1 : index
    %c0_148 = arith.constant 0 : index
    %c0_149 = arith.constant 0 : index
    %204 = vector.load %arg17[%c1_147, %c0_148, %c0_149] : memref<3x1x64xf32, #tpu.memory_space<vmem>>, vector<1x1x64xf32>
    %205 = vector.shape_cast %204 : vector<1x1x64xf32> to vector<1x64xf32>
    %206 = vector.broadcast %205 : vector<1x64xf32> to vector<8x64xf32>
    %207 = arith.addf %203, %206 : vector<8x64xf32>
    %208 = arith.addf %191, %207 : vector<8x64xf32>
    %c1_150 = arith.constant 1 : index
    %c0_151 = arith.constant 0 : index
    %c0_152 = arith.constant 0 : index
    %209 = vector.load %arg18[%c1_150, %c0_151, %c0_152] : memref<3x1x64xf32, #tpu.memory_space<vmem>>, vector<1x1x64xf32>
    %210 = vector.shape_cast %209 : vector<1x1x64xf32> to vector<1x64xf32>
    %c1_153 = arith.constant 1 : index
    %c0_154 = arith.constant 0 : index
    %c0_155 = arith.constant 0 : index
    %211 = vector.load %arg19[%c1_153, %c0_154, %c0_155] : memref<3x1x64xf32, #tpu.memory_space<vmem>>, vector<1x1x64xf32>
    %212 = vector.shape_cast %211 : vector<1x1x64xf32> to vector<1x64xf32>
    %cst_156 = arith.constant dense<0.000000e+00> : vector<8xf32>
    %213 = vector.multi_reduction <add>, %208, %cst_156 [1] : vector<8x64xf32> to vector<8xf32>
    %214 = vector.shape_cast %213 : vector<8xf32> to vector<8x1xf32>
    %cst_157 = arith.constant 6.400000e+01 : f32
    %215 = vector.broadcast %cst_157 : f32 to vector<8x1xf32>
    %216 = arith.divf %214, %215 : vector<8x1xf32>
    %217 = vector.broadcast %216 : vector<8x1xf32> to vector<8x64xf32>
    %218 = arith.subf %208, %217 : vector<8x64xf32>
    %219 = arith.mulf %218, %218 : vector<8x64xf32>
    %cst_158 = arith.constant dense<0.000000e+00> : vector<8xf32>
    %220 = vector.multi_reduction <add>, %219, %cst_158 [1] : vector<8x64xf32> to vector<8xf32>
    %221 = vector.shape_cast %220 : vector<8xf32> to vector<8x1xf32>
    %cst_159 = arith.constant 6.400000e+01 : f32
    %222 = vector.broadcast %cst_159 : f32 to vector<8x1xf32>
    %223 = arith.divf %221, %222 : vector<8x1xf32>
    %224 = vector.broadcast %216 : vector<8x1xf32> to vector<8x64xf32>
    %225 = arith.subf %208, %224 : vector<8x64xf32>
    %cst_160 = arith.constant 9.99999974E-6 : f32
    %226 = vector.broadcast %cst_160 : f32 to vector<8x1xf32>
    %227 = arith.addf %223, %226 : vector<8x1xf32>
    %228 = math.rsqrt %227 : vector<8x1xf32>
    %229 = vector.broadcast %228 : vector<8x1xf32> to vector<8x64xf32>
    %230 = arith.mulf %225, %229 : vector<8x64xf32>
    %231 = vector.broadcast %210 : vector<1x64xf32> to vector<8x64xf32>
    %232 = arith.mulf %230, %231 : vector<8x64xf32>
    %233 = vector.broadcast %212 : vector<1x64xf32> to vector<8x64xf32>
    %234 = arith.addf %232, %233 : vector<8x64xf32>
    %235 = vector.shape_cast %234 : vector<8x64xf32> to vector<1x8x64xf32>
    %236 = vector.broadcast %235 : vector<1x8x64xf32> to vector<4x8x64xf32>
    %c2 = arith.constant 2 : index
    %c0_161 = arith.constant 0 : index
    %c0_162 = arith.constant 0 : index
    %c0_163 = arith.constant 0 : index
    %237 = vector.load %arg4[%c2, %c0_161, %c0_162, %c0_163] : memref<3x4x64x16xf32, #tpu.memory_space<vmem>>, vector<1x4x64x16xf32>
    %238 = vector.shape_cast %237 : vector<1x4x64x16xf32> to vector<4x64x16xf32>
    "tpu.trace_start"() <{level = 10 : i32, message = "hte,hed->htd"}> : () -> ()
    %cst_164 = arith.constant dense<0.000000e+00> : vector<4x8x16xf32>
    %239 = tpu.matmul %236, %238, %cst_164 {dimension_numbers = #tpu.dot_dimension_numbers<[2], [1], [1], [2], [0, 0, 0, 1, 1, 2], [0], [0]>} : vector<4x8x64xf32>, vector<4x64x16xf32>, vector<4x8x16xf32> -> vector<4x8x16xf32>
    "tpu.trace_stop"() : () -> ()
    %c2_165 = arith.constant 2 : index
    %c0_166 = arith.constant 0 : index
    %c0_167 = arith.constant 0 : index
    %c0_168 = arith.constant 0 : index
    %240 = vector.load %arg5[%c2_165, %c0_166, %c0_167, %c0_168] : memref<3x4x1x16xf32, #tpu.memory_space<vmem>>, vector<1x4x1x16xf32>
    %241 = vector.shape_cast %240 : vector<1x4x1x16xf32> to vector<4x1x16xf32>
    %242 = vector.broadcast %241 : vector<4x1x16xf32> to vector<4x8x16xf32>
    %243 = arith.addf %239, %242 : vector<4x8x16xf32>
    %c2_169 = arith.constant 2 : index
    %c0_170 = arith.constant 0 : index
    %c0_171 = arith.constant 0 : index
    %c0_172 = arith.constant 0 : index
    %244 = vector.load %arg6[%c2_169, %c0_170, %c0_171, %c0_172] : memref<3x4x64x16xf32, #tpu.memory_space<vmem>>, vector<1x4x64x16xf32>
    %245 = vector.shape_cast %244 : vector<1x4x64x16xf32> to vector<4x64x16xf32>
    "tpu.trace_start"() <{level = 10 : i32, message = "hte,hed->htd"}> : () -> ()
    %cst_173 = arith.constant dense<0.000000e+00> : vector<4x8x16xf32>
    %246 = tpu.matmul %236, %245, %cst_173 {dimension_numbers = #tpu.dot_dimension_numbers<[2], [1], [1], [2], [0, 0, 0, 1, 1, 2], [0], [0]>} : vector<4x8x64xf32>, vector<4x64x16xf32>, vector<4x8x16xf32> -> vector<4x8x16xf32>
    "tpu.trace_stop"() : () -> ()
    %c2_174 = arith.constant 2 : index
    %c0_175 = arith.constant 0 : index
    %c0_176 = arith.constant 0 : index
    %c0_177 = arith.constant 0 : index
    %247 = vector.load %arg7[%c2_174, %c0_175, %c0_176, %c0_177] : memref<3x4x1x16xf32, #tpu.memory_space<vmem>>, vector<1x4x1x16xf32>
    %248 = vector.shape_cast %247 : vector<1x4x1x16xf32> to vector<4x1x16xf32>
    %249 = vector.broadcast %248 : vector<4x1x16xf32> to vector<4x8x16xf32>
    %250 = arith.addf %246, %249 : vector<4x8x16xf32>
    %c2_178 = arith.constant 2 : index
    %c0_179 = arith.constant 0 : index
    %c0_180 = arith.constant 0 : index
    %c0_181 = arith.constant 0 : index
    %251 = vector.load %arg8[%c2_178, %c0_179, %c0_180, %c0_181] : memref<3x4x64x16xf32, #tpu.memory_space<vmem>>, vector<1x4x64x16xf32>
    %252 = vector.shape_cast %251 : vector<1x4x64x16xf32> to vector<4x64x16xf32>
    "tpu.trace_start"() <{level = 10 : i32, message = "hte,hed->htd"}> : () -> ()
    %cst_182 = arith.constant dense<0.000000e+00> : vector<4x8x16xf32>
    %253 = tpu.matmul %236, %252, %cst_182 {dimension_numbers = #tpu.dot_dimension_numbers<[2], [1], [1], [2], [0, 0, 0, 1, 1, 2], [0], [0]>} : vector<4x8x64xf32>, vector<4x64x16xf32>, vector<4x8x16xf32> -> vector<4x8x16xf32>
    "tpu.trace_stop"() : () -> ()
    %c2_183 = arith.constant 2 : index
    %c0_184 = arith.constant 0 : index
    %c0_185 = arith.constant 0 : index
    %c0_186 = arith.constant 0 : index
    %254 = vector.load %arg9[%c2_183, %c0_184, %c0_185, %c0_186] : memref<3x4x1x16xf32, #tpu.memory_space<vmem>>, vector<1x4x1x16xf32>
    %255 = vector.shape_cast %254 : vector<1x4x1x16xf32> to vector<4x1x16xf32>
    %256 = vector.broadcast %255 : vector<4x1x16xf32> to vector<4x8x16xf32>
    %257 = arith.addf %253, %256 : vector<4x8x16xf32>
    "tpu.trace_start"() <{level = 10 : i32, message = "hqd,hkd->hqk"}> : () -> ()
    %cst_187 = arith.constant dense<0.000000e+00> : vector<4x8x8xf32>
    %258 = tpu.matmul %243, %250, %cst_187 {dimension_numbers = #tpu.dot_dimension_numbers<[2], [2], [1], [1], [0, 0, 0, 1, 1, 1], [0], [0]>} : vector<4x8x16xf32>, vector<4x8x16xf32>, vector<4x8x8xf32> -> vector<4x8x8xf32>
    "tpu.trace_stop"() : () -> ()
    %cst_188 = arith.constant 2.500000e-01 : f32
    %259 = vector.broadcast %cst_188 : f32 to vector<4x8x8xf32>
    %260 = arith.mulf %258, %259 : vector<4x8x8xf32>
    %cst_189 = arith.constant dense<0xFF800000> : vector<4x8xf32>
    %261 = vector.multi_reduction <maximumf>, %260, %cst_189 [2] : vector<4x8x8xf32> to vector<4x8xf32>
    %262 = vector.shape_cast %261 : vector<4x8xf32> to vector<4x8x1xf32>
    %263 = vector.broadcast %262 : vector<4x8x1xf32> to vector<4x8x8xf32>
    %264 = arith.subf %260, %263 : vector<4x8x8xf32>
    %265 = math.exp %264 : vector<4x8x8xf32>
    %cst_190 = arith.constant dense<0.000000e+00> : vector<4x8xf32>
    %266 = vector.multi_reduction <add>, %265, %cst_190 [2] : vector<4x8x8xf32> to vector<4x8xf32>
    %267 = vector.shape_cast %266 : vector<4x8xf32> to vector<4x8x1xf32>
    %268 = vector.broadcast %267 : vector<4x8x1xf32> to vector<4x8x8xf32>
    %269 = arith.divf %265, %268 : vector<4x8x8xf32>
    "tpu.trace_start"() <{level = 10 : i32, message = "hqk,hkd->hqd"}> : () -> ()
    %cst_191 = arith.constant dense<0.000000e+00> : vector<4x8x16xf32>
    %270 = tpu.matmul %269, %257, %cst_191 {dimension_numbers = #tpu.dot_dimension_numbers<[2], [1], [1], [2], [0, 0, 0, 1, 1, 2], [0], [0]>} : vector<4x8x8xf32>, vector<4x8x16xf32>, vector<4x8x16xf32> -> vector<4x8x16xf32>
    "tpu.trace_stop"() : () -> ()
    %c2_192 = arith.constant 2 : index
    %c0_193 = arith.constant 0 : index
    %c0_194 = arith.constant 0 : index
    %c0_195 = arith.constant 0 : index
    %271 = vector.load %arg10[%c2_192, %c0_193, %c0_194, %c0_195] : memref<3x4x16x64xf32, #tpu.memory_space<vmem>>, vector<1x4x16x64xf32>
    %272 = vector.shape_cast %271 : vector<1x4x16x64xf32> to vector<4x16x64xf32>
    "tpu.trace_start"() <{level = 10 : i32, message = "htd,hde->hte"}> : () -> ()
    %cst_196 = arith.constant dense<0.000000e+00> : vector<4x8x64xf32>
    %273 = tpu.matmul %270, %272, %cst_196 {dimension_numbers = #tpu.dot_dimension_numbers<[2], [1], [1], [2], [0, 0, 0, 1, 1, 2], [0], [0]>} : vector<4x8x16xf32>, vector<4x16x64xf32>, vector<4x8x64xf32> -> vector<4x8x64xf32>
    "tpu.trace_stop"() : () -> ()
    %cst_197 = arith.constant dense<0.000000e+00> : vector<8x64xf32>
    %274 = vector.multi_reduction <add>, %273, %cst_197 [0] : vector<4x8x64xf32> to vector<8x64xf32>
    %c2_198 = arith.constant 2 : index
    %c0_199 = arith.constant 0 : index
    %c0_200 = arith.constant 0 : index
    %275 = vector.load %arg11[%c2_198, %c0_199, %c0_200] : memref<3x1x64xf32, #tpu.memory_space<vmem>>, vector<1x1x64xf32>
    %276 = vector.shape_cast %275 : vector<1x1x64xf32> to vector<1x64xf32>
    %277 = vector.broadcast %276 : vector<1x64xf32> to vector<8x64xf32>
    %278 = arith.addf %274, %277 : vector<8x64xf32>
    %279 = arith.addf %234, %278 : vector<8x64xf32>
    %c2_201 = arith.constant 2 : index
    %c0_202 = arith.constant 0 : index
    %c0_203 = arith.constant 0 : index
    %280 = vector.load %arg12[%c2_201, %c0_202, %c0_203] : memref<3x1x64xf32, #tpu.memory_space<vmem>>, vector<1x1x64xf32>
    %281 = vector.shape_cast %280 : vector<1x1x64xf32> to vector<1x64xf32>
    %c2_204 = arith.constant 2 : index
    %c0_205 = arith.constant 0 : index
    %c0_206 = arith.constant 0 : index
    %282 = vector.load %arg13[%c2_204, %c0_205, %c0_206] : memref<3x1x64xf32, #tpu.memory_space<vmem>>, vector<1x1x64xf32>
    %283 = vector.shape_cast %282 : vector<1x1x64xf32> to vector<1x64xf32>
    %cst_207 = arith.constant dense<0.000000e+00> : vector<8xf32>
    %284 = vector.multi_reduction <add>, %279, %cst_207 [1] : vector<8x64xf32> to vector<8xf32>
    %285 = vector.shape_cast %284 : vector<8xf32> to vector<8x1xf32>
    %cst_208 = arith.constant 6.400000e+01 : f32
    %286 = vector.broadcast %cst_208 : f32 to vector<8x1xf32>
    %287 = arith.divf %285, %286 : vector<8x1xf32>
    %288 = vector.broadcast %287 : vector<8x1xf32> to vector<8x64xf32>
    %289 = arith.subf %279, %288 : vector<8x64xf32>
    %290 = arith.mulf %289, %289 : vector<8x64xf32>
    %cst_209 = arith.constant dense<0.000000e+00> : vector<8xf32>
    %291 = vector.multi_reduction <add>, %290, %cst_209 [1] : vector<8x64xf32> to vector<8xf32>
    %292 = vector.shape_cast %291 : vector<8xf32> to vector<8x1xf32>
    %cst_210 = arith.constant 6.400000e+01 : f32
    %293 = vector.broadcast %cst_210 : f32 to vector<8x1xf32>
    %294 = arith.divf %292, %293 : vector<8x1xf32>
    %295 = vector.broadcast %287 : vector<8x1xf32> to vector<8x64xf32>
    %296 = arith.subf %279, %295 : vector<8x64xf32>
    %cst_211 = arith.constant 9.99999974E-6 : f32
    %297 = vector.broadcast %cst_211 : f32 to vector<8x1xf32>
    %298 = arith.addf %294, %297 : vector<8x1xf32>
    %299 = math.rsqrt %298 : vector<8x1xf32>
    %300 = vector.broadcast %299 : vector<8x1xf32> to vector<8x64xf32>
    %301 = arith.mulf %296, %300 : vector<8x64xf32>
    %302 = vector.broadcast %281 : vector<1x64xf32> to vector<8x64xf32>
    %303 = arith.mulf %301, %302 : vector<8x64xf32>
    %304 = vector.broadcast %283 : vector<1x64xf32> to vector<8x64xf32>
    %305 = arith.addf %303, %304 : vector<8x64xf32>
    %c2_212 = arith.constant 2 : index
    %c0_213 = arith.constant 0 : index
    %c0_214 = arith.constant 0 : index
    %306 = vector.load %arg14[%c2_212, %c0_213, %c0_214] : memref<3x64x512xf32, #tpu.memory_space<vmem>>, vector<1x64x512xf32>
    %307 = vector.shape_cast %306 : vector<1x64x512xf32> to vector<64x512xf32>
    %cst_215 = arith.constant dense<0.000000e+00> : vector<8x512xf32>
    %308 = tpu.matmul %305, %307, %cst_215 {dimension_numbers = #tpu.dot_dimension_numbers<[1], [0], [0], [1], [0, 0, 1, 1], [], []>} : vector<8x64xf32>, vector<64x512xf32>, vector<8x512xf32> -> vector<8x512xf32>
    %c2_216 = arith.constant 2 : index
    %c0_217 = arith.constant 0 : index
    %c0_218 = arith.constant 0 : index
    %309 = vector.load %arg15[%c2_216, %c0_217, %c0_218] : memref<3x1x512xf32, #tpu.memory_space<vmem>>, vector<1x1x512xf32>
    %310 = vector.shape_cast %309 : vector<1x1x512xf32> to vector<1x512xf32>
    %311 = vector.broadcast %310 : vector<1x512xf32> to vector<8x512xf32>
    %312 = arith.addf %308, %311 : vector<8x512xf32>
    %cst_219 = arith.constant 0.000000e+00 : f32
    %313 = vector.broadcast %cst_219 : f32 to vector<8x512xf32>
    %314 = arith.maximumf %312, %313 : vector<8x512xf32>
    %c2_220 = arith.constant 2 : index
    %c0_221 = arith.constant 0 : index
    %c0_222 = arith.constant 0 : index
    %315 = vector.load %arg16[%c2_220, %c0_221, %c0_222] : memref<3x512x64xf32, #tpu.memory_space<vmem>>, vector<1x512x64xf32>
    %316 = vector.shape_cast %315 : vector<1x512x64xf32> to vector<512x64xf32>
    %cst_223 = arith.constant dense<0.000000e+00> : vector<8x64xf32>
    %317 = tpu.matmul %314, %316, %cst_223 {dimension_numbers = #tpu.dot_dimension_numbers<[1], [0], [0], [1], [0, 0, 1, 1], [], []>} : vector<8x512xf32>, vector<512x64xf32>, vector<8x64xf32> -> vector<8x64xf32>
    %c2_224 = arith.constant 2 : index
    %c0_225 = arith.constant 0 : index
    %c0_226 = arith.constant 0 : index
    %318 = vector.load %arg17[%c2_224, %c0_225, %c0_226] : memref<3x1x64xf32, #tpu.memory_space<vmem>>, vector<1x1x64xf32>
    %319 = vector.shape_cast %318 : vector<1x1x64xf32> to vector<1x64xf32>
    %320 = vector.broadcast %319 : vector<1x64xf32> to vector<8x64xf32>
    %321 = arith.addf %317, %320 : vector<8x64xf32>
    %322 = arith.addf %305, %321 : vector<8x64xf32>
    %c2_227 = arith.constant 2 : index
    %c0_228 = arith.constant 0 : index
    %c0_229 = arith.constant 0 : index
    %323 = vector.load %arg18[%c2_227, %c0_228, %c0_229] : memref<3x1x64xf32, #tpu.memory_space<vmem>>, vector<1x1x64xf32>
    %324 = vector.shape_cast %323 : vector<1x1x64xf32> to vector<1x64xf32>
    %c2_230 = arith.constant 2 : index
    %c0_231 = arith.constant 0 : index
    %c0_232 = arith.constant 0 : index
    %325 = vector.load %arg19[%c2_230, %c0_231, %c0_232] : memref<3x1x64xf32, #tpu.memory_space<vmem>>, vector<1x1x64xf32>
    %326 = vector.shape_cast %325 : vector<1x1x64xf32> to vector<1x64xf32>
    %cst_233 = arith.constant dense<0.000000e+00> : vector<8xf32>
    %327 = vector.multi_reduction <add>, %322, %cst_233 [1] : vector<8x64xf32> to vector<8xf32>
    %328 = vector.shape_cast %327 : vector<8xf32> to vector<8x1xf32>
    %cst_234 = arith.constant 6.400000e+01 : f32
    %329 = vector.broadcast %cst_234 : f32 to vector<8x1xf32>
    %330 = arith.divf %328, %329 : vector<8x1xf32>
    %331 = vector.broadcast %330 : vector<8x1xf32> to vector<8x64xf32>
    %332 = arith.subf %322, %331 : vector<8x64xf32>
    %333 = arith.mulf %332, %332 : vector<8x64xf32>
    %cst_235 = arith.constant dense<0.000000e+00> : vector<8xf32>
    %334 = vector.multi_reduction <add>, %333, %cst_235 [1] : vector<8x64xf32> to vector<8xf32>
    %335 = vector.shape_cast %334 : vector<8xf32> to vector<8x1xf32>
    %cst_236 = arith.constant 6.400000e+01 : f32
    %336 = vector.broadcast %cst_236 : f32 to vector<8x1xf32>
    %337 = arith.divf %335, %336 : vector<8x1xf32>
    %338 = vector.broadcast %330 : vector<8x1xf32> to vector<8x64xf32>
    %339 = arith.subf %322, %338 : vector<8x64xf32>
    %cst_237 = arith.constant 9.99999974E-6 : f32
    %340 = vector.broadcast %cst_237 : f32 to vector<8x1xf32>
    %341 = arith.addf %337, %340 : vector<8x1xf32>
    %342 = math.rsqrt %341 : vector<8x1xf32>
    %343 = vector.broadcast %342 : vector<8x1xf32> to vector<8x64xf32>
    %344 = arith.mulf %339, %343 : vector<8x64xf32>
    %345 = vector.broadcast %324 : vector<1x64xf32> to vector<8x64xf32>
    %346 = arith.mulf %344, %345 : vector<8x64xf32>
    %347 = vector.broadcast %326 : vector<1x64xf32> to vector<8x64xf32>
    %348 = arith.addf %346, %347 : vector<8x64xf32>
    %c0_238 = arith.constant 0 : index
    %c0_239 = arith.constant 0 : index
    %c0_240 = arith.constant 0 : index
    %349 = vector.load %arg22[%c0_238, %c0_239, %c0_240] : memref<1x8x64xf32, #tpu.memory_space<vmem>>, vector<1x8x64xf32>
    %350 = vector.shape_cast %349 : vector<1x8x64xf32> to vector<8x64xf32>
    %351 = vector.shape_cast %348 : vector<8x64xf32> to vector<1x8x64xf32>
    tpu.vector_store %arg22[%c0_238, %c0_239, %c0_240], %351 {strides = array<i32>} : memref<1x8x64xf32, #tpu.memory_space<vmem>>, vector<1x8x64xf32>,
    %cst_241 = arith.constant dense<0.000000e+00> : vector<64xf32>
    %352 = vector.multi_reduction <add>, %348, %cst_241 [0] : vector<8x64xf32> to vector<64xf32>
    %353 = vector.shape_cast %352 : vector<64xf32> to vector<1x64xf32>
    %cst_242 = arith.constant 8.000000e+00 : f32
    %354 = vector.broadcast %cst_242 : f32 to vector<1x64xf32>
    %355 = arith.divf %353, %354 : vector<1x64xf32>
    %c0_243 = arith.constant 0 : index
    %c0_244 = arith.constant 0 : index
    %356 = vector.load %arg20[%c0_243, %c0_244] : memref<64x1xf32, #tpu.memory_space<vmem>>, vector<64x1xf32>
    %cst_245 = arith.constant dense<0.000000e+00> : vector<1x1xf32>
    %357 = tpu.matmul %355, %356, %cst_245 {dimension_numbers = #tpu.dot_dimension_numbers<[1], [0], [0], [1], [0, 0, 1, 1], [], []>} : vector<1x64xf32>, vector<64x1xf32>, vector<1x1xf32> -> vector<1x1xf32>
    %c0_246 = arith.constant 0 : index
    %c0_247 = arith.constant 0 : index
    %358 = vector.load %arg21[%c0_246, %c0_247] : memref<1x1xf32, #tpu.memory_space<vmem>>, vector<1x1xf32>
    %359 = arith.addf %357, %358 : vector<1x1xf32>
    %360 = vector.shape_cast %359 : vector<1x1xf32> to vector<1x1xf32>
    %361 = vector.broadcast %360 : vector<1x1xf32> to vector<1x64xf32>
    %c0_248 = arith.constant 0 : index
    %c0_249 = arith.constant 0 : index
    %c0_250 = arith.constant 0 : index
    %362 = vector.load %arg23[%c0_248, %c0_249, %c0_250] : memref<1x1x64xf32, #tpu.memory_space<vmem>>, vector<1x1x64xf32>
    %363 = vector.shape_cast %362 : vector<1x1x64xf32> to vector<1x64xf32>
    %364 = vector.shape_cast %361 : vector<1x64xf32> to vector<1x1x64xf32>
    tpu.vector_store %arg23[%c0_248, %c0_249, %c0_250], %364 {strides = array<i32>} : memref<1x1x64xf32, #tpu.memory_space<vmem>>, vector<1x1x64xf32>,
    return
  }
  func.func @transform_0(%arg0: i32) -> (i32, i32, i32) {
    %c0_i32 = arith.constant 0 : i32
    %c0_i32_0 = arith.constant 0 : i32
    %c0_i32_1 = arith.constant 0 : i32
    return %arg0, %c0_i32, %c0_i32_0 : i32, i32, i32
  }
  func.func @transform_1(%arg0: i32) -> (i32, i32) {
    %c0_i32 = arith.constant 0 : i32
    %c0_i32_0 = arith.constant 0 : i32
    %c0_i32_1 = arith.constant 0 : i32
    return %c0_i32, %c0_i32_0 : i32, i32
  }
  func.func @transform_2(%arg0: i32) -> (i32, i32) {
    %c0_i32 = arith.constant 0 : i32
    %c0_i32_0 = arith.constant 0 : i32
    %c0_i32_1 = arith.constant 0 : i32
    return %c0_i32, %c0_i32_0 : i32, i32
  }
  func.func @transform_3(%arg0: i32) -> (i32, i32, i32, i32) {
    %c0_i32 = arith.constant 0 : i32
    %c0_i32_0 = arith.constant 0 : i32
    %c0_i32_1 = arith.constant 0 : i32
    %c0_i32_2 = arith.constant 0 : i32
    %c0_i32_3 = arith.constant 0 : i32
    return %c0_i32, %c0_i32_0, %c0_i32_1, %c0_i32_2 : i32, i32, i32, i32
  }
  func.func @transform_4(%arg0: i32) -> (i32, i32, i32, i32) {
    %c0_i32 = arith.constant 0 : i32
    %c0_i32_0 = arith.constant 0 : i32
    %c0_i32_1 = arith.constant 0 : i32
    %c0_i32_2 = arith.constant 0 : i32
    %c0_i32_3 = arith.constant 0 : i32
    return %c0_i32, %c0_i32_0, %c0_i32_1, %c0_i32_2 : i32, i32, i32, i32
  }
  func.func @transform_5(%arg0: i32) -> (i32, i32, i32, i32) {
    %c0_i32 = arith.constant 0 : i32
    %c0_i32_0 = arith.constant 0 : i32
    %c0_i32_1 = arith.constant 0 : i32
    %c0_i32_2 = arith.constant 0 : i32
    %c0_i32_3 = arith.constant 0 : i32
    return %c0_i32, %c0_i32_0, %c0_i32_1, %c0_i32_2 : i32, i32, i32, i32
  }
  func.func @transform_6(%arg0: i32) -> (i32, i32, i32, i32) {
    %c0_i32 = arith.constant 0 : i32
    %c0_i32_0 = arith.constant 0 : i32
    %c0_i32_1 = arith.constant 0 : i32
    %c0_i32_2 = arith.constant 0 : i32
    %c0_i32_3 = arith.constant 0 : i32
    return %c0_i32, %c0_i32_0, %c0_i32_1, %c0_i32_2 : i32, i32, i32, i32
  }
  func.func @transform_7(%arg0: i32) -> (i32, i32, i32, i32) {
    %c0_i32 = arith.constant 0 : i32
    %c0_i32_0 = arith.constant 0 : i32
    %c0_i32_1 = arith.constant 0 : i32
    %c0_i32_2 = arith.constant 0 : i32
    %c0_i32_3 = arith.constant 0 : i32
    return %c0_i32, %c0_i32_0, %c0_i32_1, %c0_i32_2 : i32, i32, i32, i32
  }
  func.func @transform_8(%arg0: i32) -> (i32, i32, i32, i32) {
    %c0_i32 = arith.constant 0 : i32
    %c0_i32_0 = arith.constant 0 : i32
    %c0_i32_1 = arith.constant 0 : i32
    %c0_i32_2 = arith.constant 0 : i32
    %c0_i32_3 = arith.constant 0 : i32
    return %c0_i32, %c0_i32_0, %c0_i32_1, %c0_i32_2 : i32, i32, i32, i32
  }
  func.func @transform_9(%arg0: i32) -> (i32, i32, i32, i32) {
    %c0_i32 = arith.constant 0 : i32
    %c0_i32_0 = arith.constant 0 : i32
    %c0_i32_1 = arith.constant 0 : i32
    %c0_i32_2 = arith.constant 0 : i32
    %c0_i32_3 = arith.constant 0 : i32
    return %c0_i32, %c0_i32_0, %c0_i32_1, %c0_i32_2 : i32, i32, i32, i32
  }
  func.func @transform_10(%arg0: i32) -> (i32, i32, i32) {
    %c0_i32 = arith.constant 0 : i32
    %c0_i32_0 = arith.constant 0 : i32
    %c0_i32_1 = arith.constant 0 : i32
    %c0_i32_2 = arith.constant 0 : i32
    return %c0_i32, %c0_i32_0, %c0_i32_1 : i32, i32, i32
  }
  func.func @transform_11(%arg0: i32) -> (i32, i32, i32) {
    %c0_i32 = arith.constant 0 : i32
    %c0_i32_0 = arith.constant 0 : i32
    %c0_i32_1 = arith.constant 0 : i32
    %c0_i32_2 = arith.constant 0 : i32
    return %c0_i32, %c0_i32_0, %c0_i32_1 : i32, i32, i32
  }
  func.func @transform_12(%arg0: i32) -> (i32, i32, i32) {
    %c0_i32 = arith.constant 0 : i32
    %c0_i32_0 = arith.constant 0 : i32
    %c0_i32_1 = arith.constant 0 : i32
    %c0_i32_2 = arith.constant 0 : i32
    return %c0_i32, %c0_i32_0, %c0_i32_1 : i32, i32, i32
  }
  func.func @transform_13(%arg0: i32) -> (i32, i32, i32) {
    %c0_i32 = arith.constant 0 : i32
    %c0_i32_0 = arith.constant 0 : i32
    %c0_i32_1 = arith.constant 0 : i32
    %c0_i32_2 = arith.constant 0 : i32
    return %c0_i32, %c0_i32_0, %c0_i32_1 : i32, i32, i32
  }
  func.func @transform_14(%arg0: i32) -> (i32, i32, i32) {
    %c0_i32 = arith.constant 0 : i32
    %c0_i32_0 = arith.constant 0 : i32
    %c0_i32_1 = arith.constant 0 : i32
    %c0_i32_2 = arith.constant 0 : i32
    return %c0_i32, %c0_i32_0, %c0_i32_1 : i32, i32, i32
  }
  func.func @transform_15(%arg0: i32) -> (i32, i32, i32) {
    %c0_i32 = arith.constant 0 : i32
    %c0_i32_0 = arith.constant 0 : i32
    %c0_i32_1 = arith.constant 0 : i32
    %c0_i32_2 = arith.constant 0 : i32
    return %c0_i32, %c0_i32_0, %c0_i32_1 : i32, i32, i32
  }
  func.func @transform_16(%arg0: i32) -> (i32, i32, i32) {
    %c0_i32 = arith.constant 0 : i32
    %c0_i32_0 = arith.constant 0 : i32
    %c0_i32_1 = arith.constant 0 : i32
    %c0_i32_2 = arith.constant 0 : i32
    return %c0_i32, %c0_i32_0, %c0_i32_1 : i32, i32, i32
  }
  func.func @transform_17(%arg0: i32) -> (i32, i32, i32) {
    %c0_i32 = arith.constant 0 : i32
    %c0_i32_0 = arith.constant 0 : i32
    %c0_i32_1 = arith.constant 0 : i32
    %c0_i32_2 = arith.constant 0 : i32
    return %c0_i32, %c0_i32_0, %c0_i32_1 : i32, i32, i32
  }
  func.func @transform_18(%arg0: i32) -> (i32, i32, i32) {
    %c0_i32 = arith.constant 0 : i32
    %c0_i32_0 = arith.constant 0 : i32
    %c0_i32_1 = arith.constant 0 : i32
    %c0_i32_2 = arith.constant 0 : i32
    return %c0_i32, %c0_i32_0, %c0_i32_1 : i32, i32, i32
  }
  func.func @transform_19(%arg0: i32) -> (i32, i32) {
    %c0_i32 = arith.constant 0 : i32
    %c0_i32_0 = arith.constant 0 : i32
    %c0_i32_1 = arith.constant 0 : i32
    return %c0_i32, %c0_i32_0 : i32, i32
  }
  func.func @transform_20(%arg0: i32) -> (i32, i32) {
    %c0_i32 = arith.constant 0 : i32
    %c0_i32_0 = arith.constant 0 : i32
    %c0_i32_1 = arith.constant 0 : i32
    return %c0_i32, %c0_i32_0 : i32, i32
  }
  func.func @transform_21(%arg0: i32) -> (i32, i32, i32) {
    %c0_i32 = arith.constant 0 : i32
    %c0_i32_0 = arith.constant 0 : i32
    %c0_i32_1 = arith.constant 0 : i32
    return %arg0, %c0_i32, %c0_i32_0 : i32, i32, i32
  }
  func.func @transform_22(%arg0: i32) -> (i32, i32, i32) {
    %c0_i32 = arith.constant 0 : i32
    %c0_i32_0 = arith.constant 0 : i32
    %c0_i32_1 = arith.constant 0 : i32
    return %arg0, %c0_i32, %c0_i32_0 : i32, i32, i32
  }
}

</mosaic_0001>

<bundles_post_ra>
// kernel: forward.1
= control target key start
LH: loop header
LB: loop body
LE: loop exit
PB: predicated region body
PF: predicated region fallthrough
CT: control target
= control target key end

     0   :  { %s7636_s0 = inlined_call_operand.vmem [shape: f32[2,8,32], index: 0, kind: input, shape index: {}]   ;;  %s7637_s1 = inlined_call_operand.vmem [shape: f32[32,64], index: 1, kind: input, shape index: {}]   ;;  %s7638_s2 = inlined_call_operand.vmem [shape: f32[1,64], index: 2, kind: input, shape index: {}]   ;;  %s7639_s3 = inlined_call_operand.vmem [shape: f32[3,4,64,16], index: 3, kind: input, shape index: {}]   ;;  %s7640_s4 = inlined_call_operand.vmem [shape: f32[3,4,1,16], index: 4, kind: input, shape index: {}]   ;;  %s7641_s5 = inlined_call_operand.vmem [shape: f32[3,4,64,16], index: 5, kind: input, shape index: {}]   ;;  %s7642_s6 = inlined_call_operand.vmem [shape: f32[3,4,1,16], index: 6, kind: input, shape index: {}]   ;;  %s7643_s7 = inlined_call_operand.vmem [shape: f32[3,4,64,16], index: 7, kind: input, shape index: {}]   ;;  %s7644_s8 = inlined_call_operand.vmem [shape: f32[3,4,1,16], index: 8, kind: input, shape index: {}]   ;;  %s7645_s9 = inlined_call_operand.vmem [shape: f32[3,4,16,64], index: 9, kind: input, shape index: {}]   ;;  %s7646_s10 = inlined_call_operand.vmem [shape: f32[3,1,64], index: 10, kind: input, shape index: {}]   ;;  %s7647_s11 = inlined_call_operand.vmem [shape: f32[3,1,64], index: 11, kind: input, shape index: {}]   ;;  %s7648_s12 = inlined_call_operand.vmem [shape: f32[3,1,64], index: 12, kind: input, shape index: {}]   ;;  %s7649_s13 = inlined_call_operand.vmem [shape: f32[3,64,512], index: 13, kind: input, shape index: {}]   ;;  %s7650_s14 = inlined_call_operand.vmem [shape: f32[3,1,512], index: 14, kind: input, shape index: {}]   ;;  %s7651_s15 = inlined_call_operand.vmem [shape: f32[3,512,64], index: 15, kind: input, shape index: {}]   ;;  %s7652_s16 = inlined_call_operand.vmem [shape: f32[3,1,64], index: 16, kind: input, shape index: {}]   ;;  %s7653_s17 = inlined_call_operand.vmem [shape: f32[3,1,64], index: 17, kind: input, shape index: {}]   ;;  %s7654_s18 = inlined_call_operand.vmem [shape: f32[3,1,64], index: 18, kind: input, shape index: {}]   ;;  %s7655_s19 = inlined_call_operand.vmem [shape: f32[64,1], index: 19, kind: input, shape index: {}]   ;;  %s7656_s20 = inlined_call_operand.<no memory space> [shape: f32[1,1], index: 20, kind: input, shape index: {}]   ;;  %s7657_s21 = inlined_call_operand.hbm [shape: f32[2,8,64], index: 21, kind: output, shape index: {0}]   ;;  %s7658_s22 = inlined_call_operand.vmem [shape: f32[2,1,64], index: 22, kind: output, shape index: {1}]  }
   0x1   :  { %7674 = sst [smem:[#allocation13_spill]] %s7636_s0  ;;  %v28_v0 = vstv %s7656_s20 }
   0x2   :  { %7675 = sst [smem:[#allocation14_spill]] %s7637_s1  ;;  %29 = vst [vmem:[#allocation2] sm:$0x1] %v28_v0 }
   0x3   :  { %7676 = sst [smem:[#allocation15_spill]] %s7638_s2 }
   0x4   :  { %7677 = sst [smem:[#allocation16_spill]] %s7639_s3 }
   0x5   :  { %7678 = sst [smem:[#allocation17_spill]] %s7640_s4 }
   0x6   :  { %7679 = sst [smem:[#allocation18_spill]] %s7641_s5 }
   0x7   :  { %7680 = sst [smem:[#allocation19_spill]] %s7642_s6 }
   0x8   :  { %7681 = sst [smem:[#allocation20_spill]] %s7643_s7 }
   0x9   :  { %7682 = sst [smem:[#allocation21_spill]] %s7644_s8 }
   0xa   :  { %7683 = sst [smem:[#allocation22_spill]] %s7658_s22 }
   0xb   :  { %30 = vsyncpa [#allocation4], 0 }
   0xc   :  { %32 = vsyncpa [#allocation4 + $0x1], 0  ;;  %s5227_s29 = smov 0   ;;  %s5229_s30 = smov 0  }
   0xd   :  { %s5231_s4 = smov 0   ;;  %s5233_s0 = smov 0  }
   0xe LB: > { %7684 = sst [smem:[#allocation6_spill]] %s5092_s29  ;;  %s5248_s20 = sadd.s32 4294967295, %s5104_s0   ;;  %s5104_s0 = sphi %s5233_s0, %s7707_s0   ;;  %s5100_s4 = sphi %s5231_s4, %s7709_s4   ;;  %s5096_s30 = sphi %s5229_s30, %s7711_s30   ;;  %s5092_s29 = sphi %s5227_s29, %s7710_s29  }
   0xf   : > { %7685 = sst [smem:[#allocation7_spill]] %s5100_s4  ;;  %s4334_s23 = sadd.s32 4294967294, %s5104_s0  }
  0x10   : > { %7686 = sst [smem:[#allocation8_spill]] %s5104_s0  ;;  %s5252_s1 = sadd.s32 1, %s5104_s0  }
  0x11   : > { %7687 = sst [smem:[#allocation9_spill]] %s5252_s1  ;;  %s491_s5 = sadd.s32 1, %s5100_s4 }
  0x12   : > { %s488_s24 = ssub.s32 %s5104_s0, %s5252_s1  ;;  %p501_p0 = scmp.ne.s32.totalorder %s5100_s4, %s5096_s30 }
  0x13   : > { %p489_p1 = scmp.eq.s32.totalorder %s488_s24, 0  ;;  %p502_p2 = scmp.eq.s32.totalorder %s5248_s20, 1 }
  0x14   : > { %p507_p3 = scmp.ne.s32.totalorder %s5096_s30, %s5092_s29  ;;  %p508_p4 = scmp.eq.s32.totalorder %s4334_s23, 1 }
  0x15   : > { %s5263_s6 = scalar_select %p489_p1, %s5100_s4, %s491_s5  }
  0x16   : > { %p5265_p5 = por %p502_p2, %p501_p0  ;;  %p5269_p6 = por %p508_p4, %p507_p3 }
  0x17   : > { %7688 = sst [smem:[#allocation10_spill]] %s5263_s6  ;;  %p4337_p7 = scmp.ge.s32.totalorder %s5104_s0, 1 }
  0x18   : > { %s7690_s26 = scalar_select %p5269_p6, 1, 0 }
  0x19   : > { %p619_p8 = scmp.lt.s32.totalorder %s5104_s0, 3 }
  0x1a   : > { %7691 = sst [smem:[#allocation11_spill]] %s7690_s26 }
  0x1b   : > { %p620_p9 = pnand %p4337_p7, %p619_p8 }
  0x1d   : > { %623 = sbr.rel (%p620_p9) target bundleno = 5340 (0x14dc), region = 104 }
  0x22   : > { %s7692_s3 = sld [smem:[#allocation14_spill]]  ;;  %p683_p10 = scmp.lt.s32.totalorder %s5248_s20, 1  ;;  %vm699_vm0 = vcmask 261120   ;;  %vm771_vm1 = vcmask 523264   ;;  %vm1111_vm2 = vcmask 130048   ;;  %vm1220_vm3 = vcmask 64512  }
  0x23   : > { %s7693_s6 = sld [smem:[#allocation16_spill]]  ;;  %s675_s26 = sand.u32 1, %s5096_s30  }
  0x24   : > { %s5292_s2 = scalar_select %p683_p10, %s5248_s20, 1 }
  0x25   : > { %s7695_s0 = sld [smem:[#allocation13_spill]]  ;;  %s4877_s1 = sshll.u32 %s5248_s20, 3 }
  0x26   : > { %7694 = sst [smem:[#allocation12_spill]] %s5292_s2  ;;  %s4339_s27 = sshll.u32 %s5292_s2, 3 }
  0x27   : > { %s7696_s23 = sld [smem:[#allocation18_spill]]  ;;  %s4235_s5 = scalar_lea.sflag [#allocation4], %s675_s26 }
  0x28   : > { %v694_v1 = vld [vmem:[%s7692_s3 + $0x18] sm:$0xff]  ;;  %v693_v2 = vld [vmem:[%s7692_s3 + $0x10] sm:$0xff]  ;;  %v692_v5 = vld [vmem:[%s7692_s3 + $0x8] sm:$0xff]  ;;  %s7698_s7 = sld [smem:[#allocation20_spill]]  ;;  %s5062_s20 = scalar_lea.hbm %s7657_s21, 16 }
  0x29   : > { %715 = vmatpush.msra.mxu0 %v694_v1  ;;  %v730_v3 = vld [vmem:[%s7693_s6 + $0x38] sm:$0xff]  ;;  %v729_v7 = vld [vmem:[%s7693_s6 + $0x30] sm:$0xff]  ;;  %v691_v8 = vld [vmem:[%s7692_s3] sm:$0xff]  ;;  %s7699_s3 = sld [smem:[#allocation19_spill]] }
  0x2a   : > { %v738_v4 = vld [vmem:[%s7693_s6 + $0x78] sm:$0xff]  ;;  %783 = vmatpush.msra.mxu1 %v730_v3  ;;  %v737_v9 = vld [vmem:[%s7693_s6 + $0x70] sm:$0xff]  ;;  %v728_v11 = vld [vmem:[%s7693_s6 + $0x28] sm:$0xff]  ;;  %s7701_s8 = sld [smem:[#allocation21_spill]] }
  0x2b   : > { %803 = vmatpush.msra.mxu2 %v738_v4  ;;  %v746_v6 = vld [vmem:[%s7693_s6 + $0xb8] sm:$0xff]  ;;  %716 = vmatpush.msra.mxu0 %v693_v2  ;;  %v745_v10 = vld [vmem:[%s7693_s6 + $0xb0] sm:$0xff]  ;;  %v736_v12 = vld [vmem:[%s7693_s6 + $0x68] sm:$0xff]  ;;  %s686_s24 = scalar_lea.vmem %s7695_s0, %s4339_s27  ;;  %s4338_s27 = sshll.u32 %s675_s26, 3 }
  0x2c   : > { %823 = vmatpush.msra.mxu3 %v746_v6  ;;  %784 = vmatpush.msra.mxu1 %v729_v7  ;;  %v744_v13 = vld [vmem:[%s7693_s6 + $0xa8] sm:$0xff]  ;;  %v727_v14 = vld [vmem:[%s7693_s6 + $0x20] sm:$0xff]  ;;  %v754_v16 = vld [vmem:[%s7693_s6 + $0xf8] sm:$0xff]  ;;  %s677_s4 = scalar_lea.vmem [#allocation3], %s4338_s27  ;;  %s4248_s0 = scalar_lea.hbm %s7657_s21, %s4877_s1 }
  0x2d   : > { %804 = vmatpush.msra.mxu2 %v737_v9  ;;  %717 = vmatpush.msra.mxu0 %v692_v5  ;;  %v690_v15 = vld [vmem:[%s686_s24] sm:$0xff]  ;;  %v726_v19 = vld [vmem:[%s7693_s6 + $0x18] sm:$0xff]  ;;  %v753_v20 = vld [vmem:[%s7693_s6 + $0xf0] sm:$0xff]  ;;  %s7697_s24 = sld [smem:[#allocation15_spill]]  ;;  %s4250_s28 = sshll.u32 %s677_s4, 4  ;;  %s4251_s28 = int_to_ptr.vmem [resolvable:$true] %s4250_s28 }
  0x2e   : > { %824 = vmatpush.msra.mxu3 %v745_v10  ;;  %785 = vmatpush.msra.mxu1 %v728_v11  ;;  %v735_v17 = vld [vmem:[%s7693_s6 + $0x60] sm:$0xff]  ;;  %v734_v21 = vld [vmem:[%s7693_s6 + $0x58] sm:$0xff]  ;;  %v725_v23 = vld [vmem:[%s7693_s6 + $0x10] sm:$0xff]  ;;  %s4252_s22 = sshll.u32 %s4248_s0, 4  ;;  %s4253_s22 = int_to_ptr.hbm [resolvable:$true] %s4252_s22 }
  0x2f   : > { %805 = vmatpush.msra.mxu2 %v736_v12  ;;  %718 = vmatpush.msra.mxu0 %v691_v8  ;;  %v743_v18 = vld [vmem:[%s7693_s6 + $0xa0] sm:$0xff]  ;;  %v742_v22 = vld [vmem:[%s7693_s6 + $0x98] sm:$0xff]  ;;  %v752_v24 = vld [vmem:[%s7693_s6 + $0xe8] sm:$0xff]  ;;  %s5056_s27 = sshra.s32 %s4253_s22, 4  ;;  %s5057_s27 = int_to_ptr.hbm [resolvable:$true] %s5056_s27 }
  0x30   : > { %825 = vmatpush.msra.mxu3 %v744_v13  ;;  %4340 = vmatmul.msk.f32.vlgmr.msra.gmra.mxu0 %vm699_vm0, %v690_v15  ;;  %v733_v25 = vld [vmem:[%s7693_s6 + $0x50] sm:$0xff]  ;;  %v724_v27 = vld [vmem:[%s7693_s6 + $0x8] sm:$0xff]  ;;  %v751_v28 = vld [vmem:[%s7693_s6 + $0xe0] sm:$0xff]  ;;  %p5063_p0 = scmp.lt.s32.totalorder %s5057_s27, %s7657_s21 }
  0x31   : > { %786 = vmatpush.msra.mxu1 %v727_v14  ;;  %843 = vmatpush.msrb.mxu0 %v754_v16  ;;  %v741_v26 = vld [vmem:[%s7693_s6 + $0x90] sm:$0xff]  ;;  %v732_v29 = vld [vmem:[%s7693_s6 + $0x48] sm:$0xff]  ;;  %v723_v31 = vld [vmem:[%s7693_s6] sm:$0xff] }
  0x32   : > { %806 = vmatpush.msra.mxu2 %v735_v17  ;;  %826 = vmatpush.msra.mxu3 %v743_v18  ;;  %v740_v30 = vld [vmem:[%s7693_s6 + $0x88] sm:$0xff]  ;;  %v750_v32 = vld [vmem:[%s7693_s6 + $0xd8] sm:$0xff]  ;;  %v731_v33 = vld [vmem:[%s7693_s6 + $0x40] sm:$0xff] }
  0x33   : > { %787 = vmatpush.msra.mxu1 %v726_v19  ;;  %844 = vmatpush.msrb.mxu0 %v753_v20  ;;  %v739_v34 = vld [vmem:[%s7693_s6 + $0x80] sm:$0xff]  ;;  %v862_v35 = vld [vmem:[%s7696_s23 + $0x38] sm:$0xff]  ;;  %v749_v36 = vld [vmem:[%s7693_s6 + $0xd0] sm:$0xff] }
  0x34   : > { %807 = vmatpush.msra.mxu2 %v734_v21  ;;  %827 = vmatpush.msra.mxu3 %v742_v22  ;;  %v870_v37 = vld [vmem:[%s7696_s23 + $0x78] sm:$0xff]  ;;  %v748_v38 = vld [vmem:[%s7693_s6 + $0xc8] sm:$0xff]  ;;  %v861_v40 = vld [vmem:[%s7696_s23 + $0x30] sm:$0xff] }
  0x35   : > { %788 = vmatpush.msra.mxu1 %v725_v23  ;;  %845 = vmatpush.msrb.mxu0 %v752_v24  ;;  %v878_v39 = vld [vmem:[%s7696_s23 + $0xb8] sm:$0xff]  ;;  %v747_v41 = vld [vmem:[%s7693_s6 + $0xc0] sm:$0xff]  ;;  %v869_v42 = vld [vmem:[%s7696_s23 + $0x70] sm:$0xff] }
  0x36   : > { %808 = vmatpush.msra.mxu2 %v733_v25  ;;  %828 = vmatpush.msra.mxu3 %v741_v26  ;;  %v877_v43 = vld [vmem:[%s7696_s23 + $0xb0] sm:$0xff]  ;;  %v886_v44 = vld [vmem:[%s7696_s23 + $0xf8] sm:$0xff]  ;;  %v860_v45 = vld [vmem:[%s7696_s23 + $0x28] sm:$0xff] }
  0x37   : > { %789 = vmatpush.msra.mxu1 %v724_v27  ;;  %846 = vmatpush.msrb.mxu0 %v751_v28  ;;  %v868_v46 = vld [vmem:[%s7696_s23 + $0x68] sm:$0xff]  ;;  %v859_v48 = vld [vmem:[%s7696_s23 + $0x20] sm:$0xff]  ;;  %v885_v50 = vld [vmem:[%s7696_s23 + $0xf0] sm:$0xff] }
  0x38   : > { %809 = vmatpush.msra.mxu2 %v732_v29  ;;  %829 = vmatpush.msra.mxu3 %v740_v30  ;;  %v876_v47 = vld [vmem:[%s7696_s23 + $0xa8] sm:$0xff]  ;;  %v867_v49 = vld [vmem:[%s7696_s23 + $0x60] sm:$0xff]  ;;  %v858_v52 = vld [vmem:[%s7696_s23 + $0x18] sm:$0xff] }
  0x39   : > { %790 = vmatpush.msra.mxu1 %v723_v31  ;;  %847 = vmatpush.msrb.mxu0 %v750_v32  ;;  %v875_v51 = vld [vmem:[%s7696_s23 + $0xa0] sm:$0xff]  ;;  %v866_v53 = vld [vmem:[%s7696_s23 + $0x58] sm:$0xff]  ;;  %v884_v54 = vld [vmem:[%s7696_s23 + $0xe8] sm:$0xff] }
  0x3a   : > { %810 = vmatpush.msra.mxu2 %v731_v33  ;;  %830 = vmatpush.msra.mxu3 %v739_v34  ;;  %v874_v55 = vld [vmem:[%s7696_s23 + $0x98] sm:$0xff]  ;;  %v857_v56 = vld [vmem:[%s7696_s23 + $0x10] sm:$0xff]  ;;  %v883_v58 = vld [vmem:[%s7696_s23 + $0xe0] sm:$0xff] }
  0x3b   : > { %911 = vmatpush.msrb.mxu1 %v862_v35  ;;  %848 = vmatpush.msrb.mxu0 %v749_v36  ;;  %v865_v57 = vld [vmem:[%s7696_s23 + $0x50] sm:$0xff]  ;;  %v882_v60 = vld [vmem:[%s7696_s23 + $0xd8] sm:$0xff]  ;;  %v856_v62 = vld [vmem:[%s7696_s23 + $0x8] sm:$0xff] }
  0x3c   : > { %931 = vmatpush.msrb.mxu2 %v870_v37  ;;  %951 = vmatpush.msrb.mxu3 %v878_v39  ;;  %v873_v59 = vld [vmem:[%s7696_s23 + $0x90] sm:$0xff]  ;;  %v864_v63 = vld [vmem:[%s7696_s23 + $0x48] sm:$0xff]  ;;  %v855_v2 = vld [vmem:[%s7696_s23] sm:$0xff] }
  0x3d   : > { %912 = vmatpush.msrb.mxu1 %v861_v40  ;;  %849 = vmatpush.msrb.mxu0 %v748_v38  ;;  %v881_v61 = vld [vmem:[%s7696_s23 + $0xd0] sm:$0xff]  ;;  %v872_v0 = vld [vmem:[%s7696_s23 + $0x88] sm:$0xff]  ;;  %v863_v3 = vld [vmem:[%s7696_s23 + $0x40] sm:$0xff] }
  0x3e   : > { %932 = vmatpush.msrb.mxu2 %v869_v42  ;;  %952 = vmatpush.msrb.mxu3 %v877_v43  ;;  %v880_v1 = vld [vmem:[%s7696_s23 + $0xc8] sm:$0xff]  ;;  %v871_v4 = vld [vmem:[%s7696_s23 + $0x80] sm:$0xff]  ;;  %v990_v9 = vld [vmem:[%s7698_s7 + $0x38] sm:$0xff] }
  0x3f   : > { %913 = vmatpush.msrb.mxu1 %v860_v45  ;;  %850 = vmatpush.msrb.mxu0 %v747_v41  ;;  %v879_v5 = vld [vmem:[%s7696_s23 + $0xc0] sm:$0xff]  ;;  %v998_v10 = vld [vmem:[%s7698_s7 + $0x78] sm:$0xff]  ;;  %v989_v13 = vld [vmem:[%s7698_s7 + $0x30] sm:$0xff] }
  0x40   : > { %933 = vmatpush.msrb.mxu2 %v868_v46  ;;  %953 = vmatpush.msrb.mxu3 %v876_v47  ;;  %v4923_v6 = vld [vmem:[%s7697_s24] ss:$0 sm:$0xff]  ;;  %v1006_v11 = vld [vmem:[%s7698_s7 + $0xb8] sm:$0xff]  ;;  %v997_v14 = vld [vmem:[%s7698_s7 + $0x70] sm:$0xff]  ;;  %s7700_s24 = sld [smem:[#allocation17_spill]] }
  0x41   : > { %971 = vmatpush.msra.mxu0 %v886_v44  ;;  %914 = vmatpush.msrb.mxu1 %v859_v48  ;;  %v1014_v12 = vld [vmem:[%s7698_s7 + $0xf8] sm:$0xff]  ;;  %v1005_v15 = vld [vmem:[%s7698_s7 + $0xb0] sm:$0xff]  ;;  %v988_v17 = vld [vmem:[%s7698_s7 + $0x28] sm:$0xff] }
  0x42   : > { %934 = vmatpush.msrb.mxu2 %v867_v49  ;;  %954 = vmatpush.msrb.mxu3 %v875_v51  ;;  %v1013_v16 = vld [vmem:[%s7698_s7 + $0xf0] sm:$0xff]  ;;  %v996_v18 = vld [vmem:[%s7698_s7 + $0x68] sm:$0xff]  ;;  %v987_v21 = vld [vmem:[%s7698_s7 + $0x20] sm:$0xff] }
  0x43   : > { %972 = vmatpush.msra.mxu0 %v885_v50  ;;  %915 = vmatpush.msrb.mxu1 %v858_v52  ;;  %v1004_v19 = vld [vmem:[%s7698_s7 + $0xa8] sm:$0xff]  ;;  %v995_v22 = vld [vmem:[%s7698_s7 + $0x60] sm:$0xff]  ;;  %v986_v25 = vld [vmem:[%s7698_s7 + $0x18] sm:$0xff] }
  0x44   : > { %935 = vmatpush.msrb.mxu2 %v866_v53  ;;  %955 = vmatpush.msrb.mxu3 %v874_v55  ;;  %v1012_v20 = vld [vmem:[%s7698_s7 + $0xe8] sm:$0xff]  ;;  %v1003_v23 = vld [vmem:[%s7698_s7 + $0xa0] sm:$0xff]  ;;  %v994_v26 = vld [vmem:[%s7698_s7 + $0x58] sm:$0xff] }
  0x45   : > { %973 = vmatpush.msra.mxu0 %v884_v54  ;;  %916 = vmatpush.msrb.mxu1 %v857_v56  ;;  %v1011_v24 = vld [vmem:[%s7698_s7 + $0xe0] sm:$0xff]  ;;  %v1002_v27 = vld [vmem:[%s7698_s7 + $0x98] sm:$0xff]  ;;  %v985_v29 = vld [vmem:[%s7698_s7 + $0x10] sm:$0xff] }
  0x46   : > { %936 = vmatpush.msrb.mxu2 %v865_v57  ;;  %956 = vmatpush.msrb.mxu3 %v873_v59  ;;  %v1010_v28 = vld [vmem:[%s7698_s7 + $0xd8] sm:$0xff]  ;;  %v993_v30 = vld [vmem:[%s7698_s7 + $0x50] sm:$0xff]  ;;  %v984_v33 = vld [vmem:[%s7698_s7 + $0x8] sm:$0xff] }
  0x47   : > { %974 = vmatpush.msra.mxu0 %v883_v58  ;;  %917 = vmatpush.msrb.mxu1 %v856_v62  ;;  %v1001_v31 = vld [vmem:[%s7698_s7 + $0x90] sm:$0xff]  ;;  %v992_v34 = vld [vmem:[%s7698_s7 + $0x48] sm:$0xff]  ;;  %v983_v37 = vld [vmem:[%s7698_s7] sm:$0xff] }
  0x48   : > { %937 = vmatpush.msrb.mxu2 %v864_v63  ;;  %957 = vmatpush.msrb.mxu3 %v872_v0  ;;  %v1009_v32 = vld [vmem:[%s7698_s7 + $0xd0] sm:$0xff]  ;;  %v1000_v35 = vld [vmem:[%s7698_s7 + $0x88] sm:$0xff]  ;;  %v991_v38 = vld [vmem:[%s7698_s7 + $0x40] sm:$0xff] }
  0x49   : > { %975 = vmatpush.msra.mxu0 %v882_v60  ;;  %918 = vmatpush.msrb.mxu1 %v855_v2  ;;  %v1008_v36 = vld [vmem:[%s7698_s7 + $0xc8] sm:$0xff]  ;;  %v999_v39 = vld [vmem:[%s7698_s7 + $0x80] sm:$0xff] }
  0x4a   : > { %938 = vmatpush.msrb.mxu2 %v863_v3  ;;  %958 = vmatpush.msrb.mxu3 %v871_v4  ;;  %v1007_v40 = vld [vmem:[%s7698_s7 + $0xc0] sm:$0xff] }
  0x4b   : > { %976 = vmatpush.msra.mxu0 %v881_v61  ;;  %v4928_v45 = vld [vmem:[%s7699_s3] ss:$0 sm:$0xff]  ;;  %v4929_v46 = vld [vmem:[%s7699_s3 + $0x3] ss:$0 sm:$0xff]  ;;  %v4930_v53 = vld [vmem:[%s7699_s3 + $0x1] ss:$0 sm:$0xff] }
  0x4c   : > { %v4924_v47 = vld [vmem:[%s7700_s24] ss:$0 sm:$0xff]  ;;  %v4925_v49 = vld [vmem:[%s7700_s24 + $0x3] ss:$0 sm:$0xff]  ;;  %v4931_v55 = vld [vmem:[%s7699_s3 + $0x2] ss:$0 sm:$0xff] }
  0x4d   : > { %977 = vmatpush.msra.mxu0 %v880_v1  ;;  %v4927_v58 = vld [vmem:[%s7700_s24 + $0x2] ss:$0 sm:$0xff]  ;;  %v4932_v61 = vld [vmem:[%s7701_s8] ss:$0 sm:$0xff]  ;;  %v4926_v62 = vld [vmem:[%s7700_s24 + $0x1] ss:$0 sm:$0xff] }
  0x4e   : > { %v4933_v0 = vld [vmem:[%s7701_s8 + $0x3] ss:$0 sm:$0xff] }
  0x4f   : > { %978 = vmatpush.msra.mxu0 %v879_v5 }
  0xad   : > { %v720_v7 = vpop.f32.mrf.mxu0 }
  0xae   : > { %v5490_v8 = vadd.f32 %v4923_v6, %v720_v7  ;;  %v4934_v7 = vld [vmem:[%s7701_s8 + $0x1] ss:$0 sm:$0xff] }
  0xb0   : > { %4341 = vmatmul.msk.f32.vlgmr.msra.gmra.mxu1 %vm771_vm1, %v5490_v8  ;;  %4342 = vmatmul.msk.f32.vlgmr.msra.gmra.mxu2 %vm771_vm1, %v5490_v8 }
  0xb1   : > { %4343 = vmatmul.msk.f32.vlgmr.msra.gmra.mxu3 %vm771_vm1, %v5490_v8  ;;  %4344 = vmatmul.msk.f32.vlgmr.msrb.gmra.mxu0 %vm771_vm1, %v5490_v8 }
  0xb2   : > { %1039 = vmatpush.msra.mxu1 %v990_v9  ;;  %1059 = vmatpush.msra.mxu2 %v998_v10  ;;  %v4935_v9 = vld [vmem:[%s7701_s8 + $0x2] ss:$0 sm:$0xff] }
  0xb3   : > { %1079 = vmatpush.msra.mxu3 %v1006_v11  ;;  %1099 = vmatpush.msrb.mxu0 %v1014_v12 }
  0xb4   : > { %1040 = vmatpush.msra.mxu1 %v989_v13  ;;  %1060 = vmatpush.msra.mxu2 %v997_v14 }
  0xb5   : > { %1080 = vmatpush.msra.mxu3 %v1005_v15  ;;  %1100 = vmatpush.msrb.mxu0 %v1013_v16 }
  0xb6   : > { %1041 = vmatpush.msra.mxu1 %v988_v17  ;;  %1061 = vmatpush.msra.mxu2 %v996_v18 }
  0xb7   : > { %1081 = vmatpush.msra.mxu3 %v1004_v19  ;;  %1101 = vmatpush.msrb.mxu0 %v1012_v20 }
  0xb8   : > { %1042 = vmatpush.msra.mxu1 %v987_v21  ;;  %1062 = vmatpush.msra.mxu2 %v995_v22 }
  0xb9   : > { %1082 = vmatpush.msra.mxu3 %v1003_v23  ;;  %1102 = vmatpush.msrb.mxu0 %v1011_v24 }
  0xba   : > { %4345 = vmatmul.msk.f32.vlgmr.msrb.gmra.mxu1 %vm771_vm1, %v5490_v8  ;;  %4346 = vmatmul.msk.f32.vlgmr.msrb.gmra.mxu2 %vm771_vm1, %v5490_v8 }
  0xbb   : > { %4347 = vmatmul.msk.f32.vlgmr.msrb.gmra.mxu3 %vm771_vm1, %v5490_v8  ;;  %4348 = vmatmul.msk.f32.vlgmr.msra.gmra.mxu0 %vm771_vm1, %v5490_v8 }
  0xbc   : > { %1043 = vmatpush.msra.mxu1 %v986_v25  ;;  %1063 = vmatpush.msra.mxu2 %v994_v26 }
  0xbd   : > { %1083 = vmatpush.msra.mxu3 %v1002_v27  ;;  %1103 = vmatpush.msrb.mxu0 %v1010_v28 }
  0xbe   : > { %1044 = vmatpush.msra.mxu1 %v985_v29  ;;  %1064 = vmatpush.msra.mxu2 %v993_v30 }
  0xbf   : > { %1084 = vmatpush.msra.mxu3 %v1001_v31  ;;  %1104 = vmatpush.msrb.mxu0 %v1009_v32 }
  0xc0   : > { %1045 = vmatpush.msra.mxu1 %v984_v33  ;;  %1065 = vmatpush.msra.mxu2 %v992_v34 }
  0xc1   : > { %1085 = vmatpush.msra.mxu3 %v1000_v35  ;;  %1105 = vmatpush.msrb.mxu0 %v1008_v36 }
  0xc2   : > { %1046 = vmatpush.msra.mxu1 %v983_v37  ;;  %1066 = vmatpush.msra.mxu2 %v991_v38 }
  0xc3   : > { %1086 = vmatpush.msra.mxu3 %v999_v39  ;;  %1106 = vmatpush.msrb.mxu0 %v1007_v40 }
  0xc4   : > { %4349 = vmatmul.msk.f32.vlgmr.msra.gmra.mxu1 %vm771_vm1, %v5490_v8  ;;  %4350 = vmatmul.msk.f32.vlgmr.msra.gmra.mxu2 %vm771_vm1, %v5490_v8 }
  0xc5   : > { %4351 = vmatmul.msk.f32.vlgmr.msra.gmra.mxu3 %vm771_vm1, %v5490_v8  ;;  %4352 = vmatmul.msk.f32.vlgmr.msrb.gmra.mxu0 %vm771_vm1, %v5490_v8 }
 0x12d   : > { %v792_v41 = vpop.f32.mrf.mxu1 }
 0x12e   : > { %v852_v42 = vpop.f32.mrf.mxu0  ;;  %v793_v54 = vadd.f32 %v4924_v47, %v792_v41  ;;  %v1410_v47 = vld [vmem:[%s7645_s9 + $0x8] sm:$0xff] }
 0x12f   : > { %v853_v56 = vadd.f32 %v4925_v49, %v852_v42 }
 0x133   : > { %v812_v43 = vpop.f32.mrf.mxu2 }
 0x134   : > { %v832_v44 = vpop.f32.mrf.mxu3  ;;  %v813_v5 = vadd.f32 %v4926_v62, %v812_v43 }
 0x135   : > { %v833_v2 = vadd.f32 %v4927_v58, %v832_v44 }
 0x137   : > { %v920_v48 = vpop.f32.mrf.mxu1 }
 0x138   : > { %v921_v50 = vadd.f32 %v4928_v45, %v920_v48  ;;  %v980_v51 = vpop.f32.mrf.mxu0 }
 0x139   : > { %v981_v52 = vadd.f32 %v4929_v46, %v980_v51 }
 0x13a   : > { %4353 = vmatpush.xpose.msk.msrb.mxu2 %vm1111_vm2, %v921_v50 }
 0x13b   : > { %4359 = vmatpush.xpose.msk.msra.mxu0 %vm1111_vm2, %v981_v52 }
 0x13d   : > { %v940_v57 = vpop.f32.mrf.mxu2  ;;  %4354 = vmatmul.msk.f32.vlgmr.msrb.gmra.mxu2 %vm1111_vm2, %v793_v54 }
 0x13e   : > { %v941_v59 = vadd.f32 %v4930_v53, %v940_v57  ;;  %v960_v60 = vpop.f32.mrf.mxu3  ;;  %4360 = vmatmul.msk.f32.vlgmr.msra.gmra.mxu0 %vm1111_vm2, %v853_v56 }
 0x13f   : > { %v961_v63 = vadd.f32 %v4931_v55, %v960_v60 }
 0x140   : > { %4355 = vmatpush.xpose.msk.msra.mxu2 %vm1111_vm2, %v941_v59 }
 0x141   : > { %v1048_v1 = vpop.f32.mrf.mxu1  ;;  %4357 = vmatpush.xpose.msk.msrb.mxu3 %vm1111_vm2, %v961_v63 }
 0x142   : > { %v1049_v3 = vadd.f32 %v4932_v61, %v1048_v1  ;;  %v1108_v4 = vpop.f32.mrf.mxu0 }
 0x143   : > { %v1109_v6 = vadd.f32 %v4933_v0, %v1108_v4 }
 0x144   : > { %1335 = vmatpush.msrb.mxu1 %v1049_v3  ;;  %4358 = vmatmul.msk.f32.vlgmr.msrb.gmra.mxu3 %vm1111_vm2, %v833_v2 }
 0x145   : > { %1404 = vmatpush.msrb.mxu0 %v1109_v6  ;;  %4356 = vmatmul.msk.f32.vlgmr.msra.gmra.mxu2 %vm1111_vm2, %v813_v5 }
 0x146   : > { %1434 = vmatpush.msra.mxu1 %v1410_v47 }
 0x147   : > { %v1068_v10 = vpop.f32.mrf.mxu2 }
 0x148   : > { %v1069_v11 = vadd.f32 %v4934_v7, %v1068_v10  ;;  %v1088_v12 = vpop.f32.mrf.mxu3 }
 0x149   : > { %v1089_v13 = vadd.f32 %v4935_v9, %v1088_v12 }
 0x14a   : > { %1358 = vmatpush.msrb.mxu2 %v1069_v11 }
 0x14b   : > { %1381 = vmatpush.msra.mxu3 %v1089_v13 }
 0x1bb   : > { %v1213_v17 = vpop.f32.mrf.mxu0 }
 0x1bc   : > { %v1219_v18 = vmul.f32 0.25, %v1213_v17 }
 0x1be   : > { %v1230_v21 = vsel %vm1220_vm3, %v1219_v18, -inf }
 0x1c0   : > { %v1135_v14 = vpop.f32.mrf.mxu2 }
 0x1c1   : > { %v1216_v15 = vmul.f32 0.25, %v1135_v14 }
 0x1c3   : > { %v1221_v16 = vsel %vm1220_vm3, %v1216_v15, -inf }
 0x1c4   : > { %1222 = vmax.xlane.f32.xlu1 %v1221_v16 }
 0x1c7   : > { %v1187_v23 = vpop.f32.mrf.mxu3 }
 0x1c8   : > { %v1161_v19 = vpop.f32.mrf.mxu2  ;;  %v1218_v24 = vmul.f32 0.25, %v1187_v23 }
 0x1c9   : > { %v1217_v20 = vmul.f32 0.25, %v1161_v19 }
 0x1ca   : > { %v1227_v25 = vsel %vm1220_vm3, %v1218_v24, -inf }
 0x1cb   : > { %v1224_v22 = vsel %vm1220_vm3, %v1217_v20, -inf }
 0x1cc   : > { %1231 = vmax.xlane.f32.xlu1 %v1230_v21  ;;  %1225 = vmax.xlane.f32.xlu0 %v1224_v22 }
 0x1d4   : > { %1228 = vmax.xlane.f32.xlu0 %v1227_v25 }
 0x237   : > { %v1223_v26 = vpop.xlane.xlu1 %1222 }
 0x238   : > { %v1233_v27 = vsub.f32 %v1216_v15, %v1223_v26 }
 0x23a   : > { %v1237_v28 = vmul.f32 1.442695, %v1233_v27 }
 0x23c   : > { %4978 = vpow2.f32 %v1237_v28 }
 0x23f   : > { %v1232_v29 = vpop.xlane.xlu1 %1231  ;;  %v1226_v30 = vpop.xlane.xlu0 %1225 }
 0x240   : > { %v1236_v31 = vsub.f32 %v1219_v18, %v1232_v29  ;;  %v1234_v32 = vsub.f32 %v1217_v20, %v1226_v30 }
 0x242   : > { %v4979_v33 = vpop.eup %4978  ;;  %v1243_v34 = vmul.f32 1.442695, %v1236_v31  ;;  %v1239_v35 = vmul.f32 1.442695, %v1234_v32  ;;  %v1409_v32 = vld [vmem:[%s7645_s9] sm:$0xff] }
 0x243   : > { %v1245_v36 = vsel %vm1220_vm3, %v4979_v33, 0.0  ;;  %1435 = vmatpush.msra.mxu1 %v1409_v32  ;;  %v1567_v32 = vld [vmem:[%s7649_s13 + $0x30] sm:$0xff] }
 0x244   : > { %4980 = vpow2.f32 %v1243_v34  ;;  %1246 = vadd.xlane.f32.xlu0 %v1245_v36  ;;  %v1415_v34 = vld [vmem:[%s7645_s9 + $0x30] sm:$0xff] }
 0x245   : > { %4982 = vpow2.f32 %v1239_v35  ;;  %v1412_v35 = vld [vmem:[%s7645_s9 + $0x18] sm:$0xff]  ;;  %v1411_v36 = vld [vmem:[%s7645_s9 + $0x10] sm:$0xff] }
 0x246   : > { %1457 = vmatpush.msra.mxu2 %v1412_v35  ;;  %v1562_v35 = vld [vmem:[%s7649_s13 + $0x8] sm:$0xff] }
 0x247   : > { %v1229_v37 = vpop.xlane.xlu0 %1228 }
 0x248   : > { %v1235_v38 = vsub.f32 %v1218_v24, %v1229_v37  ;;  %1458 = vmatpush.msra.mxu2 %v1411_v36  ;;  %v1414_v37 = vld [vmem:[%s7645_s9 + $0x28] sm:$0xff]  ;;  %v1563_v36 = vld [vmem:[%s7649_s13 + $0x10] sm:$0xff] }
 0x249   : > { %1480 = vmatpush.msrb.mxu3 %v1414_v37  ;;  %v1564_v37 = vld [vmem:[%s7649_s13 + $0x18] sm:$0xff] }
 0x24a   : > { %v5661_v39 = vpop.eup %4980  ;;  %v1241_v40 = vmul.f32 1.442695, %v1235_v38  ;;  %v1413_v38 = vld [vmem:[%s7645_s9 + $0x20] sm:$0xff] }
 0x24b   : > { %v5663_v41 = vpop.eup %4982  ;;  %v1254_v42 = vsel %vm1220_vm3, %v5661_v39, 0.0  ;;  %1481 = vmatpush.msrb.mxu3 %v1413_v38  ;;  %v1705_v38 = vld [vmem:[%s7651_s15 + $0x78] sm:$0xff] }
 0x24c   : > { %4984 = vpow2.f32 %v1241_v40  ;;  %1255 = vadd.xlane.f32.xlu1 %v1254_v42  ;;  %v1248_v43 = vsel %vm1220_vm3, %v5663_v41, 0.0 }
 0x24d   : > { %1249 = vadd.xlane.f32.xlu2 %v1248_v43 }
 0x252   : > { %v5669_v44 = vpop.eup %4984 }
 0x253   : > { %v1251_v45 = vsel %vm1220_vm3, %v5669_v44, 0.0 }
 0x255   : > { %1252 = vadd.xlane.f32.xlu2 %v1251_v45 }
 0x2b7   : > { %v1247_v46 = vpop.xlane.xlu0 %1246 }
 0x2b8   : > { %4986 = vrcp.f32 %v1247_v46  ;;  %v1268_v53 = vand.u32 2147483648, %v1247_v46  ;;  %v1266_v55 = vand.u32 2147483647, %v1247_v46  ;;  %vm1262_vm5 = vweird.f32 %v1247_v46 }
 0x2ba   : > { %v1269_v58 = vor.u32 1.1754944e-38, %v1268_v53  ;;  %vm1267_vm7 = vcmp.eq.f32.partialorder %v1266_v55, 8.507059e+37 }
 0x2be   : > { %v4987_v48 = vpop.eup %4986 }
 0x2bf   : > { %v1258_v49 = vmul.f32 %v4987_v48, %v1247_v46  ;;  %v1256_v50 = vpop.xlane.xlu1 %1255  ;;  %vm1263_vm4 = vweird.f32 %v4987_v48 }
 0x2c0   : > { %4988 = vrcp.f32 %v1256_v50  ;;  %v1250_v51 = vpop.xlane.xlu2 %1249  ;;  %vm1264_vm6 = vmor %vm1262_vm5, %vm1263_vm4  ;;  %v1313_v2 = vand.u32 2147483648, %v1256_v50  ;;  %v1311_v6 = vand.u32 2147483647, %v1256_v50  ;;  %vm1307_vm10 = vweird.f32 %v1256_v50 }
 0x2c1   : > { %v1259_v52 = vsub.f32 1.0, %v1258_v49  ;;  %4990 = vrcp.f32 %v1250_v51  ;;  %v1283_v7 = vand.u32 2147483648, %v1250_v51  ;;  %v1281_v10 = vand.u32 2147483647, %v1250_v51 }
 0x2c2   : > { %v1314_v12 = vor.u32 1.1754944e-38, %v1313_v2  ;;  %vm1277_vm12 = vweird.f32 %v1250_v51  ;;  %vm1312_vm13 = vcmp.eq.f32.partialorder %v1311_v6, 8.507059e+37  ;;  %v1590_v6 = vld [vmem:[%s7649_s13 + $0xe8] sm:$0xff] }
 0x2c3   : > { %v1260_v54 = vmul.f32 %v4987_v48, %v1259_v52  ;;  %v1284_v16 = vor.u32 1.1754944e-38, %v1283_v7  ;;  %vm1282_vm15 = vcmp.eq.f32.partialorder %v1281_v10, 8.507059e+37  ;;  %v4936_v52 = vld [vmem:[%s7646_s10] ss:$0 sm:$0xff]  ;;  %v1591_v7 = vld [vmem:[%s7649_s13 + $0xf0] sm:$0xff] }
 0x2c4   : > { %v1585_v10 = vld [vmem:[%s7649_s13 + $0xc0] sm:$0xff] }
 0x2c5   : > { %v1261_v56 = vadd.f32 %v4987_v48, %v1260_v54 }
 0x2c6   : > { %v4989_v57 = vpop.eup %4988 }
 0x2c7   : > { %v4991_v59 = vpop.eup %4990  ;;  %v1265_v60 = vsel %vm1264_vm6, %v4987_v48, %v1261_v56  ;;  %v1303_v61 = vmul.f32 %v4989_v57, %v1256_v50  ;;  %vm1308_vm8 = vweird.f32 %v4989_v57 }
 0x2c8   : > { %v1270_v62 = vsel %vm1267_vm7, %v1269_v58, %v1265_v60  ;;  %v1273_v63 = vmul.f32 %v4991_v59, %v1250_v51  ;;  %v1253_v0 = vpop.xlane.xlu2 %1252  ;;  %vm1278_vm9 = vweird.f32 %v4991_v59  ;;  %vm1309_vm11 = vmor %vm1307_vm10, %vm1308_vm8  ;;  %v5106_v58 = vmov 64.0  }
 0x2c9   : > { %v1304_v1 = vsub.f32 1.0, %v1303_v61  ;;  %4992 = vrcp.f32 %v1253_v0  ;;  %v1271_v4 = vmul.f32 %v4979_v33, %v1270_v62  ;;  %vm1279_vm14 = vmor %vm1277_vm12, %vm1278_vm9  ;;  %v1298_v24 = vand.u32 2147483648, %v1253_v0  ;;  %v1416_v33 = vld [vmem:[%s7645_s9 + $0x38] sm:$0xff] }
 0x2ca   : > { %v1274_v3 = vsub.f32 1.0, %v1273_v63  ;;  %v1296_v26 = vand.u32 2147483647, %v1253_v0  ;;  %vm1292_vm4 = vweird.f32 %v1253_v0  ;;  %1503 = vmatpush.msra.mxu0 %v1416_v33  ;;  %4994 = vrcp.f32 %v5106_v58  ;;  %v1568_v33 = vld [vmem:[%s7649_s13 + $0x38] sm:$0xff] }
 0x2cb   : > { %v1305_v5 = vmul.f32 %v4989_v57, %v1304_v1  ;;  %4361 = vmatmul.msk.f32.vlgmr.msrb.gmra.mxu1 %vm1220_vm3, %v1271_v4  ;;  %v1299_v28 = vor.u32 1.1754944e-38, %v1298_v24  ;;  %v1575_v24 = vld [vmem:[%s7649_s13 + $0x70] sm:$0xff]  ;;  %v1749_v58 = vld [vmem:[%s7651_s15 + $0x1d8] sm:$0xff] }
 0x2cc   : > { %v1275_v9 = vmul.f32 %v4991_v59, %v1274_v3  ;;  %vm1297_vm6 = vcmp.eq.f32.partialorder %v1296_v26, 8.507059e+37  ;;  %1504 = vmatpush.msra.mxu0 %v1415_v34  ;;  %v1569_v26 = vld [vmem:[%s7649_s13 + $0x40] sm:$0xff] }
 0x2cd   : > { %v1306_v11 = vadd.f32 %v4989_v57, %v1305_v5  ;;  %v1589_v5 = vld [vmem:[%s7649_s13 + $0xe0] sm:$0xff] }
 0x2ce   : > { %v1276_v13 = vadd.f32 %v4991_v59, %v1275_v9  ;;  %1614 = vmatpush.msrb.mxu1 %v1589_v5  ;;  %v1592_v9 = vld [vmem:[%s7649_s13 + $0xf8] sm:$0xff]  ;;  %v1561_v34 = vld [vmem:[%s7649_s13] sm:$0xff]  ;;  %v1731_v5 = vld [vmem:[%s7651_s15 + $0x148] sm:$0xff] }
 0x2cf   : > { %v4993_v14 = vpop.eup %4992  ;;  %v1310_v15 = vsel %vm1309_vm11, %v4989_v57, %v1306_v11  ;;  %v1586_v11 = vld [vmem:[%s7649_s13 + $0xc8] sm:$0xff] }
 0x2d0   : > { %v1315_v17 = vsel %vm1312_vm13, %v1314_v12, %v1310_v15  ;;  %v1280_v18 = vsel %vm1279_vm14, %v4991_v59, %v1276_v13  ;;  %v1288_v19 = vmul.f32 %v4993_v14, %v1253_v0  ;;  %vm1293_vm0 = vweird.f32 %v4993_v14  ;;  %v4995_v59 = vpop.eup %4994  ;;  %v1587_v12 = vld [vmem:[%s7649_s13 + $0xd0] sm:$0xff]  ;;  %1615 = vmatpush.msrb.mxu1 %v1585_v10  ;;  %v1588_v13 = vld [vmem:[%s7649_s13 + $0xd8] sm:$0xff]  ;;  %v1582_v15 = vld [vmem:[%s7649_s13 + $0xa8] sm:$0xff] }
 0x2d1   : > { %v1285_v20 = vsel %vm1282_vm15, %v1284_v16, %v1280_v18  ;;  %v1316_v21 = vmul.f32 %v5661_v39, %v1315_v17  ;;  %vm1294_vm5 = vmor %vm1292_vm4, %vm1293_vm0  ;;  %v1528_v60 = vmul.f32 64.0, %v4995_v59  ;;  %vm1532_vm7 = vweird.f32 %v4995_v59  ;;  %v1583_v16 = vld [vmem:[%s7649_s13 + $0xb0] sm:$0xff]  ;;  %v1584_v17 = vld [vmem:[%s7649_s13 + $0xb8] sm:$0xff] }
 0x2d2   : > { %v1289_v22 = vsub.f32 1.0, %v1288_v19  ;;  %v1286_v23 = vmul.f32 %v5663_v41, %v1285_v20  ;;  %v1577_v18 = vld [vmem:[%s7649_s13 + $0x80] sm:$0xff]  ;;  %v1578_v19 = vld [vmem:[%s7649_s13 + $0x88] sm:$0xff]  ;;  %v1579_v20 = vld [vmem:[%s7649_s13 + $0x90] sm:$0xff] }
 0x2d3   : > { %4364 = vmatmul.msk.f32.vlgmr.msrb.gmra.mxu0 %vm1220_vm3, %v1316_v21  ;;  %v1529_v61 = vsub.f32 1.0, %v1528_v60  ;;  %v1580_v21 = vld [vmem:[%s7649_s13 + $0x98] sm:$0xff] }
 0x2d4   : > { %v1290_v25 = vmul.f32 %v4993_v14, %v1289_v22  ;;  %4362 = vmatmul.msk.f32.vlgmr.msrb.gmra.mxu2 %vm1220_vm3, %v1286_v23  ;;  %1674 = vmatpush.msrb.mxu0 %v1592_v9  ;;  %v1573_v22 = vld [vmem:[%s7649_s13 + $0x60] sm:$0xff]  ;;  %v1574_v23 = vld [vmem:[%s7649_s13 + $0x68] sm:$0xff]  ;;  %v1733_v60 = vld [vmem:[%s7651_s15 + $0x158] sm:$0xff] }
 0x2d5   : > { %v1530_v62 = vmul.f32 %v4995_v59, %v1529_v61  ;;  %1634 = vmatpush.msrb.mxu2 %v1590_v6  ;;  %v1700_v61 = vld [vmem:[%s7651_s15 + $0x50] sm:$0xff]  ;;  %v1746_v9 = vld [vmem:[%s7651_s15 + $0x1c0] sm:$0xff] }
 0x2d6   : > { %v1291_v27 = vadd.f32 %v4993_v14, %v1290_v25  ;;  %1675 = vmatpush.msrb.mxu0 %v1588_v13  ;;  %v1576_v25 = vld [vmem:[%s7649_s13 + $0x78] sm:$0xff] }
 0x2d7   : > { %v1531_v63 = vadd.f32 %v4995_v59, %v1530_v62  ;;  %1635 = vmatpush.msrb.mxu2 %v1586_v11  ;;  %v1748_v62 = vld [vmem:[%s7651_s15 + $0x1d0] sm:$0xff]  ;;  %v1714_v11 = vld [vmem:[%s7651_s15 + $0xc0] sm:$0xff]  ;;  %v1697_v13 = vld [vmem:[%s7651_s15 + $0x38] sm:$0xff] }
 0x2d8   : > { %v1295_v29 = vsel %vm1294_vm5, %v4993_v14, %v1291_v27  ;;  %v1581_v14 = vld [vmem:[%s7649_s13 + $0xa0] sm:$0xff]  ;;  %1676 = vmatpush.msrb.mxu0 %v1584_v17  ;;  %v1570_v27 = vld [vmem:[%s7649_s13 + $0x48] sm:$0xff]  ;;  %v1729_v17 = vld [vmem:[%s7651_s15 + $0x138] sm:$0xff] }
 0x2d9   : > { %v1300_v30 = vsel %vm1297_vm6, %v1299_v28, %v1295_v29  ;;  %v5717_v0 = vsel %vm1532_vm7, %v4995_v59, %v1531_v63  ;;  %1616 = vmatpush.msrb.mxu1 %v1581_v14  ;;  %1636 = vmatpush.msrb.mxu2 %v1582_v15  ;;  %v1571_v28 = vld [vmem:[%s7649_s13 + $0x50] sm:$0xff]  ;;  %v1572_v29 = vld [vmem:[%s7649_s13 + $0x58] sm:$0xff] }
 0x2da   : > { %v1301_v31 = vmul.f32 %v5669_v44, %v1300_v30  ;;  %1677 = vmatpush.msrb.mxu0 %v1580_v21  ;;  %v1565_v30 = vld [vmem:[%s7649_s13 + $0x20] sm:$0xff]  ;;  %v1717_v59 = vld [vmem:[%s7651_s15 + $0xd8] sm:$0xff]  ;;  %v1716_v63 = vld [vmem:[%s7651_s15 + $0xd0] sm:$0xff] }
 0x2db   : > { %1617 = vmatpush.msrb.mxu1 %v1577_v18  ;;  %1637 = vmatpush.msrb.mxu2 %v1578_v19  ;;  %v1745_v14 = vld [vmem:[%s7651_s15 + $0x1b8] sm:$0xff]  ;;  %v1696_v18 = vld [vmem:[%s7651_s15 + $0x30] sm:$0xff] }
 0x2dc   : > { %4363 = vmatmul.msk.f32.vlgmr.msra.gmra.mxu3 %vm1220_vm3, %v1301_v31  ;;  %1678 = vmatpush.msrb.mxu0 %v1576_v25  ;;  %v1566_v31 = vld [vmem:[%s7649_s13 + $0x28] sm:$0xff]  ;;  %v1744_v19 = vld [vmem:[%s7651_s15 + $0x1b0] sm:$0xff] }
 0x2dd   : > { %1654 = vmatpush.msra.mxu3 %v1591_v7  ;;  %1618 = vmatpush.msrb.mxu1 %v1573_v22  ;;  %v1698_v7 = vld [vmem:[%s7651_s15 + $0x40] sm:$0xff]  ;;  %v1712_v21 = vld [vmem:[%s7651_s15 + $0xb0] sm:$0xff] }
 0x2de   : > { %1638 = vmatpush.msrb.mxu2 %v1574_v23  ;;  %1679 = vmatpush.msrb.mxu0 %v1572_v29  ;;  %v1728_v22 = vld [vmem:[%s7651_s15 + $0x130] sm:$0xff]  ;;  %v1695_v23 = vld [vmem:[%s7651_s15 + $0x28] sm:$0xff] }
 0x2df   : > { %1655 = vmatpush.msra.mxu3 %v1587_v12  ;;  %1619 = vmatpush.msrb.mxu1 %v1569_v26  ;;  %v1730_v12 = vld [vmem:[%s7651_s15 + $0x140] sm:$0xff] }
 0x2e0   : > { %1639 = vmatpush.msrb.mxu2 %v1570_v27  ;;  %1680 = vmatpush.msrb.mxu0 %v1568_v33  ;;  %v1694_v26 = vld [vmem:[%s7651_s15 + $0x20] sm:$0xff] }
 0x2e1   : > { %1656 = vmatpush.msra.mxu3 %v1583_v16  ;;  %1620 = vmatpush.msrb.mxu1 %v1565_v30  ;;  %v1713_v16 = vld [vmem:[%s7651_s15 + $0xb8] sm:$0xff]  ;;  %v1742_v27 = vld [vmem:[%s7651_s15 + $0x1a0] sm:$0xff] }
 0x2e2   : > { %1640 = vmatpush.msrb.mxu2 %v1566_v31  ;;  %1681 = vmatpush.msrb.mxu0 %v1564_v37  ;;  %v1693_v30 = vld [vmem:[%s7651_s15 + $0x18] sm:$0xff]  ;;  %v1711_v37 = vld [vmem:[%s7651_s15 + $0xa8] sm:$0xff] }
 0x2e3   : > { %1657 = vmatpush.msra.mxu3 %v1579_v20  ;;  %1621 = vmatpush.msrb.mxu1 %v1561_v34  ;;  %v1741_v31 = vld [vmem:[%s7651_s15 + $0x198] sm:$0xff]  ;;  %v4938_v34 = vld [vmem:[%s7648_s12] ss:$0 sm:$0xff] }
 0x2e4   : > { %1641 = vmatpush.msrb.mxu2 %v1562_v35 }
 0x2e5   : > { %1658 = vmatpush.msra.mxu3 %v1575_v24  ;;  %v1743_v24 = vld [vmem:[%s7651_s15 + $0x1a8] sm:$0xff] }
 0x2e7   : > { %1659 = vmatpush.msra.mxu3 %v1571_v28  ;;  %v4937_v28 = vld [vmem:[%s7647_s11] ss:$0 sm:$0xff] }
 0x2e9   : > { %1660 = vmatpush.msra.mxu3 %v1567_v32 }
 0x2eb   : > { %1661 = vmatpush.msra.mxu3 %v1563_v36 }
 0x348   : > { %v1337_v39 = vpop.f32.mrf.mxu1 }
 0x349   : > { %4365 = vmatmul.msk.f32.vlgmr.msra.gmra.mxu1 %vm1111_vm2, %v1337_v39  ;;  %v1753_v39 = vld [vmem:[%s7651_s15 + $0x1f8] sm:$0xff] }
 0x34a   : > { %1758 = vmatpush.msra.mxu1 %v1705_v38  ;;  %v1727_v38 = vld [vmem:[%s7651_s15 + $0x128] sm:$0xff] }
 0x350   : > { %v1406_v40 = vpop.f32.mrf.mxu0 }
 0x351   : > { %4368 = vmatmul.msk.f32.vlgmr.msra.gmra.mxu0 %vm1111_vm2, %v1406_v40  ;;  %v1704_v40 = vld [vmem:[%s7651_s15 + $0x70] sm:$0xff] }
 0x352   : > { %1818 = vmatpush.msra.mxu0 %v1753_v39  ;;  %1759 = vmatpush.msra.mxu1 %v1704_v40  ;;  %v1740_v39 = vld [vmem:[%s7651_s15 + $0x190] sm:$0xff]  ;;  %v1691_v40 = vld [vmem:[%s7651_s15 + $0x8] sm:$0xff] }
 0x357   : > { %v1360_v41 = vpop.f32.mrf.mxu2 }
 0x358   : > { %4366 = vmatmul.msk.f32.vlgmr.msra.gmra.mxu2 %vm1111_vm2, %v1360_v41  ;;  %v1752_v41 = vld [vmem:[%s7651_s15 + $0x1f0] sm:$0xff] }
 0x359   : > { %1819 = vmatpush.msra.mxu0 %v1752_v41  ;;  %v1710_v41 = vld [vmem:[%s7651_s15 + $0xa0] sm:$0xff] }
 0x35f   : > { %v1383_v42 = vpop.f32.mrf.mxu3 }
 0x360   : > { %4367 = vmatmul.msk.f32.vlgmr.msrb.gmra.mxu3 %vm1111_vm2, %v1383_v42 }
 0x3c6   : > { %v1437_v44 = vpop.f32.mrf.mxu1 }
 0x3c7   : > { %v1509_v46 = vsel %vm771_vm1, %v1437_v44, 0.0  ;;  %v1737_v44 = vld [vmem:[%s7651_s15 + $0x178] sm:$0xff] }
 0x3c8   : > { %1798 = vmatpush.msrb.mxu3 %v1737_v44  ;;  %v1690_v44 = vld [vmem:[%s7651_s15] sm:$0xff] }
 0x3ce   : > { %v1506_v47 = vpop.f32.mrf.mxu0 }
 0x3cf   : > { %v1514_v53 = vsel %vm771_vm1, %v1506_v47, 0.0  ;;  %v1751_v47 = vld [vmem:[%s7651_s15 + $0x1e8] sm:$0xff] }
 0x3d0   : > { %1820 = vmatpush.msra.mxu0 %v1751_v47  ;;  %v1738_v47 = vld [vmem:[%s7651_s15 + $0x180] sm:$0xff] }
 0x3db   : > { %v1460_v43 = vpop.f32.mrf.mxu2 }
 0x3dc   : > { %v1510_v45 = vsel %vm771_vm1, %v1460_v43, 0.0  ;;  %v1721_v43 = vld [vmem:[%s7651_s15 + $0xf8] sm:$0xff] }
 0x3dd   : > { %v1511_v48 = vadd.f32 %v1510_v45, %v1509_v46  ;;  %v1703_v46 = vld [vmem:[%s7651_s15 + $0x68] sm:$0xff]  ;;  %1778 = vmatpush.msra.mxu2 %v1721_v43 }
 0x3de   : > { %1760 = vmatpush.msra.mxu1 %v1703_v46  ;;  %v1739_v43 = vld [vmem:[%s7651_s15 + $0x188] sm:$0xff]  ;;  %v1725_v46 = vld [vmem:[%s7651_s15 + $0x118] sm:$0xff] }
 0x3e3   : > { %v1483_v49 = vpop.f32.mrf.mxu3 }
 0x3e4   : > { %v1512_v50 = vsel %vm771_vm1, %v1483_v49, 0.0  ;;  %v1702_v49 = vld [vmem:[%s7651_s15 + $0x60] sm:$0xff] }
 0x3e5   : > { %v1513_v51 = vadd.f32 %v1512_v50, %v1511_v48  ;;  %v1720_v48 = vld [vmem:[%s7651_s15 + $0xf0] sm:$0xff]  ;;  %1761 = vmatpush.msra.mxu1 %v1702_v49 }
 0x3e6   : > { %v1736_v50 = vld [vmem:[%s7651_s15 + $0x170] sm:$0xff]  ;;  %1779 = vmatpush.msra.mxu2 %v1720_v48 }
 0x3e7   : > { %v1515_v54 = vadd.f32 %v1514_v53, %v1513_v51  ;;  %1799 = vmatpush.msrb.mxu3 %v1736_v50  ;;  %v1719_v53 = vld [vmem:[%s7651_s15 + $0xe8] sm:$0xff]  ;;  %v1708_v48 = vld [vmem:[%s7651_s15 + $0x90] sm:$0xff] }
 0x3e8   : > { %1780 = vmatpush.msra.mxu2 %v1719_v53  ;;  %v1724_v49 = vld [vmem:[%s7651_s15 + $0x110] sm:$0xff]  ;;  %v1707_v50 = vld [vmem:[%s7651_s15 + $0x88] sm:$0xff]  ;;  %v1722_v53 = vld [vmem:[%s7651_s15 + $0x100] sm:$0xff] }
 0x3e9   : > { %v1520_v55 = vadd.f32 %v4936_v52, %v1515_v54  ;;  %v1750_v52 = vld [vmem:[%s7651_s15 + $0x1e0] sm:$0xff]  ;;  %v1735_v54 = vld [vmem:[%s7651_s15 + $0x168] sm:$0xff] }
 0x3ea   : > { %1800 = vmatpush.msrb.mxu3 %v1735_v54  ;;  %1821 = vmatpush.msra.mxu0 %v1750_v52  ;;  %v1706_v52 = vld [vmem:[%s7651_s15 + $0x80] sm:$0xff] }
 0x3eb   : > { %v1521_v56 = vadd.f32 %v1520_v55, %v5490_v8  ;;  %v1718_v55 = vld [vmem:[%s7651_s15 + $0xe0] sm:$0xff] }
 0x3ec   : > { %1781 = vmatpush.msra.mxu2 %v1718_v55  ;;  %1822 = vmatpush.msra.mxu0 %v1749_v58  ;;  %v1593_v54 = vld [vmem:[%s7650_s14] sm:$0xf] }
 0x3ed   : > { %v1524_v57 = vsel %vm771_vm1, %v1521_v56, 0.0  ;;  %v1595_v55 = vperm.slane %v1593_v54, 0 }
 0x3ee   : > { %1525 = vadd.xlane.f32.xlu2 %v1524_v57  ;;  %v1701_v57 = vld [vmem:[%s7651_s15 + $0x58] sm:$0xff]  ;;  %1782 = vmatpush.msra.mxu2 %v1717_v59 }
 0x3ef   : > { %1762 = vmatpush.msra.mxu1 %v1701_v57  ;;  %1823 = vmatpush.msra.mxu0 %v1748_v62  ;;  %v1596_v62 = vperm.slane %v1593_v54, 1 }
 0x3f0   : > { %1783 = vmatpush.msra.mxu2 %v1716_v63 }
 0x3f1   : > { %1763 = vmatpush.msra.mxu1 %v1700_v61 }
 0x461   : > { %v1526_v1 = vpop.xlane.xlu2 %1525 }
 0x462   : > { %v1534_v2 = vmul.f32 %v5717_v0, %v1526_v1  ;;  %v1732_v1 = vld [vmem:[%s7651_s15 + $0x150] sm:$0xff] }
 0x464   : > { %v5720_v3 = vsub.f32 %v1521_v56, %v1534_v2  ;;  %v1734_v56 = vld [vmem:[%s7651_s15 + $0x160] sm:$0xff]  ;;  %v1699_v2 = vld [vmem:[%s7651_s15 + $0x48] sm:$0xff] }
 0x465   : > { %1801 = vmatpush.msrb.mxu3 %v1734_v56  ;;  %1764 = vmatpush.msra.mxu1 %v1699_v2  ;;  %v1598_v56 = vperm.slane %v1593_v54, 3 }
 0x466   : > { %v1536_v8 = vmul.f32 %v5720_v3, %v5720_v3 }
 0x467   : > { %1802 = vmatpush.msrb.mxu3 %v1733_v60  ;;  %1765 = vmatpush.msra.mxu1 %v1698_v7 }
 0x468   : > { %v1537_v4 = vsel %vm771_vm1, %v1536_v8, 0.0  ;;  %v1747_v8 = vld [vmem:[%s7651_s15 + $0x1c8] sm:$0xff] }
 0x469   : > { %1538 = vadd.xlane.f32.xlu0 %v1537_v4  ;;  %v1715_v4 = vld [vmem:[%s7651_s15 + $0xc8] sm:$0xff]  ;;  %1803 = vmatpush.msrb.mxu3 %v1732_v1  ;;  %v1597_v1 = vperm.slane %v1593_v54, 2  ;;  %v4389_v54 = vld [vmem:[%s7693_s6 + $0x180] sm:$0xff] }
 0x46a   : > { %1824 = vmatpush.msra.mxu0 %v1747_v8  ;;  %1784 = vmatpush.msra.mxu2 %v1715_v4 }
 0x46b   : > { %1804 = vmatpush.msrb.mxu3 %v1731_v5  ;;  %1766 = vmatpush.msra.mxu1 %v1697_v13 }
 0x46c   : > { %1825 = vmatpush.msra.mxu0 %v1746_v9  ;;  %1785 = vmatpush.msra.mxu2 %v1714_v11  ;;  %v4939_v9 = vld [vmem:[%s7652_s16] ss:$0 sm:$0xff] }
 0x46d   : > { %1805 = vmatpush.msrb.mxu3 %v1730_v12  ;;  %1767 = vmatpush.msra.mxu1 %v1696_v18 }
 0x46e   : > { %1826 = vmatpush.msra.mxu0 %v1745_v14  ;;  %1786 = vmatpush.msra.mxu2 %v1713_v16 }
 0x46f   : > { %1806 = vmatpush.msrb.mxu3 %v1729_v17  ;;  %1768 = vmatpush.msra.mxu1 %v1695_v23  ;;  %v4404_v23 = vld [vmem:[%s7693_s6 + $0x1f8] sm:$0xff] }
 0x470   : > { %1827 = vmatpush.msra.mxu0 %v1744_v19  ;;  %1787 = vmatpush.msra.mxu2 %v1712_v21  ;;  %v4388_v21 = vld [vmem:[%s7693_s6 + $0x178] sm:$0xff] }
 0x471   : > { %1807 = vmatpush.msrb.mxu3 %v1728_v22  ;;  %1769 = vmatpush.msra.mxu1 %v1694_v26  ;;  %v4396_v22 = vld [vmem:[%s7693_s6 + $0x1b8] sm:$0xff] }
 0x472   : > { %1828 = vmatpush.msra.mxu0 %v1743_v24  ;;  %1788 = vmatpush.msra.mxu2 %v1711_v37  ;;  %v4385_v37 = vld [vmem:[%s7693_s6 + $0x160] sm:$0xff] }
 0x473   : > { %1770 = vmatpush.msra.mxu1 %v1693_v30  ;;  %1808 = vmatpush.msrb.mxu3 %v1727_v38  ;;  %v4387_v30 = vld [vmem:[%s7693_s6 + $0x170] sm:$0xff]  ;;  %v4393_v38 = vld [vmem:[%s7693_s6 + $0x1a0] sm:$0xff] }
 0x474   : > { %1829 = vmatpush.msra.mxu0 %v1742_v27  ;;  %1789 = vmatpush.msra.mxu2 %v1710_v41  ;;  %v4384_v41 = vld [vmem:[%s7693_s6 + $0x158] sm:$0xff] }
 0x476   : > { %1830 = vmatpush.msra.mxu0 %v1741_v31  ;;  %v4395_v31 = vld [vmem:[%s7693_s6 + $0x1b0] sm:$0xff] }
 0x478   : > { %1831 = vmatpush.msra.mxu0 %v1740_v39  ;;  %v4401_v39 = vld [vmem:[%s7693_s6 + $0x1e0] sm:$0xff] }
 0x47a   : > { %1832 = vmatpush.msra.mxu0 %v1739_v43  ;;  %v4400_v43 = vld [vmem:[%s7693_s6 + $0x1d8] sm:$0xff] }
 0x47c   : > { %1833 = vmatpush.msra.mxu0 %v1738_v47  ;;  %v4399_v47 = vld [vmem:[%s7693_s6 + $0x1d0] sm:$0xff] }
 0x4dc   : > { %v1539_v42 = vpop.xlane.xlu0 %1538 }
 0x4dd   : > { %v1540_v45 = vmul.f32 %v1539_v42, %v5717_v0  ;;  %v1726_v42 = vld [vmem:[%s7651_s15 + $0x120] sm:$0xff] }
 0x4de   : > { %1809 = vmatpush.msrb.mxu3 %v1726_v42  ;;  %v4392_v42 = vld [vmem:[%s7693_s6 + $0x198] sm:$0xff] }
 0x4df   : > { %v5855_v51 = vadd.f32 1e-05, %v1540_v45  ;;  %v1709_v45 = vld [vmem:[%s7651_s15 + $0x98] sm:$0xff] }
 0x4e0   : > { %1790 = vmatpush.msra.mxu2 %v1709_v45  ;;  %1810 = vmatpush.msrb.mxu3 %v1725_v46  ;;  %v4383_v45 = vld [vmem:[%s7693_s6 + $0x150] sm:$0xff] }
 0x4e1   : > { %4996 = vrsqrt.f32 %v5855_v51  ;;  %vm1548_vm9 = vweird.f32 %v5855_v51  ;;  %v4391_v46 = vld [vmem:[%s7693_s6 + $0x190] sm:$0xff] }
 0x4e2   : > { %1791 = vmatpush.msra.mxu2 %v1708_v48  ;;  %1811 = vmatpush.msrb.mxu3 %v1724_v49  ;;  %v4374_v48 = vld [vmem:[%s7693_s6 + $0x108] sm:$0xff] }
 0x4e3   : > { %v4382_v49 = vld [vmem:[%s7693_s6 + $0x148] sm:$0xff] }
 0x4e4   : > { %1792 = vmatpush.msra.mxu2 %v1707_v50  ;;  %v4390_v50 = vld [vmem:[%s7693_s6 + $0x188] sm:$0xff] }
 0x4e6   : > { %1793 = vmatpush.msra.mxu2 %v1706_v52  ;;  %v4373_v52 = vld [vmem:[%s7693_s6 + $0x100] sm:$0xff] }
 0x4e7   : > { %v4997_v6 = vpop.eup %4996 }
 0x4e8   : > { %v1543_v10 = vmul.f32 %v4997_v6, %v5855_v51  ;;  %vm1549_vm8 = vweird.f32 %v4997_v6  ;;  %v1723_v51 = vld [vmem:[%s7651_s15 + $0x108] sm:$0xff] }
 0x4e9   : > { %vm1550_vm10 = vmor %vm1548_vm9, %vm1549_vm8  ;;  %1812 = vmatpush.msrb.mxu3 %v1723_v51  ;;  %v4398_v51 = vld [vmem:[%s7693_s6 + $0x1c8] sm:$0xff] }
 0x4ea   : > { %v1544_v15 = vmul.f32 %v4997_v6, %v1543_v10 }
 0x4eb   : > { %1813 = vmatpush.msrb.mxu3 %v1722_v53  ;;  %v4381_v53 = vld [vmem:[%s7693_s6 + $0x140] sm:$0xff] }
 0x4ec   : > { %v1545_v20 = vmul.f32 0.5, %v1544_v15 }
 0x4ee   : > { %v1546_v25 = vsub.f32 1.5, %v1545_v20  ;;  %v4380_v20 = vld [vmem:[%s7693_s6 + $0x138] sm:$0xff] }
 0x4f0   : > { %v1547_v29 = vmul.f32 %v4997_v6, %v1546_v25 }
 0x4f2   : > { %v1551_v32 = vsel %vm1550_vm10, %v4997_v6, %v1547_v29  ;;  %v4379_v29 = vld [vmem:[%s7693_s6 + $0x130] sm:$0xff] }
 0x4f3   : > { %v1552_v33 = vmul.f32 %v1551_v32, %v5720_v3  ;;  %v1692_v3 = vld [vmem:[%s7651_s15 + $0x10] sm:$0xff] }
 0x4f4   : > { %1771 = vmatpush.msra.mxu1 %v1692_v3  ;;  %v4403_v32 = vld [vmem:[%s7693_s6 + $0x1f0] sm:$0xff]  ;;  %v4377_v3 = vld [vmem:[%s7693_s6 + $0x120] sm:$0xff] }
 0x4f5   : > { %v1556_v35 = vmul.f32 %v4937_v28, %v1552_v33  ;;  %v4378_v33 = vld [vmem:[%s7693_s6 + $0x128] sm:$0xff] }
 0x4f6   : > { %1772 = vmatpush.msra.mxu1 %v1691_v40  ;;  %v4376_v40 = vld [vmem:[%s7693_s6 + $0x118] sm:$0xff] }
 0x4f7   : > { %v5972_v36 = vadd.f32 %v4938_v34, %v1556_v35  ;;  %v4386_v34 = vld [vmem:[%s7693_s6 + $0x168] sm:$0xff] }
 0x4f8   : > { %1773 = vmatpush.msra.mxu1 %v1690_v44  ;;  %v4394_v35 = vld [vmem:[%s7693_s6 + $0x1a8] sm:$0xff]  ;;  %v4375_v44 = vld [vmem:[%s7693_s6 + $0x110] sm:$0xff] }
 0x4f9   : > { %4369 = vmatmul.msk.f32.vlgmr.msrb.gmra.mxu1 %vm771_vm1, %v5972_v36  ;;  %4370 = vmatmul.msk.f32.vlgmr.msrb.gmra.mxu2 %vm771_vm1, %v5972_v36 }
 0x4fa   : > { %4371 = vmatmul.msk.f32.vlgmr.msra.gmra.mxu3 %vm771_vm1, %v5972_v36  ;;  %4372 = vmatmul.msk.f32.vlgmr.msrb.gmra.mxu0 %vm771_vm1, %v5972_v36 }
 0x4fb   : > { %1932 = vmatpush.msrb.mxu1 %v4380_v20  ;;  %1952 = vmatpush.msrb.mxu2 %v4388_v21  ;;  %v4430_v20 = vld [vmem:[%s7696_s23 + $0x188] sm:$0xff] }
 0x4fc   : > { %1972 = vmatpush.msra.mxu3 %v4396_v22  ;;  %1992 = vmatpush.msrb.mxu0 %v4404_v23  ;;  %v4438_v21 = vld [vmem:[%s7696_s23 + $0x1c8] sm:$0xff]  ;;  %v4413_v22 = vld [vmem:[%s7696_s23 + $0x100] sm:$0xff] }
 0x4fd   : > { %1933 = vmatpush.msrb.mxu1 %v4379_v29  ;;  %1953 = vmatpush.msrb.mxu2 %v4387_v30  ;;  %v4421_v23 = vld [vmem:[%s7696_s23 + $0x140] sm:$0xff] }
 0x4fe   : > { %1973 = vmatpush.msra.mxu3 %v4395_v31  ;;  %1993 = vmatpush.msrb.mxu0 %v4403_v32 }
 0x4ff   : > { %1934 = vmatpush.msrb.mxu1 %v4378_v33  ;;  %1954 = vmatpush.msrb.mxu2 %v4386_v34 }
 0x500   : > { %1974 = vmatpush.msra.mxu3 %v4394_v35 }
 0x501   : > { %1935 = vmatpush.msrb.mxu1 %v4377_v3  ;;  %1955 = vmatpush.msrb.mxu2 %v4385_v37  ;;  %v4941_v37 = vld [vmem:[%s7654_s18] ss:$0 sm:$0xff] }
 0x502   : > { %1975 = vmatpush.msra.mxu3 %v4393_v38 }
 0x503   : > { %1936 = vmatpush.msrb.mxu1 %v4376_v40  ;;  %1956 = vmatpush.msrb.mxu2 %v4384_v41  ;;  %v4460_v41 = vld [vmem:[%s7698_s7 + $0x138] sm:$0xff] }
 0x504   : > { %1976 = vmatpush.msra.mxu3 %v4392_v42  ;;  %v4468_v42 = vld [vmem:[%s7698_s7 + $0x178] sm:$0xff] }
 0x505   : > { %1937 = vmatpush.msrb.mxu1 %v4375_v44  ;;  %1957 = vmatpush.msrb.mxu2 %v4383_v45  ;;  %v4459_v44 = vld [vmem:[%s7698_s7 + $0x130] sm:$0xff] }
 0x506   : > { %1977 = vmatpush.msra.mxu3 %v4391_v46  ;;  %v4467_v45 = vld [vmem:[%s7698_s7 + $0x170] sm:$0xff] }
 0x507   : > { %1938 = vmatpush.msrb.mxu1 %v4374_v48  ;;  %1958 = vmatpush.msrb.mxu2 %v4382_v49  ;;  %v4475_v46 = vld [vmem:[%s7698_s7 + $0x1b0] sm:$0xff]  ;;  %v4458_v48 = vld [vmem:[%s7698_s7 + $0x128] sm:$0xff] }
 0x508   : > { %1978 = vmatpush.msra.mxu3 %v4390_v50  ;;  %v4466_v49 = vld [vmem:[%s7698_s7 + $0x168] sm:$0xff] }
 0x509   : > { %1939 = vmatpush.msrb.mxu1 %v4373_v52  ;;  %1959 = vmatpush.msrb.mxu2 %v4381_v53  ;;  %v4474_v50 = vld [vmem:[%s7698_s7 + $0x1a8] sm:$0xff]  ;;  %v4457_v52 = vld [vmem:[%s7698_s7 + $0x120] sm:$0xff] }
 0x50a   : > { %1979 = vmatpush.msra.mxu3 %v4389_v54  ;;  %v4465_v53 = vld [vmem:[%s7698_s7 + $0x160] sm:$0xff] }
 0x50b   : > { %v4473_v54 = vld [vmem:[%s7698_s7 + $0x1a0] sm:$0xff] }
 0x576   : > { %v1623_v57 = vpop.f32.mrf.mxu1 }
 0x577   : > { %v1624_v58 = vadd.f32 %v1623_v57, %v1595_v55  ;;  %v1683_v59 = vpop.f32.mrf.mxu0  ;;  %v4397_v55 = vld [vmem:[%s7693_s6 + $0x1c0] sm:$0xff]  ;;  %v4428_v57 = vld [vmem:[%s7696_s23 + $0x178] sm:$0xff] }
 0x578   : > { %v1684_v60 = vadd.f32 %v1683_v59, %v1598_v56  ;;  %v4420_v56 = vld [vmem:[%s7696_s23 + $0x138] sm:$0xff] }
 0x579   : > { %v1686_v61 = vmax.f32 %v1624_v58, 0.0  ;;  %v4436_v58 = vld [vmem:[%s7696_s23 + $0x1b8] sm:$0xff] }
 0x57a   : > { %v1689_v63 = vmax.f32 %v1684_v60, 0.0  ;;  %v4444_v59 = vld [vmem:[%s7696_s23 + $0x1f8] sm:$0xff]  ;;  %v4419_v60 = vld [vmem:[%s7696_s23 + $0x130] sm:$0xff] }
 0x57b   : > { %1774 = vmatmul.f32.vlgmr.msra.gmra.mxu1 %v1686_v61  ;;  %v4427_v61 = vld [vmem:[%s7696_s23 + $0x170] sm:$0xff] }
 0x57c   : > { %1834 = vmatmul.f32.vlgmr.msra.gmra.mxu0 %v1689_v63  ;;  %v1643_v2 = vpop.f32.mrf.mxu2  ;;  %2062 = vmatpush.msra.mxu1 %v4420_v56  ;;  %v4443_v63 = vld [vmem:[%s7696_s23 + $0x1f0] sm:$0xff]  ;;  %v4456_v56 = vld [vmem:[%s7698_s7 + $0x118] sm:$0xff] }
 0x57d   : > { %v1644_v8 = vadd.f32 %v1643_v2, %v1596_v62  ;;  %v1663_v4 = vpop.f32.mrf.mxu3  ;;  %v4435_v62 = vld [vmem:[%s7696_s23 + $0x1b0] sm:$0xff]  ;;  %v4426_v2 = vld [vmem:[%s7696_s23 + $0x168] sm:$0xff] }
 0x57e   : > { %v1664_v5 = vadd.f32 %v1663_v4, %v1597_v1  ;;  %2063 = vmatpush.msra.mxu1 %v4419_v60  ;;  %v4418_v1 = vld [vmem:[%s7696_s23 + $0x128] sm:$0xff]  ;;  %v4455_v60 = vld [vmem:[%s7698_s7 + $0x110] sm:$0xff] }
 0x57f   : > { %v1687_v6 = vmax.f32 %v1644_v8, 0.0  ;;  %v4434_v8 = vld [vmem:[%s7696_s23 + $0x1a8] sm:$0xff] }
 0x580   : > { %v1688_v7 = vmax.f32 %v1664_v5, 0.0  ;;  %v4442_v4 = vld [vmem:[%s7696_s23 + $0x1e8] sm:$0xff]  ;;  %2064 = vmatpush.msra.mxu1 %v4418_v1  ;;  %v4417_v5 = vld [vmem:[%s7696_s23 + $0x120] sm:$0xff] }
 0x581   : > { %1794 = vmatmul.f32.vlgmr.msra.gmra.mxu2 %v1687_v6  ;;  %v4425_v6 = vld [vmem:[%s7696_s23 + $0x160] sm:$0xff]  ;;  %v4454_v1 = vld [vmem:[%s7698_s7 + $0x108] sm:$0xff] }
 0x582   : > { %1814 = vmatmul.f32.vlgmr.msrb.gmra.mxu3 %v1688_v7  ;;  %2082 = vmatpush.msra.mxu2 %v4428_v57  ;;  %v4433_v7 = vld [vmem:[%s7696_s23 + $0x1a0] sm:$0xff]  ;;  %v4464_v57 = vld [vmem:[%s7698_s7 + $0x158] sm:$0xff] }
 0x583   : > { %2102 = vmatpush.msrb.mxu3 %v4436_v58  ;;  %2065 = vmatpush.msra.mxu1 %v4417_v5  ;;  %v4472_v58 = vld [vmem:[%s7698_s7 + $0x198] sm:$0xff]  ;;  %v4453_v5 = vld [vmem:[%s7698_s7 + $0x100] sm:$0xff] }
 0x584   : > { %2083 = vmatpush.msra.mxu2 %v4427_v61  ;;  %v4463_v61 = vld [vmem:[%s7698_s7 + $0x150] sm:$0xff] }
 0x585   : > { %2103 = vmatpush.msrb.mxu3 %v4435_v62  ;;  %v4471_v62 = vld [vmem:[%s7698_s7 + $0x190] sm:$0xff] }
 0x586   : > { %2084 = vmatpush.msra.mxu2 %v4426_v2  ;;  %v4462_v2 = vld [vmem:[%s7698_s7 + $0x148] sm:$0xff] }
 0x587   : > { %2104 = vmatpush.msrb.mxu3 %v4434_v8  ;;  %v4470_v8 = vld [vmem:[%s7698_s7 + $0x188] sm:$0xff] }
 0x588   : > { %2085 = vmatpush.msra.mxu2 %v4425_v6  ;;  %v4461_v6 = vld [vmem:[%s7698_s7 + $0x140] sm:$0xff] }
 0x589   : > { %2105 = vmatpush.msrb.mxu3 %v4433_v7  ;;  %v4469_v7 = vld [vmem:[%s7698_s7 + $0x180] sm:$0xff] }
 0x5f8   : > { %v1775_v10 = vpop.f32.mrf.mxu1 }
 0x5f9   : > { %v1776_v11 = vadd.f32 %v4939_v9, %v1775_v10  ;;  %v1835_v16 = vpop.f32.mrf.mxu0  ;;  %v4441_v9 = vld [vmem:[%s7696_s23 + $0x1e0] sm:$0xff]  ;;  %v4416_v10 = vld [vmem:[%s7696_s23 + $0x118] sm:$0xff] }
 0x5fa   : > { %2066 = vmatpush.msra.mxu1 %v4416_v10 }
 0x604   : > { %v1795_v12 = vpop.f32.mrf.mxu2 }
 0x605   : > { %v1796_v13 = vadd.f32 %v1795_v12, %v1776_v11  ;;  %v1815_v14 = vpop.f32.mrf.mxu3  ;;  %v4424_v11 = vld [vmem:[%s7696_s23 + $0x158] sm:$0xff] }
 0x606   : > { %v4432_v12 = vld [vmem:[%s7696_s23 + $0x198] sm:$0xff]  ;;  %2086 = vmatpush.msra.mxu2 %v4424_v11 }
 0x607   : > { %v1816_v15 = vadd.f32 %v1815_v14, %v1796_v13  ;;  %v4440_v13 = vld [vmem:[%s7696_s23 + $0x1d8] sm:$0xff]  ;;  %v4415_v14 = vld [vmem:[%s7696_s23 + $0x110] sm:$0xff]  ;;  %2106 = vmatpush.msrb.mxu3 %v4432_v12 }
 0x608   : > { %2067 = vmatpush.msra.mxu1 %v4415_v14  ;;  %v4946_v14 = vld [vmem:[%s7699_s3 + $0x4] ss:$0 sm:$0xff] }
 0x609   : > { %v1836_v17 = vadd.f32 %v1835_v16, %v1816_v15  ;;  %v4423_v15 = vld [vmem:[%s7696_s23 + $0x150] sm:$0xff] }
 0x60a   : > { %v4431_v16 = vld [vmem:[%s7696_s23 + $0x190] sm:$0xff]  ;;  %2087 = vmatpush.msra.mxu2 %v4423_v15  ;;  %v4947_v15 = vld [vmem:[%s7699_s3 + $0x7] ss:$0 sm:$0xff] }
 0x60b   : > { %v1838_v18 = vadd.f32 %v1836_v17, %v5972_v36  ;;  %v4402_v36 = vld [vmem:[%s7693_s6 + $0x1e8] sm:$0xff]  ;;  %v4439_v17 = vld [vmem:[%s7696_s23 + $0x1d0] sm:$0xff]  ;;  %2107 = vmatpush.msrb.mxu3 %v4431_v16  ;;  %v4942_v16 = vld [vmem:[%s7700_s24 + $0x4] ss:$0 sm:$0xff] }
 0x60c   : > { %1994 = vmatpush.msrb.mxu0 %v4402_v36  ;;  %v4940_v36 = vld [vmem:[%s7653_s17] ss:$0 sm:$0xff] }
 0x60d   : > { %v1841_v19 = vsel %vm771_vm1, %v1838_v18, 0.0  ;;  %2108 = vmatpush.msrb.mxu3 %v4430_v20 }
 0x60e   : > { %1842 = vadd.xlane.f32.xlu1 %v1841_v19  ;;  %1995 = vmatpush.msrb.mxu0 %v4401_v39  ;;  %v4422_v19 = vld [vmem:[%s7696_s23 + $0x148] sm:$0xff] }
 0x60f   : > { %2088 = vmatpush.msra.mxu2 %v4422_v19 }
 0x610   : > { %1996 = vmatpush.msrb.mxu0 %v4400_v43  ;;  %v4484_v43 = vld [vmem:[%s7698_s7 + $0x1f8] sm:$0xff] }
 0x611   : > { %2089 = vmatpush.msra.mxu2 %v4421_v23 }
 0x612   : > { %1997 = vmatpush.msrb.mxu0 %v4399_v47  ;;  %v4483_v47 = vld [vmem:[%s7698_s7 + $0x1f0] sm:$0xff] }
 0x614   : > { %1998 = vmatpush.msrb.mxu0 %v4398_v51  ;;  %v4482_v51 = vld [vmem:[%s7698_s7 + $0x1e8] sm:$0xff] }
 0x616   : > { %1999 = vmatpush.msrb.mxu0 %v4397_v55  ;;  %v4481_v55 = vld [vmem:[%s7698_s7 + $0x1e0] sm:$0xff] }
 0x618   : > { %2122 = vmatpush.msra.mxu0 %v4444_v59  ;;  %v4480_v59 = vld [vmem:[%s7698_s7 + $0x1d8] sm:$0xff] }
 0x61a   : > { %2123 = vmatpush.msra.mxu0 %v4443_v63  ;;  %v4479_v63 = vld [vmem:[%s7698_s7 + $0x1d0] sm:$0xff] }
 0x61c   : > { %2124 = vmatpush.msra.mxu0 %v4442_v4  ;;  %v4478_v4 = vld [vmem:[%s7698_s7 + $0x1c8] sm:$0xff] }
 0x61e   : > { %2125 = vmatpush.msra.mxu0 %v4441_v9  ;;  %v4477_v9 = vld [vmem:[%s7698_s7 + $0x1c0] sm:$0xff] }
 0x620   : > { %2126 = vmatpush.msra.mxu0 %v4440_v13 }
 0x622   : > { %2127 = vmatpush.msra.mxu0 %v4439_v17 }
 0x624   : > { %2128 = vmatpush.msra.mxu0 %v4438_v21 }
 0x681   : > { %v1843_v24 = vpop.xlane.xlu1 %1842 }
 0x682   : > { %v1844_v25 = vmul.f32 %v1843_v24, %v5717_v0  ;;  %v4429_v24 = vld [vmem:[%s7696_s23 + $0x180] sm:$0xff] }
 0x683   : > { %2109 = vmatpush.msrb.mxu3 %v4429_v24  ;;  %v4949_v24 = vld [vmem:[%s7699_s3 + $0x6] ss:$0 sm:$0xff] }
 0x684   : > { %v6057_v26 = vsub.f32 %v1838_v18, %v1844_v25  ;;  %v4414_v18 = vld [vmem:[%s7696_s23 + $0x108] sm:$0xff]  ;;  %v4437_v25 = vld [vmem:[%s7696_s23 + $0x1c0] sm:$0xff] }
 0x685   : > { %2068 = vmatpush.msra.mxu1 %v4414_v18  ;;  %2129 = vmatpush.msra.mxu0 %v4437_v25  ;;  %v4943_v18 = vld [vmem:[%s7700_s24 + $0x7] ss:$0 sm:$0xff] }
 0x686   : > { %v1846_v27 = vmul.f32 %v6057_v26, %v6057_v26 }
 0x687   : > { %2069 = vmatpush.msra.mxu1 %v4413_v22  ;;  %v4948_v22 = vld [vmem:[%s7699_s3 + $0x5] ss:$0 sm:$0xff] }
 0x688   : > { %v1847_v28 = vsel %vm771_vm1, %v1846_v27, 0.0 }
 0x689   : > { %1848 = vadd.xlane.f32.xlu2 %v1847_v28 }
 0x6fc   : > { %v1849_v27 = vpop.xlane.xlu2 %1848 }
 0x6fd   : > { %v1850_v28 = vmul.f32 %v1849_v27, %v5717_v0  ;;  %v4944_v27 = vld [vmem:[%s7700_s24 + $0x5] ss:$0 sm:$0xff] }
 0x6ff   : > { %v1851_v29 = vadd.f32 1e-05, %v1850_v28 }
 0x701   : > { %4998 = vrsqrt.f32 %v1851_v29  ;;  %vm1858_vm12 = vweird.f32 %v1851_v29 }
 0x707   : > { %v4999_v30 = vpop.eup %4998 }
 0x708   : > { %v1853_v31 = vmul.f32 %v4999_v30, %v1851_v29  ;;  %vm1859_vm11 = vweird.f32 %v4999_v30  ;;  %v4945_v29 = vld [vmem:[%s7700_s24 + $0x6] ss:$0 sm:$0xff] }
 0x709   : > { %vm1860_vm13 = vmor %vm1858_vm12, %vm1859_vm11 }
 0x70a   : > { %v1854_v32 = vmul.f32 %v4999_v30, %v1853_v31 }
 0x70c   : > { %v1855_v33 = vmul.f32 0.5, %v1854_v32  ;;  %v4950_v32 = vld [vmem:[%s7701_s8 + $0x4] ss:$0 sm:$0xff] }
 0x70e   : > { %v1856_v34 = vsub.f32 1.5, %v1855_v33 }
 0x710   : > { %v1857_v35 = vmul.f32 %v4999_v30, %v1856_v34  ;;  %v4951_v34 = vld [vmem:[%s7701_s8 + $0x7] ss:$0 sm:$0xff] }
 0x712   : > { %v1861_v3 = vsel %vm1860_vm13, %v4999_v30, %v1857_v35 }
 0x713   : > { %v1862_v38 = vmul.f32 %v1861_v3, %v6057_v26  ;;  %v4476_v26 = vld [vmem:[%s7698_s7 + $0x1b8] sm:$0xff] }
 0x715   : > { %v1866_v39 = vmul.f32 %v4940_v36, %v1862_v38 }
 0x717   : > { %v6250_v40 = vadd.f32 %v4941_v37, %v1866_v39 }
 0x719   : > { %4409 = vmatmul.msk.f32.vlgmr.msrb.gmra.mxu1 %vm771_vm1, %v6250_v40  ;;  %4410 = vmatmul.msk.f32.vlgmr.msrb.gmra.mxu2 %vm771_vm1, %v6250_v40 }
 0x71a   : > { %4411 = vmatmul.msk.f32.vlgmr.msra.gmra.mxu3 %vm771_vm1, %v6250_v40  ;;  %4412 = vmatmul.msk.f32.vlgmr.msrb.gmra.mxu0 %vm771_vm1, %v6250_v40 }
 0x71b   : > { %2192 = vmatpush.msrb.mxu1 %v4460_v41  ;;  %2212 = vmatpush.msrb.mxu2 %v4468_v42  ;;  %v4952_v41 = vld [vmem:[%s7701_s8 + $0x5] ss:$0 sm:$0xff]  ;;  %v4953_v42 = vld [vmem:[%s7701_s8 + $0x6] ss:$0 sm:$0xff] }
 0x71c   : > { %2232 = vmatpush.msra.mxu3 %v4476_v26  ;;  %2252 = vmatpush.msrb.mxu0 %v4484_v43 }
 0x71d   : > { %2193 = vmatpush.msrb.mxu1 %v4459_v44  ;;  %2213 = vmatpush.msrb.mxu2 %v4467_v45 }
 0x71e   : > { %2233 = vmatpush.msra.mxu3 %v4475_v46  ;;  %2253 = vmatpush.msrb.mxu0 %v4483_v47 }
 0x71f   : > { %2194 = vmatpush.msrb.mxu1 %v4458_v48  ;;  %2214 = vmatpush.msrb.mxu2 %v4466_v49 }
 0x720   : > { %2234 = vmatpush.msra.mxu3 %v4474_v50  ;;  %2254 = vmatpush.msrb.mxu0 %v4482_v51 }
 0x721   : > { %2195 = vmatpush.msrb.mxu1 %v4457_v52  ;;  %2215 = vmatpush.msrb.mxu2 %v4465_v53 }
 0x722   : > { %2235 = vmatpush.msra.mxu3 %v4473_v54  ;;  %2255 = vmatpush.msrb.mxu0 %v4481_v55 }
 0x723   : > { %4449 = vmatmul.msk.f32.vlgmr.msra.gmra.mxu1 %vm771_vm1, %v6250_v40  ;;  %4450 = vmatmul.msk.f32.vlgmr.msra.gmra.mxu2 %vm771_vm1, %v6250_v40 }
 0x724   : > { %4451 = vmatmul.msk.f32.vlgmr.msrb.gmra.mxu3 %vm771_vm1, %v6250_v40  ;;  %4452 = vmatmul.msk.f32.vlgmr.msra.gmra.mxu0 %vm771_vm1, %v6250_v40 }
 0x725   : > { %2196 = vmatpush.msrb.mxu1 %v4456_v56  ;;  %2216 = vmatpush.msrb.mxu2 %v4464_v57 }
 0x726   : > { %2236 = vmatpush.msra.mxu3 %v4472_v58  ;;  %2256 = vmatpush.msrb.mxu0 %v4480_v59 }
 0x727   : > { %2197 = vmatpush.msrb.mxu1 %v4455_v60  ;;  %2217 = vmatpush.msrb.mxu2 %v4463_v61 }
 0x728   : > { %2237 = vmatpush.msra.mxu3 %v4471_v62  ;;  %2257 = vmatpush.msrb.mxu0 %v4479_v63 }
 0x729   : > { %2198 = vmatpush.msrb.mxu1 %v4454_v1  ;;  %2218 = vmatpush.msrb.mxu2 %v4462_v2 }
 0x72a   : > { %2238 = vmatpush.msra.mxu3 %v4470_v8  ;;  %2258 = vmatpush.msrb.mxu0 %v4478_v4 }
 0x72b   : > { %2199 = vmatpush.msrb.mxu1 %v4453_v5  ;;  %2219 = vmatpush.msrb.mxu2 %v4461_v6 }
 0x72c   : > { %2239 = vmatpush.msra.mxu3 %v4469_v7  ;;  %2259 = vmatpush.msrb.mxu0 %v4477_v9 }
 0x72d   : > { %4489 = vmatmul.msk.f32.vlgmr.msrb.gmra.mxu1 %vm771_vm1, %v6250_v40  ;;  %4490 = vmatmul.msk.f32.vlgmr.msrb.gmra.mxu2 %vm771_vm1, %v6250_v40 }
 0x72e   : > { %4491 = vmatmul.msk.f32.vlgmr.msra.gmra.mxu3 %vm771_vm1, %v6250_v40  ;;  %4492 = vmatmul.msk.f32.vlgmr.msrb.gmra.mxu0 %vm771_vm1, %v6250_v40 }
 0x796   : > { %v1941_v10 = vpop.f32.mrf.mxu1 }
 0x797   : > { %v2001_v11 = vpop.f32.mrf.mxu0  ;;  %v1942_v23 = vadd.f32 %v4942_v16, %v1941_v10 }
 0x798   : > { %v2002_v25 = vadd.f32 %v4943_v18, %v2001_v11 }
 0x79c   : > { %v1961_v12 = vpop.f32.mrf.mxu2 }
 0x79d   : > { %v1981_v13 = vpop.f32.mrf.mxu3  ;;  %v1962_v35 = vadd.f32 %v4944_v27, %v1961_v12 }
 0x79e   : > { %v1982_v3 = vadd.f32 %v4945_v29, %v1981_v13 }
 0x7a0   : > { %v2071_v17 = vpop.f32.mrf.mxu1 }
 0x7a1   : > { %v2072_v19 = vadd.f32 %v4946_v14, %v2071_v17  ;;  %v2131_v20 = vpop.f32.mrf.mxu0 }
 0x7a2   : > { %v2132_v21 = vadd.f32 %v4947_v15, %v2131_v20 }
 0x7a3   : > { %4493 = vmatpush.xpose.msk.msra.mxu1 %vm1111_vm2, %v2072_v19  ;;  %v4506_v19 = vld [vmem:[%s7645_s9 + $0x48] sm:$0xff] }
 0x7a4   : > { %4499 = vmatpush.xpose.msk.msra.mxu0 %vm1111_vm2, %v2132_v21 }
 0x7a6   : > { %v2091_v28 = vpop.f32.mrf.mxu2  ;;  %4494 = vmatmul.msk.f32.vlgmr.msra.gmra.mxu1 %vm1111_vm2, %v1942_v23 }
 0x7a7   : > { %v2092_v30 = vadd.f32 %v4948_v22, %v2091_v28  ;;  %v2111_v31 = vpop.f32.mrf.mxu3  ;;  %4500 = vmatmul.msk.f32.vlgmr.msra.gmra.mxu0 %vm1111_vm2, %v2002_v25 }
 0x7a8   : > { %v2112_v33 = vadd.f32 %v4949_v24, %v2111_v31 }
 0x7a9   : > { %4495 = vmatpush.xpose.msk.msra.mxu2 %vm1111_vm2, %v2092_v30 }
 0x7aa   : > { %v2201_v36 = vpop.f32.mrf.mxu1  ;;  %4497 = vmatpush.xpose.msk.msrb.mxu3 %vm1111_vm2, %v2112_v33 }
 0x7ab   : > { %v2202_v37 = vadd.f32 %v4950_v32, %v2201_v36  ;;  %v2261_v38 = vpop.f32.mrf.mxu0 }
 0x7ac   : > { %v2262_v39 = vadd.f32 %v4951_v34, %v2261_v38  ;;  %4496 = vmatmul.msk.f32.vlgmr.msra.gmra.mxu2 %vm1111_vm2, %v1962_v35 }
 0x7ad   : > { %2486 = vmatpush.msrb.mxu1 %v2202_v37  ;;  %4498 = vmatmul.msk.f32.vlgmr.msrb.gmra.mxu3 %vm1111_vm2, %v1982_v3 }
 0x7ae   : > { %2555 = vmatpush.msrb.mxu0 %v2262_v39 }
 0x7af   : > { %2586 = vmatpush.msra.mxu1 %v4506_v19 }
 0x7b0   : > { %v2221_v26 = vpop.f32.mrf.mxu2 }
 0x7b1   : > { %v2222_v43 = vadd.f32 %v4952_v41, %v2221_v26  ;;  %v2241_v44 = vpop.f32.mrf.mxu3 }
 0x7b2   : > { %v2242_v45 = vadd.f32 %v4953_v42, %v2241_v44 }
 0x7b3   : > { %2509 = vmatpush.msrb.mxu2 %v2222_v43 }
 0x7b4   : > { %2532 = vmatpush.msra.mxu3 %v2242_v45 }
 0x823   : > { %v2287_v46 = vpop.f32.mrf.mxu1 }
 0x824   : > { %v2368_v47 = vmul.f32 0.25, %v2287_v46  ;;  %v2365_v54 = vpop.f32.mrf.mxu0 }
 0x825   : > { %v2371_v56 = vmul.f32 0.25, %v2365_v54 }
 0x826   : > { %v2372_v48 = vsel %vm1220_vm3, %v2368_v47, -inf }
 0x827   : > { %2373 = vmax.xlane.f32.xlu2 %v2372_v48  ;;  %v2381_v57 = vsel %vm1220_vm3, %v2371_v56, -inf }
 0x82f   : > { %v2313_v49 = vpop.f32.mrf.mxu2 }
 0x830   : > { %v2369_v50 = vmul.f32 0.25, %v2313_v49  ;;  %v2339_v51 = vpop.f32.mrf.mxu3 }
 0x831   : > { %v2370_v52 = vmul.f32 0.25, %v2339_v51 }
 0x832   : > { %v2375_v53 = vsel %vm1220_vm3, %v2369_v50, -inf }
 0x833   : > { %v2378_v55 = vsel %vm1220_vm3, %v2370_v52, -inf  ;;  %2376 = vmax.xlane.f32.xlu0 %v2375_v53 }
 0x834   : > { %2379 = vmax.xlane.f32.xlu1 %v2378_v55 }
 0x83b   : > { %2382 = vmax.xlane.f32.xlu0 %v2381_v57 }
 0x89a   : > { %v2374_v58 = vpop.xlane.xlu2 %2373 }
 0x89b   : > { %v2384_v59 = vsub.f32 %v2368_v47, %v2374_v58 }
 0x89d   : > { %v2388_v60 = vmul.f32 1.442695, %v2384_v59 }
 0x89f   : > { %5000 = vpow2.f32 %v2388_v60 }
 0x8a5   : > { %v5001_v61 = vpop.eup %5000 }
 0x8a6   : > { %v2377_v62 = vpop.xlane.xlu0 %2376  ;;  %v2396_v63 = vsel %vm1220_vm3, %v5001_v61, 0.0 }
 0x8a7   : > { %v2380_v1 = vpop.xlane.xlu1 %2379  ;;  %v2385_v2 = vsub.f32 %v2369_v50, %v2377_v62  ;;  %2397 = vadd.xlane.f32.xlu0 %v2396_v63 }
 0x8a8   : > { %v2386_v8 = vsub.f32 %v2370_v52, %v2380_v1 }
 0x8a9   : > { %v2390_v4 = vmul.f32 1.442695, %v2385_v2  ;;  %v4505_v2 = vld [vmem:[%s7645_s9 + $0x40] sm:$0xff] }
 0x8aa   : > { %v2392_v5 = vmul.f32 1.442695, %v2386_v8  ;;  %2587 = vmatpush.msra.mxu1 %v4505_v2  ;;  %v4508_v8 = vld [vmem:[%s7645_s9 + $0x58] sm:$0xff] }
 0x8ab   : > { %5002 = vpow2.f32 %v2390_v4  ;;  %v4510_v4 = vld [vmem:[%s7645_s9 + $0x68] sm:$0xff]  ;;  %2609 = vmatpush.msra.mxu2 %v4508_v8  ;;  %v4572_v2 = vld [vmem:[%s7651_s15 + $0x278] sm:$0xff] }
 0x8ac   : > { %5004 = vpow2.f32 %v2392_v5  ;;  %2632 = vmatpush.msrb.mxu3 %v4510_v4  ;;  %v4507_v5 = vld [vmem:[%s7645_s9 + $0x50] sm:$0xff]  ;;  %v4620_v8 = vld [vmem:[%s7651_s15 + $0x3f8] sm:$0xff] }
 0x8ad   : > { %2610 = vmatpush.msra.mxu2 %v4507_v5  ;;  %v4571_v4 = vld [vmem:[%s7651_s15 + $0x270] sm:$0xff] }
 0x8ae   : > { %v2383_v6 = vpop.xlane.xlu0 %2382 }
 0x8af   : > { %v2387_v7 = vsub.f32 %v2371_v56, %v2383_v6  ;;  %v4509_v6 = vld [vmem:[%s7645_s9 + $0x60] sm:$0xff] }
 0x8b0   : > { %2633 = vmatpush.msrb.mxu3 %v4509_v6  ;;  %v4619_v6 = vld [vmem:[%s7651_s15 + $0x3f0] sm:$0xff] }
 0x8b1   : > { %v6421_v9 = vpop.eup %5002  ;;  %v2394_v10 = vmul.f32 1.442695, %v2387_v7  ;;  %v4512_v7 = vld [vmem:[%s7645_s9 + $0x78] sm:$0xff] }
 0x8b2   : > { %v6423_v11 = vpop.eup %5004  ;;  %v2399_v12 = vsel %vm1220_vm3, %v6421_v9, 0.0  ;;  %2655 = vmatpush.msra.mxu0 %v4512_v7  ;;  %v4588_v7 = vld [vmem:[%s7651_s15 + $0x2f8] sm:$0xff] }
 0x8b3   : > { %5006 = vpow2.f32 %v2394_v10  ;;  %2400 = vadd.xlane.f32.xlu1 %v2399_v12  ;;  %v2402_v13 = vsel %vm1220_vm3, %v6423_v11, 0.0 }
 0x8b4   : > { %2403 = vadd.xlane.f32.xlu2 %v2402_v13 }
 0x8b9   : > { %v6429_v14 = vpop.eup %5006 }
 0x8ba   : > { %v2405_v15 = vsel %vm1220_vm3, %v6429_v14, 0.0 }
 0x8bb   : > { %2406 = vadd.xlane.f32.xlu1 %v2405_v15 }
 0x91a   : > { %v2398_v16 = vpop.xlane.xlu0 %2397 }
 0x91b   : > { %5008 = vrcp.f32 %v2398_v16  ;;  %v2419_v21 = vand.u32 2147483648, %v2398_v16  ;;  %v2417_v23 = vand.u32 2147483647, %v2398_v16  ;;  %vm2413_vm15 = vweird.f32 %v2398_v16 }
 0x91d   : > { %v2420_v28 = vor.u32 1.1754944e-38, %v2419_v21  ;;  %vm2418_vm4 = vcmp.eq.f32.partialorder %v2417_v23, 8.507059e+37  ;;  %v4954_v23 = vld [vmem:[%s7646_s10 + $0x1] ss:$0 sm:$0xff] }
 0x921   : > { %v5009_v17 = vpop.eup %5008 }
 0x922   : > { %v2409_v18 = vmul.f32 %v5009_v17, %v2398_v16  ;;  %vm2414_vm14 = vweird.f32 %v5009_v17 }
 0x923   : > { %vm2415_vm0 = vmor %vm2413_vm15, %vm2414_vm14 }
 0x924   : > { %v2410_v20 = vsub.f32 1.0, %v2409_v18 }
 0x926   : > { %v2411_v22 = vmul.f32 %v5009_v17, %v2410_v20  ;;  %v2401_v24 = vpop.xlane.xlu1 %2400 }
 0x927   : > { %5010 = vrcp.f32 %v2401_v24  ;;  %v2404_v25 = vpop.xlane.xlu2 %2403  ;;  %v2434_v37 = vand.u32 2147483648, %v2401_v24  ;;  %v2432_v41 = vand.u32 2147483647, %v2401_v24  ;;  %vm2428_vm7 = vweird.f32 %v2401_v24 }
 0x928   : > { %v2412_v27 = vadd.f32 %v5009_v17, %v2411_v22  ;;  %5012 = vrcp.f32 %v2404_v25  ;;  %v2449_v42 = vand.u32 2147483648, %v2404_v25  ;;  %v2447_v43 = vand.u32 2147483647, %v2404_v25 }
 0x929   : > { %v2435_v46 = vor.u32 1.1754944e-38, %v2434_v37  ;;  %vm2443_vm9 = vweird.f32 %v2404_v25  ;;  %vm2433_vm10 = vcmp.eq.f32.partialorder %v2432_v41, 8.507059e+37  ;;  %v4544_v37 = vld [vmem:[%s7649_s13 + $0x1c0] sm:$0xff]  ;;  %v4547_v41 = vld [vmem:[%s7649_s13 + $0x1d8] sm:$0xff] }
 0x92a   : > { %v2416_v29 = vsel %vm2415_vm0, %v5009_v17, %v2412_v27  ;;  %v2450_v49 = vor.u32 1.1754944e-38, %v2449_v42  ;;  %vm2448_vm12 = vcmp.eq.f32.partialorder %v2447_v43, 8.507059e+37  ;;  %v4540_v42 = vld [vmem:[%s7649_s13 + $0x1a0] sm:$0xff]  ;;  %v4542_v43 = vld [vmem:[%s7649_s13 + $0x1b0] sm:$0xff] }
 0x92b   : > { %v2421_v30 = vsel %vm2418_vm4, %v2420_v28, %v2416_v29 }
 0x92c   : > { %v2422_v31 = vmul.f32 %v5001_v61, %v2421_v30 }
 0x92d   : > { %v5011_v32 = vpop.eup %5010 }
 0x92e   : > { %v5013_v33 = vpop.eup %5012  ;;  %v2424_v34 = vmul.f32 %v5011_v32, %v2401_v24  ;;  %v2407_v35 = vpop.xlane.xlu1 %2406  ;;  %4501 = vmatmul.msk.f32.vlgmr.msrb.gmra.mxu1 %vm1220_vm3, %v2422_v31  ;;  %vm2429_vm5 = vweird.f32 %v5011_v32 }
 0x92f   : > { %v2439_v36 = vmul.f32 %v5013_v33, %v2404_v25  ;;  %5014 = vrcp.f32 %v2407_v35  ;;  %vm2444_vm6 = vweird.f32 %v5013_v33  ;;  %vm2430_vm8 = vmor %vm2428_vm7, %vm2429_vm5  ;;  %v2464_v56 = vand.u32 2147483648, %v2407_v35 }
 0x930   : > { %v2425_v3 = vsub.f32 1.0, %v2424_v34  ;;  %vm2445_vm11 = vmor %vm2443_vm9, %vm2444_vm6  ;;  %v2462_v59 = vand.u32 2147483647, %v2407_v35  ;;  %vm2458_vm14 = vweird.f32 %v2407_v35 }
 0x931   : > { %v2440_v38 = vsub.f32 1.0, %v2439_v36  ;;  %v2465_v61 = vor.u32 1.1754944e-38, %v2464_v56  ;;  %v4550_v36 = vld [vmem:[%s7649_s13 + $0x1f0] sm:$0xff]  ;;  %v4531_v56 = vld [vmem:[%s7649_s13 + $0x158] sm:$0xff] }
 0x932   : > { %v2426_v39 = vmul.f32 %v5011_v32, %v2425_v3  ;;  %vm2463_vm0 = vcmp.eq.f32.partialorder %v2462_v59, 8.507059e+37  ;;  %v4551_v3 = vld [vmem:[%s7649_s13 + $0x1f8] sm:$0xff]  ;;  %v4526_v59 = vld [vmem:[%s7649_s13 + $0x130] sm:$0xff] }
 0x933   : > { %v2441_v26 = vmul.f32 %v5013_v33, %v2440_v38  ;;  %v4545_v38 = vld [vmem:[%s7649_s13 + $0x1c8] sm:$0xff] }
 0x934   : > { %v2427_v44 = vadd.f32 %v5011_v32, %v2426_v39  ;;  %v4546_v39 = vld [vmem:[%s7649_s13 + $0x1d0] sm:$0xff] }
 0x935   : > { %v5015_v45 = vpop.eup %5014  ;;  %v2442_v47 = vadd.f32 %v5013_v33, %v2441_v26  ;;  %v4541_v26 = vld [vmem:[%s7649_s13 + $0x1a8] sm:$0xff] }
 0x936   : > { %v2431_v48 = vsel %vm2430_vm8, %v5011_v32, %v2427_v44  ;;  %v2454_v50 = vmul.f32 %v5015_v45, %v2407_v35  ;;  %vm2459_vm13 = vweird.f32 %v5015_v45  ;;  %v4548_v35 = vld [vmem:[%s7649_s13 + $0x1e0] sm:$0xff]  ;;  %v4543_v44 = vld [vmem:[%s7649_s13 + $0x1b8] sm:$0xff] }
 0x937   : > { %v2436_v51 = vsel %vm2433_vm10, %v2435_v46, %v2431_v48  ;;  %v2446_v52 = vsel %vm2445_vm11, %v5013_v33, %v2442_v47  ;;  %vm2460_vm15 = vmor %vm2458_vm14, %vm2459_vm13  ;;  %2764 = vmatpush.msrb.mxu1 %v4548_v35  ;;  %v4537_v46 = vld [vmem:[%s7649_s13 + $0x188] sm:$0xff]  ;;  %v4538_v47 = vld [vmem:[%s7649_s13 + $0x190] sm:$0xff] }
 0x938   : > { %v2451_v53 = vsel %vm2448_vm12, %v2450_v49, %v2446_v52  ;;  %v2455_v54 = vsub.f32 1.0, %v2454_v50  ;;  %v2437_v55 = vmul.f32 %v6421_v9, %v2436_v51  ;;  %v4511_v9 = vld [vmem:[%s7645_s9 + $0x70] sm:$0xff]  ;;  %v4539_v48 = vld [vmem:[%s7649_s13 + $0x198] sm:$0xff]  ;;  %v4532_v49 = vld [vmem:[%s7649_s13 + $0x160] sm:$0xff] }
 0x939   : > { %v2452_v57 = vmul.f32 %v6423_v11, %v2451_v53  ;;  %2656 = vmatpush.msra.mxu0 %v4511_v9  ;;  %2765 = vmatpush.msrb.mxu1 %v4544_v37  ;;  %v4533_v50 = vld [vmem:[%s7649_s13 + $0x168] sm:$0xff]  ;;  %v4534_v51 = vld [vmem:[%s7649_s13 + $0x170] sm:$0xff]  ;;  %v4535_v52 = vld [vmem:[%s7649_s13 + $0x178] sm:$0xff] }
 0x93a   : > { %v2456_v58 = vmul.f32 %v5015_v45, %v2455_v54  ;;  %4502 = vmatmul.msk.f32.vlgmr.msrb.gmra.mxu2 %vm1220_vm3, %v2437_v55  ;;  %v4528_v53 = vld [vmem:[%s7649_s13 + $0x140] sm:$0xff]  ;;  %v4529_v54 = vld [vmem:[%s7649_s13 + $0x148] sm:$0xff]  ;;  %v4530_v55 = vld [vmem:[%s7649_s13 + $0x150] sm:$0xff] }
 0x93b   : > { %4503 = vmatmul.msk.f32.vlgmr.msra.gmra.mxu3 %vm1220_vm3, %v2452_v57  ;;  %2766 = vmatpush.msrb.mxu1 %v4540_v42  ;;  %v4524_v57 = vld [vmem:[%s7649_s13 + $0x120] sm:$0xff]  ;;  %v4604_v9 = vld [vmem:[%s7651_s15 + $0x378] sm:$0xff]  ;;  %v4582_v35 = vld [vmem:[%s7651_s15 + $0x2c8] sm:$0xff] }
 0x93c   : > { %v2457_v60 = vadd.f32 %v5015_v45, %v2456_v58  ;;  %2804 = vmatpush.msra.mxu3 %v4550_v36  ;;  %v4525_v58 = vld [vmem:[%s7649_s13 + $0x128] sm:$0xff]  ;;  %v4613_v37 = vld [vmem:[%s7651_s15 + $0x3c0] sm:$0xff]  ;;  %v4564_v42 = vld [vmem:[%s7651_s15 + $0x238] sm:$0xff] }
 0x93e   : > { %v2461_v62 = vsel %vm2460_vm15, %v5015_v45, %v2457_v60  ;;  %2805 = vmatpush.msra.mxu3 %v4546_v39  ;;  %v4536_v45 = vld [vmem:[%s7649_s13 + $0x180] sm:$0xff]  ;;  %v4527_v60 = vld [vmem:[%s7649_s13 + $0x138] sm:$0xff] }
 0x93f   : > { %v2466_v63 = vsel %vm2463_vm0, %v2465_v61, %v2461_v62  ;;  %2767 = vmatpush.msrb.mxu1 %v4536_v45  ;;  %v4520_v61 = vld [vmem:[%s7649_s13 + $0x100] sm:$0xff]  ;;  %v4521_v62 = vld [vmem:[%s7649_s13 + $0x108] sm:$0xff] }
 0x940   : > { %v2467_v1 = vmul.f32 %v6429_v14, %v2466_v63  ;;  %2806 = vmatpush.msra.mxu3 %v4542_v43  ;;  %v4522_v63 = vld [vmem:[%s7649_s13 + $0x110] sm:$0xff]  ;;  %v4597_v39 = vld [vmem:[%s7651_s15 + $0x340] sm:$0xff]  ;;  %v4580_v43 = vld [vmem:[%s7651_s15 + $0x2b8] sm:$0xff] }
 0x941   : > { %2768 = vmatpush.msrb.mxu1 %v4532_v49  ;;  %v4595_v49 = vld [vmem:[%s7651_s15 + $0x330] sm:$0xff] }
 0x942   : > { %4504 = vmatmul.msk.f32.vlgmr.msrb.gmra.mxu0 %vm1220_vm3, %v2467_v1  ;;  %2807 = vmatpush.msra.mxu3 %v4538_v47  ;;  %v4523_v1 = vld [vmem:[%s7649_s13 + $0x118] sm:$0xff]  ;;  %v4611_v47 = vld [vmem:[%s7651_s15 + $0x3b0] sm:$0xff] }
 0x943   : > { %2824 = vmatpush.msrb.mxu0 %v4551_v3  ;;  %2769 = vmatpush.msrb.mxu1 %v4528_v53  ;;  %v4565_v3 = vld [vmem:[%s7651_s15 + $0x240] sm:$0xff] }
 0x944   : > { %2808 = vmatpush.msra.mxu3 %v4534_v51  ;;  %v4562_v51 = vld [vmem:[%s7651_s15 + $0x228] sm:$0xff] }
 0x945   : > { %2825 = vmatpush.msrb.mxu0 %v4547_v41  ;;  %2770 = vmatpush.msrb.mxu1 %v4524_v57 }
 0x946   : > { %2809 = vmatpush.msra.mxu3 %v4530_v55  ;;  %v4609_v55 = vld [vmem:[%s7651_s15 + $0x3a0] sm:$0xff] }
 0x947   : > { %2826 = vmatpush.msrb.mxu0 %v4543_v44  ;;  %2771 = vmatpush.msrb.mxu1 %v4520_v61  ;;  %v4596_v44 = vld [vmem:[%s7651_s15 + $0x338] sm:$0xff]  ;;  %v4956_v61 = vld [vmem:[%s7648_s12 + $0x1] ss:$0 sm:$0xff] }
 0x948   : > { %2810 = vmatpush.msra.mxu3 %v4526_v59  ;;  %v4608_v59 = vld [vmem:[%s7651_s15 + $0x398] sm:$0xff] }
 0x949   : > { %2827 = vmatpush.msrb.mxu0 %v4539_v48  ;;  %v4579_v48 = vld [vmem:[%s7651_s15 + $0x2b0] sm:$0xff] }
 0x94a   : > { %2811 = vmatpush.msra.mxu3 %v4522_v63 }
 0x94b   : > { %2828 = vmatpush.msrb.mxu0 %v4535_v52  ;;  %v4610_v52 = vld [vmem:[%s7651_s15 + $0x3a8] sm:$0xff] }
 0x94d   : > { %2829 = vmatpush.msrb.mxu0 %v4531_v56  ;;  %v4955_v56 = vld [vmem:[%s7647_s11 + $0x1] ss:$0 sm:$0xff] }
 0x94f   : > { %2830 = vmatpush.msrb.mxu0 %v4527_v60 }
 0x951   : > { %2831 = vmatpush.msrb.mxu0 %v4523_v1  ;;  %v4578_v1 = vld [vmem:[%s7651_s15 + $0x2a8] sm:$0xff] }
 0x9ab   : > { %v2488_v10 = vpop.f32.mrf.mxu1 }
 0x9ac   : > { %4513 = vmatmul.msk.f32.vlgmr.msra.gmra.mxu1 %vm1111_vm2, %v2488_v10 }
 0x9ad   : > { %2910 = vmatpush.msra.mxu1 %v4572_v2  ;;  %v4594_v2 = vld [vmem:[%s7651_s15 + $0x328] sm:$0xff] }
 0x9af   : > { %2911 = vmatpush.msra.mxu1 %v4571_v4  ;;  %v4558_v4 = vld [vmem:[%s7651_s15 + $0x208] sm:$0xff] }
 0x9bd   : > { %v2511_v11 = vpop.f32.mrf.mxu2 }
 0x9be   : > { %v2534_v12 = vpop.f32.mrf.mxu3  ;;  %4514 = vmatmul.msk.f32.vlgmr.msra.gmra.mxu2 %vm1111_vm2, %v2511_v11  ;;  %v4587_v11 = vld [vmem:[%s7651_s15 + $0x2f0] sm:$0xff] }
 0x9bf   : > { %4515 = vmatmul.msk.f32.vlgmr.msrb.gmra.mxu3 %vm1111_vm2, %v2534_v12  ;;  %v2557_v13 = vpop.f32.mrf.mxu0  ;;  %v4570_v12 = vld [vmem:[%s7651_s15 + $0x268] sm:$0xff] }
 0x9c0   : > { %4516 = vmatmul.msk.f32.vlgmr.msra.gmra.mxu0 %vm1111_vm2, %v2557_v13  ;;  %v4618_v13 = vld [vmem:[%s7651_s15 + $0x3e8] sm:$0xff]  ;;  %2950 = vmatpush.msrb.mxu3 %v4604_v9  ;;  %v4557_v9 = vld [vmem:[%s7651_s15 + $0x200] sm:$0xff] }
 0x9c1   : > { %2970 = vmatpush.msra.mxu0 %v4620_v8  ;;  %2912 = vmatpush.msra.mxu1 %v4570_v12  ;;  %v4607_v8 = vld [vmem:[%s7651_s15 + $0x390] sm:$0xff]  ;;  %v4605_v12 = vld [vmem:[%s7651_s15 + $0x380] sm:$0xff] }
 0x9c3   : > { %2971 = vmatpush.msra.mxu0 %v4619_v6  ;;  %v4593_v6 = vld [vmem:[%s7651_s15 + $0x320] sm:$0xff] }
 0x9c5   : > { %2972 = vmatpush.msra.mxu0 %v4618_v13  ;;  %v4575_v13 = vld [vmem:[%s7651_s15 + $0x290] sm:$0xff] }
 0xa29   : > { %v2589_v14 = vpop.f32.mrf.mxu1 }
 0xa2a   : > { %v2661_v16 = vsel %vm771_vm1, %v2589_v14, 0.0  ;;  %v4603_v14 = vld [vmem:[%s7651_s15 + $0x370] sm:$0xff] }
 0xa2b   : > { %2951 = vmatpush.msrb.mxu3 %v4603_v14  ;;  %v4591_v14 = vld [vmem:[%s7651_s15 + $0x310] sm:$0xff] }
 0xa3d   : > { %v2658_v19 = vpop.f32.mrf.mxu0 }
 0xa3e   : > { %v2666_v24 = vsel %vm771_vm1, %v2658_v19, 0.0  ;;  %v4617_v19 = vld [vmem:[%s7651_s15 + $0x3e0] sm:$0xff] }
 0xa3f   : > { %2973 = vmatpush.msra.mxu0 %v4617_v19  ;;  %v4552_v19 = vld [vmem:[%s7650_s14 + $0x4] sm:$0xf] }
 0xa41   : > { %v2612_v15 = vpop.f32.mrf.mxu2 }
 0xa42   : > { %v2662_v17 = vsel %vm771_vm1, %v2612_v15, 0.0  ;;  %v2635_v18 = vpop.f32.mrf.mxu3 }
 0xa43   : > { %v2663_v20 = vadd.f32 %v2662_v17, %v2661_v16  ;;  %v2664_v21 = vsel %vm771_vm1, %v2635_v18, 0.0  ;;  %v4586_v16 = vld [vmem:[%s7651_s15 + $0x2e8] sm:$0xff]  ;;  %v4569_v18 = vld [vmem:[%s7651_s15 + $0x260] sm:$0xff] }
 0xa44   : > { %v4602_v17 = vld [vmem:[%s7651_s15 + $0x368] sm:$0xff]  ;;  %2913 = vmatpush.msra.mxu1 %v4569_v18  ;;  %v4589_v18 = vld [vmem:[%s7651_s15 + $0x300] sm:$0xff] }
 0xa45   : > { %v2665_v22 = vadd.f32 %v2664_v21, %v2663_v20  ;;  %v4585_v20 = vld [vmem:[%s7651_s15 + $0x2e0] sm:$0xff]  ;;  %2952 = vmatpush.msrb.mxu3 %v4602_v17 }
 0xa46   : > { %v4601_v21 = vld [vmem:[%s7651_s15 + $0x360] sm:$0xff] }
 0xa47   : > { %v2667_v25 = vadd.f32 %v2666_v24, %v2665_v22  ;;  %v4568_v22 = vld [vmem:[%s7651_s15 + $0x258] sm:$0xff]  ;;  %2953 = vmatpush.msrb.mxu3 %v4601_v21  ;;  %v4573_v17 = vld [vmem:[%s7651_s15 + $0x280] sm:$0xff]  ;;  %v2748_v21 = vperm.slane %v4552_v19, 3 }
 0xa48   : > { %v4584_v24 = vld [vmem:[%s7651_s15 + $0x2d8] sm:$0xff]  ;;  %2914 = vmatpush.msra.mxu1 %v4568_v22 }
 0xa49   : > { %v2673_v27 = vadd.f32 %v4954_v23, %v2667_v25  ;;  %v4616_v23 = vld [vmem:[%s7651_s15 + $0x3d8] sm:$0xff] }
 0xa4a   : > { %v4600_v25 = vld [vmem:[%s7651_s15 + $0x358] sm:$0xff]  ;;  %2974 = vmatpush.msra.mxu0 %v4616_v23 }
 0xa4b   : > { %v2674_v28 = vadd.f32 %v2673_v27, %v6250_v40  ;;  %v4549_v40 = vld [vmem:[%s7649_s13 + $0x1e8] sm:$0xff]  ;;  %v4567_v27 = vld [vmem:[%s7651_s15 + $0x250] sm:$0xff]  ;;  %2954 = vmatpush.msrb.mxu3 %v4600_v25 }
 0xa4c   : > { %2784 = vmatpush.msrb.mxu2 %v4549_v40  ;;  %2915 = vmatpush.msra.mxu1 %v4567_v27  ;;  %v4598_v40 = vld [vmem:[%s7651_s15 + $0x348] sm:$0xff] }
 0xa4d   : > { %v2679_v29 = vsel %vm771_vm1, %v2674_v28, 0.0 }
 0xa4e   : > { %2680 = vadd.xlane.f32.xlu2 %v2679_v29  ;;  %2785 = vmatpush.msrb.mxu2 %v4545_v38  ;;  %v4583_v29 = vld [vmem:[%s7651_s15 + $0x2d0] sm:$0xff]  ;;  %v4581_v38 = vld [vmem:[%s7651_s15 + $0x2c0] sm:$0xff] }
 0xa50   : > { %2786 = vmatpush.msrb.mxu2 %v4541_v26  ;;  %v4612_v26 = vld [vmem:[%s7651_s15 + $0x3b8] sm:$0xff] }
 0xa52   : > { %2787 = vmatpush.msrb.mxu2 %v4537_v46  ;;  %v4563_v46 = vld [vmem:[%s7651_s15 + $0x230] sm:$0xff] }
 0xa54   : > { %2788 = vmatpush.msrb.mxu2 %v4533_v50 }
 0xa56   : > { %2789 = vmatpush.msrb.mxu2 %v4529_v54  ;;  %v4561_v54 = vld [vmem:[%s7651_s15 + $0x220] sm:$0xff] }
 0xa58   : > { %2790 = vmatpush.msrb.mxu2 %v4525_v58  ;;  %v4560_v58 = vld [vmem:[%s7651_s15 + $0x218] sm:$0xff] }
 0xa5a   : > { %2791 = vmatpush.msrb.mxu2 %v4521_v62 }
 0xa5c   : > { %2930 = vmatpush.msra.mxu2 %v4588_v7  ;;  %v4606_v7 = vld [vmem:[%s7651_s15 + $0x388] sm:$0xff] }
 0xa5e   : > { %2931 = vmatpush.msra.mxu2 %v4587_v11  ;;  %v4592_v11 = vld [vmem:[%s7651_s15 + $0x318] sm:$0xff] }
 0xa60   : > { %2932 = vmatpush.msra.mxu2 %v4586_v16  ;;  %v4590_v16 = vld [vmem:[%s7651_s15 + $0x308] sm:$0xff] }
 0xa62   : > { %2933 = vmatpush.msra.mxu2 %v4585_v20  ;;  %v2745_v20 = vperm.slane %v4552_v19, 0 }
 0xa64   : > { %2934 = vmatpush.msra.mxu2 %v4584_v24 }
 0xa66   : > { %2935 = vmatpush.msra.mxu2 %v4583_v29 }
 0xa68   : > { %2936 = vmatpush.msra.mxu2 %v4582_v35 }
 0xa6a   : > { %2937 = vmatpush.msra.mxu2 %v4581_v38 }
 0xa6c   : > { %2938 = vmatpush.msra.mxu2 %v4580_v43 }
 0xa6e   : > { %2939 = vmatpush.msra.mxu2 %v4579_v48  ;;  %v4639_v48 = vld [vmem:[%s7693_s6 + $0x278] sm:$0xff] }
 0xa70   : > { %2940 = vmatpush.msra.mxu2 %v4578_v1  ;;  %v4636_v1 = vld [vmem:[%s7693_s6 + $0x260] sm:$0xff] }
 0xac1   : > { %v2681_v30 = vpop.xlane.xlu2 %2680 }
 0xac2   : > { %v2682_v31 = vmul.f32 %v2681_v30, %v5717_v0  ;;  %v4599_v30 = vld [vmem:[%s7651_s15 + $0x350] sm:$0xff] }
 0xac3   : > { %2955 = vmatpush.msrb.mxu3 %v4599_v30  ;;  %v2747_v30 = vperm.slane %v4552_v19, 2 }
 0xac4   : > { %v6478_v32 = vsub.f32 %v2674_v28, %v2682_v31  ;;  %v4615_v28 = vld [vmem:[%s7651_s15 + $0x3d0] sm:$0xff]  ;;  %v4566_v31 = vld [vmem:[%s7651_s15 + $0x248] sm:$0xff] }
 0xac5   : > { %2975 = vmatpush.msra.mxu0 %v4615_v28  ;;  %2916 = vmatpush.msra.mxu1 %v4566_v31  ;;  %v2746_v28 = vperm.slane %v4552_v19, 1  ;;  %v4640_v19 = vld [vmem:[%s7693_s6 + $0x280] sm:$0xff] }
 0xac6   : > { %v2684_v33 = vmul.f32 %v6478_v32, %v6478_v32  ;;  %2956 = vmatpush.msrb.mxu3 %v4598_v40 }
 0xac7   : > { %2917 = vmatpush.msra.mxu1 %v4565_v3  ;;  %v4957_v3 = vld [vmem:[%s7652_s16 + $0x1] ss:$0 sm:$0xff] }
 0xac8   : > { %v2685_v34 = vsel %vm771_vm1, %v2684_v33, 0.0  ;;  %v4614_v33 = vld [vmem:[%s7651_s15 + $0x3c8] sm:$0xff]  ;;  %2957 = vmatpush.msrb.mxu3 %v4597_v39 }
 0xac9   : > { %2686 = vadd.xlane.f32.xlu0 %v2685_v34  ;;  %2976 = vmatpush.msra.mxu0 %v4614_v33 }
 0xaca   : > { %2918 = vmatpush.msra.mxu1 %v4564_v42  ;;  %2958 = vmatpush.msrb.mxu3 %v4596_v44 }
 0xacb   : > { %2977 = vmatpush.msra.mxu0 %v4613_v37 }
 0xacc   : > { %2919 = vmatpush.msra.mxu1 %v4563_v46  ;;  %2959 = vmatpush.msrb.mxu3 %v4595_v49  ;;  %v4647_v49 = vld [vmem:[%s7693_s6 + $0x2b8] sm:$0xff] }
 0xacd   : > { %2978 = vmatpush.msra.mxu0 %v4612_v26 }
 0xace   : > { %2920 = vmatpush.msra.mxu1 %v4562_v51  ;;  %2960 = vmatpush.msrb.mxu3 %v4594_v2  ;;  %v4644_v2 = vld [vmem:[%s7693_s6 + $0x2a0] sm:$0xff] }
 0xacf   : > { %2979 = vmatpush.msra.mxu0 %v4611_v47  ;;  %v4631_v47 = vld [vmem:[%s7693_s6 + $0x238] sm:$0xff] }
 0xad0   : > { %2921 = vmatpush.msra.mxu1 %v4561_v54  ;;  %2961 = vmatpush.msrb.mxu3 %v4593_v6  ;;  %v4643_v6 = vld [vmem:[%s7693_s6 + $0x298] sm:$0xff] }
 0xad1   : > { %2980 = vmatpush.msra.mxu0 %v4610_v52 }
 0xad2   : > { %2922 = vmatpush.msra.mxu1 %v4560_v58  ;;  %2962 = vmatpush.msrb.mxu3 %v4592_v11  ;;  %v4646_v58 = vld [vmem:[%s7693_s6 + $0x2b0] sm:$0xff] }
 0xad3   : > { %2981 = vmatpush.msra.mxu0 %v4609_v55  ;;  %v4642_v11 = vld [vmem:[%s7693_s6 + $0x290] sm:$0xff] }
 0xad4   : > { %2963 = vmatpush.msrb.mxu3 %v4591_v14  ;;  %v4633_v14 = vld [vmem:[%s7693_s6 + $0x248] sm:$0xff] }
 0xad5   : > { %2982 = vmatpush.msra.mxu0 %v4608_v59  ;;  %v4654_v59 = vld [vmem:[%s7693_s6 + $0x2f0] sm:$0xff] }
 0xad6   : > { %2964 = vmatpush.msrb.mxu3 %v4590_v16  ;;  %v4649_v16 = vld [vmem:[%s7693_s6 + $0x2c8] sm:$0xff] }
 0xad7   : > { %2983 = vmatpush.msra.mxu0 %v4607_v8  ;;  %v4652_v8 = vld [vmem:[%s7693_s6 + $0x2e0] sm:$0xff] }
 0xad8   : > { %2965 = vmatpush.msrb.mxu3 %v4589_v18  ;;  %v4632_v18 = vld [vmem:[%s7693_s6 + $0x240] sm:$0xff] }
 0xad9   : > { %2984 = vmatpush.msra.mxu0 %v4606_v7  ;;  %v4651_v7 = vld [vmem:[%s7693_s6 + $0x2d8] sm:$0xff] }
 0xadb   : > { %2985 = vmatpush.msra.mxu0 %v4605_v12  ;;  %v4650_v12 = vld [vmem:[%s7693_s6 + $0x2d0] sm:$0xff] }
 0xb3c   : > { %v2687_v5 = vpop.xlane.xlu0 %2686 }
 0xb3d   : > { %v2688_v10 = vmul.f32 %v2687_v5, %v5717_v0  ;;  %v4577_v5 = vld [vmem:[%s7651_s15 + $0x2a0] sm:$0xff] }
 0xb3e   : > { %2941 = vmatpush.msra.mxu2 %v4577_v5  ;;  %v4635_v5 = vld [vmem:[%s7693_s6 + $0x258] sm:$0xff] }
 0xb3f   : > { %v6610_v15 = vadd.f32 1e-05, %v2688_v10  ;;  %v4576_v10 = vld [vmem:[%s7651_s15 + $0x298] sm:$0xff] }
 0xb40   : > { %2942 = vmatpush.msra.mxu2 %v4576_v10  ;;  %v4634_v10 = vld [vmem:[%s7693_s6 + $0x250] sm:$0xff] }
 0xb41   : > { %5016 = vrsqrt.f32 %v6610_v15  ;;  %vm2696_vm5 = vweird.f32 %v6610_v15 }
 0xb42   : > { %2943 = vmatpush.msra.mxu2 %v4575_v13  ;;  %v4625_v13 = vld [vmem:[%s7693_s6 + $0x208] sm:$0xff] }
 0xb47   : > { %v5017_v34 = vpop.eup %5016 }
 0xb48   : > { %v2691_v36 = vmul.f32 %v5017_v34, %v6610_v15  ;;  %vm2697_vm4 = vweird.f32 %v5017_v34  ;;  %v4574_v15 = vld [vmem:[%s7651_s15 + $0x288] sm:$0xff] }
 0xb49   : > { %vm2698_vm6 = vmor %vm2696_vm5, %vm2697_vm4  ;;  %2944 = vmatpush.msra.mxu2 %v4574_v15  ;;  %v4641_v15 = vld [vmem:[%s7693_s6 + $0x288] sm:$0xff] }
 0xb4a   : > { %v2692_v41 = vmul.f32 %v5017_v34, %v2691_v36 }
 0xb4b   : > { %2945 = vmatpush.msra.mxu2 %v4573_v17  ;;  %v4624_v17 = vld [vmem:[%s7693_s6 + $0x200] sm:$0xff] }
 0xb4c   : > { %v2693_v45 = vmul.f32 0.5, %v2692_v41 }
 0xb4e   : > { %v2694_v50 = vsub.f32 1.5, %v2693_v45 }
 0xb50   : > { %v2695_v53 = vmul.f32 %v5017_v34, %v2694_v50  ;;  %v4655_v50 = vld [vmem:[%s7693_s6 + $0x2f8] sm:$0xff] }
 0xb52   : > { %v2699_v57 = vsel %vm2698_vm6, %v5017_v34, %v2695_v53 }
 0xb53   : > { %v2700_v60 = vmul.f32 %v2699_v57, %v6478_v32  ;;  %v4559_v32 = vld [vmem:[%s7651_s15 + $0x210] sm:$0xff] }
 0xb54   : > { %2923 = vmatpush.msra.mxu1 %v4559_v32  ;;  %v4638_v57 = vld [vmem:[%s7693_s6 + $0x270] sm:$0xff]  ;;  %v4628_v32 = vld [vmem:[%s7693_s6 + $0x220] sm:$0xff] }
 0xb55   : > { %v2704_v62 = vmul.f32 %v4955_v56, %v2700_v60  ;;  %v4630_v56 = vld [vmem:[%s7693_s6 + $0x230] sm:$0xff]  ;;  %v4629_v60 = vld [vmem:[%s7693_s6 + $0x228] sm:$0xff] }
 0xb56   : > { %2924 = vmatpush.msra.mxu1 %v4558_v4  ;;  %v4627_v4 = vld [vmem:[%s7693_s6 + $0x218] sm:$0xff] }
 0xb57   : > { %v6730_v63 = vadd.f32 %v4956_v61, %v2704_v62  ;;  %v4637_v61 = vld [vmem:[%s7693_s6 + $0x268] sm:$0xff] }
 0xb58   : > { %2925 = vmatpush.msra.mxu1 %v4557_v9  ;;  %v4645_v62 = vld [vmem:[%s7693_s6 + $0x2a8] sm:$0xff]  ;;  %v4626_v9 = vld [vmem:[%s7693_s6 + $0x210] sm:$0xff] }
 0xb59   : > { %4553 = vmatmul.msk.f32.vlgmr.msrb.gmra.mxu1 %vm771_vm1, %v6730_v63  ;;  %4554 = vmatmul.msk.f32.vlgmr.msrb.gmra.mxu2 %vm771_vm1, %v6730_v63 }
 0xb5a   : > { %4555 = vmatmul.msk.f32.vlgmr.msra.gmra.mxu3 %vm771_vm1, %v6730_v63  ;;  %4556 = vmatmul.msk.f32.vlgmr.msrb.gmra.mxu0 %vm771_vm1, %v6730_v63 }
 0xb5b   : > { %3086 = vmatpush.msrb.mxu1 %v4631_v47  ;;  %3106 = vmatpush.msrb.mxu2 %v4639_v48  ;;  %v4681_v47 = vld [vmem:[%s7696_s23 + $0x288] sm:$0xff] }
 0xb5c   : > { %3126 = vmatpush.msra.mxu3 %v4647_v49  ;;  %3146 = vmatpush.msrb.mxu0 %v4655_v50  ;;  %v4689_v48 = vld [vmem:[%s7696_s23 + $0x2c8] sm:$0xff]  ;;  %v4664_v49 = vld [vmem:[%s7696_s23 + $0x200] sm:$0xff] }
 0xb5d   : > { %3087 = vmatpush.msrb.mxu1 %v4630_v56  ;;  %3107 = vmatpush.msrb.mxu2 %v4638_v57  ;;  %v4672_v50 = vld [vmem:[%s7696_s23 + $0x240] sm:$0xff] }
 0xb5e   : > { %3127 = vmatpush.msra.mxu3 %v4646_v58  ;;  %3147 = vmatpush.msrb.mxu0 %v4654_v59 }
 0xb5f   : > { %3088 = vmatpush.msrb.mxu1 %v4629_v60  ;;  %3108 = vmatpush.msrb.mxu2 %v4637_v61 }
 0xb60   : > { %3128 = vmatpush.msra.mxu3 %v4645_v62 }
 0xb61   : > { %3089 = vmatpush.msrb.mxu1 %v4628_v32  ;;  %3109 = vmatpush.msrb.mxu2 %v4636_v1  ;;  %v4959_v1 = vld [vmem:[%s7654_s18 + $0x1] ss:$0 sm:$0xff] }
 0xb62   : > { %3129 = vmatpush.msra.mxu3 %v4644_v2 }
 0xb63   : > { %3090 = vmatpush.msrb.mxu1 %v4627_v4  ;;  %3110 = vmatpush.msrb.mxu2 %v4635_v5  ;;  %v4711_v5 = vld [vmem:[%s7698_s7 + $0x238] sm:$0xff] }
 0xb64   : > { %3130 = vmatpush.msra.mxu3 %v4643_v6  ;;  %v4719_v6 = vld [vmem:[%s7698_s7 + $0x278] sm:$0xff] }
 0xb65   : > { %3091 = vmatpush.msrb.mxu1 %v4626_v9  ;;  %3111 = vmatpush.msrb.mxu2 %v4634_v10  ;;  %v4710_v9 = vld [vmem:[%s7698_s7 + $0x230] sm:$0xff] }
 0xb66   : > { %3131 = vmatpush.msra.mxu3 %v4642_v11  ;;  %v4718_v10 = vld [vmem:[%s7698_s7 + $0x270] sm:$0xff] }
 0xb67   : > { %3092 = vmatpush.msrb.mxu1 %v4625_v13  ;;  %3112 = vmatpush.msrb.mxu2 %v4633_v14  ;;  %v4726_v11 = vld [vmem:[%s7698_s7 + $0x2b0] sm:$0xff]  ;;  %v4709_v13 = vld [vmem:[%s7698_s7 + $0x228] sm:$0xff] }
 0xb68   : > { %3132 = vmatpush.msra.mxu3 %v4641_v15  ;;  %v4717_v14 = vld [vmem:[%s7698_s7 + $0x268] sm:$0xff] }
 0xb69   : > { %3093 = vmatpush.msrb.mxu1 %v4624_v17  ;;  %3113 = vmatpush.msrb.mxu2 %v4632_v18  ;;  %v4725_v15 = vld [vmem:[%s7698_s7 + $0x2a8] sm:$0xff]  ;;  %v4708_v17 = vld [vmem:[%s7698_s7 + $0x220] sm:$0xff] }
 0xb6a   : > { %3133 = vmatpush.msra.mxu3 %v4640_v19  ;;  %v4716_v18 = vld [vmem:[%s7698_s7 + $0x260] sm:$0xff] }
 0xb6b   : > { %v4724_v19 = vld [vmem:[%s7698_s7 + $0x2a0] sm:$0xff] }
 0xbd6   : > { %v2773_v22 = vpop.f32.mrf.mxu1 }
 0xbd7   : > { %v2774_v23 = vadd.f32 %v2773_v22, %v2745_v20  ;;  %v2833_v24 = vpop.f32.mrf.mxu0  ;;  %v4648_v20 = vld [vmem:[%s7693_s6 + $0x2c0] sm:$0xff]  ;;  %v4679_v22 = vld [vmem:[%s7696_s23 + $0x278] sm:$0xff] }
 0xbd8   : > { %v2834_v25 = vadd.f32 %v2833_v24, %v2748_v21  ;;  %v4671_v21 = vld [vmem:[%s7696_s23 + $0x238] sm:$0xff] }
 0xbd9   : > { %v2836_v27 = vmax.f32 %v2774_v23, 0.0  ;;  %v4687_v23 = vld [vmem:[%s7696_s23 + $0x2b8] sm:$0xff] }
 0xbda   : > { %v2839_v29 = vmax.f32 %v2834_v25, 0.0  ;;  %v4695_v24 = vld [vmem:[%s7696_s23 + $0x2f8] sm:$0xff]  ;;  %v4670_v25 = vld [vmem:[%s7696_s23 + $0x230] sm:$0xff] }
 0xbdb   : > { %2926 = vmatmul.f32.vlgmr.msra.gmra.mxu1 %v2836_v27  ;;  %v4678_v27 = vld [vmem:[%s7696_s23 + $0x270] sm:$0xff] }
 0xbdc   : > { %2986 = vmatmul.f32.vlgmr.msra.gmra.mxu0 %v2839_v29  ;;  %v2793_v31 = vpop.f32.mrf.mxu2  ;;  %3216 = vmatpush.msra.mxu1 %v4671_v21  ;;  %v4694_v29 = vld [vmem:[%s7696_s23 + $0x2f0] sm:$0xff]  ;;  %v4707_v21 = vld [vmem:[%s7698_s7 + $0x218] sm:$0xff] }
 0xbdd   : > { %v2794_v33 = vadd.f32 %v2793_v31, %v2746_v28  ;;  %v2813_v34 = vpop.f32.mrf.mxu3  ;;  %v4686_v28 = vld [vmem:[%s7696_s23 + $0x2b0] sm:$0xff]  ;;  %v4677_v31 = vld [vmem:[%s7696_s23 + $0x268] sm:$0xff] }
 0xbde   : > { %v2814_v35 = vadd.f32 %v2813_v34, %v2747_v30  ;;  %3217 = vmatpush.msra.mxu1 %v4670_v25  ;;  %v4669_v30 = vld [vmem:[%s7696_s23 + $0x228] sm:$0xff]  ;;  %v4706_v25 = vld [vmem:[%s7698_s7 + $0x210] sm:$0xff] }
 0xbdf   : > { %v2837_v40 = vmax.f32 %v2794_v33, 0.0  ;;  %v4685_v33 = vld [vmem:[%s7696_s23 + $0x2a8] sm:$0xff] }
 0xbe0   : > { %v2838_v36 = vmax.f32 %v2814_v35, 0.0  ;;  %v4693_v34 = vld [vmem:[%s7696_s23 + $0x2e8] sm:$0xff]  ;;  %3218 = vmatpush.msra.mxu1 %v4669_v30  ;;  %v4668_v35 = vld [vmem:[%s7696_s23 + $0x220] sm:$0xff] }
 0xbe1   : > { %2946 = vmatmul.f32.vlgmr.msra.gmra.mxu2 %v2837_v40  ;;  %v4676_v40 = vld [vmem:[%s7696_s23 + $0x260] sm:$0xff]  ;;  %v4705_v30 = vld [vmem:[%s7698_s7 + $0x208] sm:$0xff] }
 0xbe2   : > { %2966 = vmatmul.f32.vlgmr.msrb.gmra.mxu3 %v2838_v36  ;;  %3236 = vmatpush.msra.mxu2 %v4679_v22  ;;  %v4684_v36 = vld [vmem:[%s7696_s23 + $0x2a0] sm:$0xff]  ;;  %v4715_v22 = vld [vmem:[%s7698_s7 + $0x258] sm:$0xff] }
 0xbe3   : > { %3256 = vmatpush.msrb.mxu3 %v4687_v23  ;;  %3219 = vmatpush.msra.mxu1 %v4668_v35  ;;  %v4723_v23 = vld [vmem:[%s7698_s7 + $0x298] sm:$0xff]  ;;  %v4704_v35 = vld [vmem:[%s7698_s7 + $0x200] sm:$0xff] }
 0xbe4   : > { %3237 = vmatpush.msra.mxu2 %v4678_v27  ;;  %v4714_v27 = vld [vmem:[%s7698_s7 + $0x250] sm:$0xff] }
 0xbe5   : > { %3257 = vmatpush.msrb.mxu3 %v4686_v28  ;;  %v4722_v28 = vld [vmem:[%s7698_s7 + $0x290] sm:$0xff] }
 0xbe6   : > { %3238 = vmatpush.msra.mxu2 %v4677_v31  ;;  %v4713_v31 = vld [vmem:[%s7698_s7 + $0x248] sm:$0xff] }
 0xbe7   : > { %3258 = vmatpush.msrb.mxu3 %v4685_v33  ;;  %v4721_v33 = vld [vmem:[%s7698_s7 + $0x288] sm:$0xff] }
 0xbe8   : > { %3239 = vmatpush.msra.mxu2 %v4676_v40  ;;  %v4712_v40 = vld [vmem:[%s7698_s7 + $0x240] sm:$0xff] }
 0xbe9   : > { %3259 = vmatpush.msrb.mxu3 %v4684_v36  ;;  %v4720_v36 = vld [vmem:[%s7698_s7 + $0x280] sm:$0xff] }
 0xc58   : > { %v2927_v37 = vpop.f32.mrf.mxu1 }
 0xc59   : > { %v2928_v38 = vadd.f32 %v4957_v3, %v2927_v37  ;;  %v2987_v43 = vpop.f32.mrf.mxu0  ;;  %v4692_v3 = vld [vmem:[%s7696_s23 + $0x2e0] sm:$0xff]  ;;  %v4667_v37 = vld [vmem:[%s7696_s23 + $0x218] sm:$0xff] }
 0xc5a   : > { %3220 = vmatpush.msra.mxu1 %v4667_v37 }
 0xc64   : > { %v2947_v39 = vpop.f32.mrf.mxu2 }
 0xc65   : > { %v2948_v41 = vadd.f32 %v2947_v39, %v2928_v38  ;;  %v2967_v42 = vpop.f32.mrf.mxu3  ;;  %v4675_v38 = vld [vmem:[%s7696_s23 + $0x258] sm:$0xff] }
 0xc66   : > { %v4683_v39 = vld [vmem:[%s7696_s23 + $0x298] sm:$0xff]  ;;  %3240 = vmatpush.msra.mxu2 %v4675_v38 }
 0xc67   : > { %v2968_v26 = vadd.f32 %v2967_v42, %v2948_v41  ;;  %v4691_v41 = vld [vmem:[%s7696_s23 + $0x2d8] sm:$0xff]  ;;  %v4666_v42 = vld [vmem:[%s7696_s23 + $0x210] sm:$0xff]  ;;  %3260 = vmatpush.msrb.mxu3 %v4683_v39 }
 0xc68   : > { %3221 = vmatpush.msra.mxu1 %v4666_v42  ;;  %v4964_v42 = vld [vmem:[%s7699_s3 + $0x8] ss:$0 sm:$0xff] }
 0xc69   : > { %v2988_v44 = vadd.f32 %v2987_v43, %v2968_v26  ;;  %v4674_v26 = vld [vmem:[%s7696_s23 + $0x250] sm:$0xff] }
 0xc6a   : > { %v4682_v43 = vld [vmem:[%s7696_s23 + $0x290] sm:$0xff]  ;;  %3241 = vmatpush.msra.mxu2 %v4674_v26  ;;  %v4965_v26 = vld [vmem:[%s7699_s3 + $0xb] ss:$0 sm:$0xff] }
 0xc6b   : > { %v2990_v45 = vadd.f32 %v2988_v44, %v6730_v63  ;;  %v4653_v63 = vld [vmem:[%s7693_s6 + $0x2e8] sm:$0xff]  ;;  %v4690_v44 = vld [vmem:[%s7696_s23 + $0x2d0] sm:$0xff]  ;;  %3261 = vmatpush.msrb.mxu3 %v4682_v43 }
 0xc6c   : > { %3148 = vmatpush.msrb.mxu0 %v4653_v63  ;;  %v4958_v63 = vld [vmem:[%s7653_s17 + $0x1] ss:$0 sm:$0xff]  ;;  %v4960_v43 = vld [vmem:[%s7700_s24 + $0x8] ss:$0 sm:$0xff] }
 0xc6d   : > { %v2995_v46 = vsel %vm771_vm1, %v2990_v45, 0.0  ;;  %3262 = vmatpush.msrb.mxu3 %v4681_v47 }
 0xc6e   : > { %2996 = vadd.xlane.f32.xlu1 %v2995_v46  ;;  %3149 = vmatpush.msrb.mxu0 %v4652_v8  ;;  %v4673_v46 = vld [vmem:[%s7696_s23 + $0x248] sm:$0xff] }
 0xc6f   : > { %3242 = vmatpush.msra.mxu2 %v4673_v46 }
 0xc70   : > { %3150 = vmatpush.msrb.mxu0 %v4651_v7  ;;  %v4735_v7 = vld [vmem:[%s7698_s7 + $0x2f8] sm:$0xff] }
 0xc71   : > { %3243 = vmatpush.msra.mxu2 %v4672_v50 }
 0xc72   : > { %3151 = vmatpush.msrb.mxu0 %v4650_v12  ;;  %v4734_v12 = vld [vmem:[%s7698_s7 + $0x2f0] sm:$0xff] }
 0xc74   : > { %3152 = vmatpush.msrb.mxu0 %v4649_v16  ;;  %v4733_v16 = vld [vmem:[%s7698_s7 + $0x2e8] sm:$0xff] }
 0xc76   : > { %3153 = vmatpush.msrb.mxu0 %v4648_v20  ;;  %v4732_v20 = vld [vmem:[%s7698_s7 + $0x2e0] sm:$0xff] }
 0xc78   : > { %3276 = vmatpush.msra.mxu0 %v4695_v24  ;;  %v4731_v24 = vld [vmem:[%s7698_s7 + $0x2d8] sm:$0xff] }
 0xc7a   : > { %3277 = vmatpush.msra.mxu0 %v4694_v29  ;;  %v4730_v29 = vld [vmem:[%s7698_s7 + $0x2d0] sm:$0xff] }
 0xc7c   : > { %3278 = vmatpush.msra.mxu0 %v4693_v34  ;;  %v4729_v34 = vld [vmem:[%s7698_s7 + $0x2c8] sm:$0xff] }
 0xc7e   : > { %3279 = vmatpush.msra.mxu0 %v4692_v3  ;;  %v4728_v3 = vld [vmem:[%s7698_s7 + $0x2c0] sm:$0xff] }
 0xc80   : > { %3280 = vmatpush.msra.mxu0 %v4691_v41 }
 0xc82   : > { %3281 = vmatpush.msra.mxu0 %v4690_v44 }
 0xc84   : > { %3282 = vmatpush.msra.mxu0 %v4689_v48 }
 0xce1   : > { %v2997_v51 = vpop.xlane.xlu1 %2996 }
 0xce2   : > { %v2998_v52 = vmul.f32 %v2997_v51, %v5717_v0  ;;  %v4680_v51 = vld [vmem:[%s7696_s23 + $0x280] sm:$0xff] }
 0xce3   : > { %3263 = vmatpush.msrb.mxu3 %v4680_v51  ;;  %v4967_v51 = vld [vmem:[%s7699_s3 + $0xa] ss:$0 sm:$0xff] }
 0xce4   : > { %v6815_v53 = vsub.f32 %v2990_v45, %v2998_v52  ;;  %v4665_v45 = vld [vmem:[%s7696_s23 + $0x208] sm:$0xff]  ;;  %v4688_v52 = vld [vmem:[%s7696_s23 + $0x2c0] sm:$0xff] }
 0xce5   : > { %3222 = vmatpush.msra.mxu1 %v4665_v45  ;;  %3283 = vmatpush.msra.mxu0 %v4688_v52  ;;  %v4961_v45 = vld [vmem:[%s7700_s24 + $0xb] ss:$0 sm:$0xff] }
 0xce6   : > { %v3000_v54 = vmul.f32 %v6815_v53, %v6815_v53 }
 0xce7   : > { %3223 = vmatpush.msra.mxu1 %v4664_v49  ;;  %v4966_v49 = vld [vmem:[%s7699_s3 + $0x9] ss:$0 sm:$0xff]  ;;  %s5058_s3 = scalar_lea.hbm %s5057_s27, 8 }
 0xce8   : > { %v3001_v55 = vsel %vm771_vm1, %v3000_v54, 0.0  ;;  %p5059_p11 = scmp.ne.s32.totalorder %s5057_s27, %s5058_s3  ;;  %p5064_p1 = scmp.lt.s32.totalorder %s5062_s20, %s5058_s3 }
 0xce9   : > { %3002 = vadd.xlane.f32.xlu2 %v3001_v55 }
 0xcea   : > { %p5060_p12 = pnand %p5059_p11, %p5265_p5  ;;  %p5065_p2 = por %p5064_p1, %p5063_p0 }
 0xcec   : > { %p5061_p13 = pneg %p5060_p12 }
 0xcee   : > { %p5066_p3 = pnand %p5065_p2, %p5061_p13 }
 0xd5c   : > { %v3003_v54 = vpop.xlane.xlu2 %3002 }
 0xd5d   : > { %v3004_v55 = vmul.f32 %v3003_v54, %v5717_v0  ;;  %v4962_v54 = vld [vmem:[%s7700_s24 + $0x9] ss:$0 sm:$0xff] }
 0xd5f   : > { %v3005_v56 = vadd.f32 1e-05, %v3004_v55 }
 0xd61   : > { %5018 = vrsqrt.f32 %v3005_v56  ;;  %vm3012_vm8 = vweird.f32 %v3005_v56 }
 0xd67   : > { %v5019_v57 = vpop.eup %5018 }
 0xd68   : > { %v3007_v58 = vmul.f32 %v5019_v57, %v3005_v56  ;;  %vm3013_vm7 = vweird.f32 %v5019_v57  ;;  %v4963_v56 = vld [vmem:[%s7700_s24 + $0xa] ss:$0 sm:$0xff] }
 0xd69   : > { %vm3014_vm9 = vmor %vm3012_vm8, %vm3013_vm7 }
 0xd6a   : > { %v3008_v59 = vmul.f32 %v5019_v57, %v3007_v58 }
 0xd6c   : > { %v3009_v60 = vmul.f32 0.5, %v3008_v59  ;;  %v4968_v59 = vld [vmem:[%s7701_s8 + $0x8] ss:$0 sm:$0xff] }
 0xd6e   : > { %v3010_v61 = vsub.f32 1.5, %v3009_v60 }
 0xd70   : > { %v3011_v62 = vmul.f32 %v5019_v57, %v3010_v61  ;;  %v4969_v61 = vld [vmem:[%s7701_s8 + $0xb] ss:$0 sm:$0xff] }
 0xd72   : > { %v3015_v32 = vsel %vm3014_vm9, %v5019_v57, %v3011_v62 }
 0xd73   : > { %v3016_v2 = vmul.f32 %v3015_v32, %v6815_v53  ;;  %v4727_v53 = vld [vmem:[%s7698_s7 + $0x2b8] sm:$0xff] }
 0xd75   : > { %v3020_v8 = vmul.f32 %v4958_v63, %v3016_v2 }
 0xd77   : > { %v7008_v4 = vadd.f32 %v4959_v1, %v3020_v8 }
 0xd79   : > { %4660 = vmatmul.msk.f32.vlgmr.msrb.gmra.mxu1 %vm771_vm1, %v7008_v4  ;;  %4661 = vmatmul.msk.f32.vlgmr.msrb.gmra.mxu2 %vm771_vm1, %v7008_v4 }
 0xd7a   : > { %4662 = vmatmul.msk.f32.vlgmr.msra.gmra.mxu3 %vm771_vm1, %v7008_v4  ;;  %4663 = vmatmul.msk.f32.vlgmr.msrb.gmra.mxu0 %vm771_vm1, %v7008_v4 }
 0xd7b   : > { %3346 = vmatpush.msrb.mxu1 %v4711_v5  ;;  %3366 = vmatpush.msrb.mxu2 %v4719_v6  ;;  %v4970_v5 = vld [vmem:[%s7701_s8 + $0x9] ss:$0 sm:$0xff]  ;;  %v4971_v6 = vld [vmem:[%s7701_s8 + $0xa] ss:$0 sm:$0xff] }
 0xd7c   : > { %3386 = vmatpush.msra.mxu3 %v4727_v53  ;;  %3406 = vmatpush.msrb.mxu0 %v4735_v7 }
 0xd7d   : > { %3347 = vmatpush.msrb.mxu1 %v4710_v9  ;;  %3367 = vmatpush.msrb.mxu2 %v4718_v10 }
 0xd7e   : > { %3387 = vmatpush.msra.mxu3 %v4726_v11  ;;  %3407 = vmatpush.msrb.mxu0 %v4734_v12 }
 0xd7f   : > { %3348 = vmatpush.msrb.mxu1 %v4709_v13  ;;  %3368 = vmatpush.msrb.mxu2 %v4717_v14 }
 0xd80   : > { %3388 = vmatpush.msra.mxu3 %v4725_v15  ;;  %3408 = vmatpush.msrb.mxu0 %v4733_v16 }
 0xd81   : > { %3349 = vmatpush.msrb.mxu1 %v4708_v17  ;;  %3369 = vmatpush.msrb.mxu2 %v4716_v18 }
 0xd82   : > { %3389 = vmatpush.msra.mxu3 %v4724_v19  ;;  %3409 = vmatpush.msrb.mxu0 %v4732_v20 }
 0xd83   : > { %4700 = vmatmul.msk.f32.vlgmr.msra.gmra.mxu1 %vm771_vm1, %v7008_v4  ;;  %4701 = vmatmul.msk.f32.vlgmr.msra.gmra.mxu2 %vm771_vm1, %v7008_v4 }
 0xd84   : > { %4702 = vmatmul.msk.f32.vlgmr.msrb.gmra.mxu3 %vm771_vm1, %v7008_v4  ;;  %4703 = vmatmul.msk.f32.vlgmr.msra.gmra.mxu0 %vm771_vm1, %v7008_v4 }
 0xd85   : > { %3350 = vmatpush.msrb.mxu1 %v4707_v21  ;;  %3370 = vmatpush.msrb.mxu2 %v4715_v22 }
 0xd86   : > { %3390 = vmatpush.msra.mxu3 %v4723_v23  ;;  %3410 = vmatpush.msrb.mxu0 %v4731_v24 }
 0xd87   : > { %3351 = vmatpush.msrb.mxu1 %v4706_v25  ;;  %3371 = vmatpush.msrb.mxu2 %v4714_v27 }
 0xd88   : > { %3391 = vmatpush.msra.mxu3 %v4722_v28  ;;  %3411 = vmatpush.msrb.mxu0 %v4730_v29 }
 0xd89   : > { %3352 = vmatpush.msrb.mxu1 %v4705_v30  ;;  %3372 = vmatpush.msrb.mxu2 %v4713_v31 }
 0xd8a   : > { %3392 = vmatpush.msra.mxu3 %v4721_v33  ;;  %3412 = vmatpush.msrb.mxu0 %v4729_v34 }
 0xd8b   : > { %3353 = vmatpush.msrb.mxu1 %v4704_v35  ;;  %3373 = vmatpush.msrb.mxu2 %v4712_v40 }
 0xd8c   : > { %3393 = vmatpush.msra.mxu3 %v4720_v36  ;;  %3413 = vmatpush.msrb.mxu0 %v4728_v3 }
 0xd8d   : > { %4740 = vmatmul.msk.f32.vlgmr.msrb.gmra.mxu1 %vm771_vm1, %v7008_v4  ;;  %4741 = vmatmul.msk.f32.vlgmr.msrb.gmra.mxu2 %vm771_vm1, %v7008_v4 }
 0xd8e   : > { %4742 = vmatmul.msk.f32.vlgmr.msra.gmra.mxu3 %vm771_vm1, %v7008_v4  ;;  %4743 = vmatmul.msk.f32.vlgmr.msrb.gmra.mxu0 %vm771_vm1, %v7008_v4 }
 0xdf6   : > { %v3095_v37 = vpop.f32.mrf.mxu1 }
 0xdf7   : > { %v3155_v38 = vpop.f32.mrf.mxu0  ;;  %v3096_v50 = vadd.f32 %v4960_v43, %v3095_v37 }
 0xdf8   : > { %v3156_v52 = vadd.f32 %v4961_v45, %v3155_v38 }
 0xdfc   : > { %v3115_v39 = vpop.f32.mrf.mxu2 }
 0xdfd   : > { %v3135_v41 = vpop.f32.mrf.mxu3  ;;  %v3116_v62 = vadd.f32 %v4962_v54, %v3115_v39 }
 0xdfe   : > { %v3136_v32 = vadd.f32 %v4963_v56, %v3135_v41 }
 0xe00   : > { %v3225_v44 = vpop.f32.mrf.mxu1 }
 0xe01   : > { %v3226_v46 = vadd.f32 %v4964_v42, %v3225_v44  ;;  %v3285_v47 = vpop.f32.mrf.mxu0 }
 0xe02   : > { %v3286_v48 = vadd.f32 %v4965_v26, %v3285_v47 }
 0xe03   : > { %4744 = vmatpush.xpose.msk.msra.mxu1 %vm1111_vm2, %v3226_v46  ;;  %v4757_v46 = vld [vmem:[%s7645_s9 + $0x88] sm:$0xff] }
 0xe04   : > { %4750 = vmatpush.xpose.msk.msra.mxu0 %vm1111_vm2, %v3286_v48 }
 0xe06   : > { %v3245_v55 = vpop.f32.mrf.mxu2  ;;  %4745 = vmatmul.msk.f32.vlgmr.msra.gmra.mxu1 %vm1111_vm2, %v3096_v50 }
 0xe07   : > { %v3246_v57 = vadd.f32 %v4966_v49, %v3245_v55  ;;  %v3265_v58 = vpop.f32.mrf.mxu3  ;;  %4751 = vmatmul.msk.f32.vlgmr.msra.gmra.mxu0 %vm1111_vm2, %v3156_v52 }
 0xe08   : > { %v3266_v60 = vadd.f32 %v4967_v51, %v3265_v58 }
 0xe09   : > { %4746 = vmatpush.xpose.msk.msra.mxu2 %vm1111_vm2, %v3246_v57 }
 0xe0a   : > { %v3355_v63 = vpop.f32.mrf.mxu1  ;;  %4748 = vmatpush.xpose.msk.msrb.mxu3 %vm1111_vm2, %v3266_v60 }
 0xe0b   : > { %v3356_v1 = vadd.f32 %v4968_v59, %v3355_v63  ;;  %v3415_v2 = vpop.f32.mrf.mxu0 }
 0xe0c   : > { %v3416_v8 = vadd.f32 %v4969_v61, %v3415_v2  ;;  %4747 = vmatmul.msk.f32.vlgmr.msra.gmra.mxu2 %vm1111_vm2, %v3116_v62 }
 0xe0d   : > { %3640 = vmatpush.msrb.mxu1 %v3356_v1  ;;  %4749 = vmatmul.msk.f32.vlgmr.msrb.gmra.mxu3 %vm1111_vm2, %v3136_v32 }
 0xe0e   : > { %3709 = vmatpush.msrb.mxu0 %v3416_v8 }
 0xe0f   : > { %3740 = vmatpush.msra.mxu1 %v4757_v46 }
 0xe10   : > { %v3375_v53 = vpop.f32.mrf.mxu2 }
 0xe11   : > { %v3376_v7 = vadd.f32 %v4970_v5, %v3375_v53  ;;  %v3395_v9 = vpop.f32.mrf.mxu3 }
 0xe12   : > { %v3396_v10 = vadd.f32 %v4971_v6, %v3395_v9 }
 0xe13   : > { %3663 = vmatpush.msrb.mxu2 %v3376_v7 }
 0xe14   : > { %3686 = vmatpush.msra.mxu3 %v3396_v10 }
 0xe83   : > { %v3441_v11 = vpop.f32.mrf.mxu1 }
 0xe84   : > { %v3522_v12 = vmul.f32 0.25, %v3441_v11  ;;  %v3519_v19 = vpop.f32.mrf.mxu0 }
 0xe85   : > { %v3525_v21 = vmul.f32 0.25, %v3519_v19 }
 0xe86   : > { %v3526_v13 = vsel %vm1220_vm3, %v3522_v12, -inf }
 0xe87   : > { %3527 = vmax.xlane.f32.xlu2 %v3526_v13  ;;  %v3535_v22 = vsel %vm1220_vm3, %v3525_v21, -inf }
 0xe8f   : > { %v3467_v14 = vpop.f32.mrf.mxu2 }
 0xe90   : > { %v3523_v15 = vmul.f32 0.25, %v3467_v14  ;;  %v3493_v16 = vpop.f32.mrf.mxu3 }
 0xe91   : > { %v3524_v17 = vmul.f32 0.25, %v3493_v16 }
 0xe92   : > { %v3529_v18 = vsel %vm1220_vm3, %v3523_v15, -inf }
 0xe93   : > { %v3532_v20 = vsel %vm1220_vm3, %v3524_v17, -inf  ;;  %3530 = vmax.xlane.f32.xlu0 %v3529_v18 }
 0xe94   : > { %3533 = vmax.xlane.f32.xlu1 %v3532_v20 }
 0xe9b   : > { %3536 = vmax.xlane.f32.xlu0 %v3535_v22 }
 0xefa   : > { %v3528_v23 = vpop.xlane.xlu2 %3527 }
 0xefb   : > { %v3538_v24 = vsub.f32 %v3522_v12, %v3528_v23 }
 0xefd   : > { %v3542_v25 = vmul.f32 1.442695, %v3538_v24 }
 0xeff   : > { %5020 = vpow2.f32 %v3542_v25 }
 0xf05   : > { %v5021_v27 = vpop.eup %5020 }
 0xf06   : > { %v3531_v28 = vpop.xlane.xlu0 %3530  ;;  %v3550_v29 = vsel %vm1220_vm3, %v5021_v27, 0.0 }
 0xf07   : > { %v3534_v30 = vpop.xlane.xlu1 %3533  ;;  %v3539_v31 = vsub.f32 %v3523_v15, %v3531_v28  ;;  %3551 = vadd.xlane.f32.xlu0 %v3550_v29 }
 0xf08   : > { %v3540_v33 = vsub.f32 %v3524_v17, %v3534_v30 }
 0xf09   : > { %v3544_v34 = vmul.f32 1.442695, %v3539_v31  ;;  %v4756_v31 = vld [vmem:[%s7645_s9 + $0x80] sm:$0xff] }
 0xf0a   : > { %v3546_v35 = vmul.f32 1.442695, %v3540_v33  ;;  %3741 = vmatpush.msra.mxu1 %v4756_v31  ;;  %v4759_v33 = vld [vmem:[%s7645_s9 + $0x98] sm:$0xff] }
 0xf0b   : > { %5022 = vpow2.f32 %v3544_v34  ;;  %v4761_v34 = vld [vmem:[%s7645_s9 + $0xa8] sm:$0xff]  ;;  %3763 = vmatpush.msra.mxu2 %v4759_v33  ;;  %v4823_v31 = vld [vmem:[%s7651_s15 + $0x478] sm:$0xff] }
 0xf0c   : > { %5024 = vpow2.f32 %v3546_v35  ;;  %3786 = vmatpush.msrb.mxu3 %v4761_v34  ;;  %v4758_v35 = vld [vmem:[%s7645_s9 + $0x90] sm:$0xff]  ;;  %v4871_v33 = vld [vmem:[%s7651_s15 + $0x5f8] sm:$0xff] }
 0xf0d   : > { %3764 = vmatpush.msra.mxu2 %v4758_v35  ;;  %v4822_v34 = vld [vmem:[%s7651_s15 + $0x470] sm:$0xff] }
 0xf0e   : > { %v3537_v40 = vpop.xlane.xlu0 %3536 }
 0xf0f   : > { %v3541_v36 = vsub.f32 %v3525_v21, %v3537_v40  ;;  %v4760_v40 = vld [vmem:[%s7645_s9 + $0xa0] sm:$0xff] }
 0xf10   : > { %3787 = vmatpush.msrb.mxu3 %v4760_v40  ;;  %v4870_v40 = vld [vmem:[%s7651_s15 + $0x5f0] sm:$0xff] }
 0xf11   : > { %v7179_v3 = vpop.eup %5022  ;;  %v3548_v37 = vmul.f32 1.442695, %v3541_v36  ;;  %v4763_v36 = vld [vmem:[%s7645_s9 + $0xb8] sm:$0xff] }
 0xf12   : > { %v7181_v38 = vpop.eup %5024  ;;  %v3553_v39 = vsel %vm1220_vm3, %v7179_v3, 0.0  ;;  %3809 = vmatpush.msra.mxu0 %v4763_v36  ;;  %v4839_v36 = vld [vmem:[%s7651_s15 + $0x4f8] sm:$0xff] }
 0xf13   : > { %5026 = vpow2.f32 %v3548_v37  ;;  %3554 = vadd.xlane.f32.xlu1 %v3553_v39  ;;  %v3556_v41 = vsel %vm1220_vm3, %v7181_v38, 0.0 }
 0xf14   : > { %3557 = vadd.xlane.f32.xlu2 %v3556_v41 }
 0xf19   : > { %v7187_v42 = vpop.eup %5026 }
 0xf1a   : > { %v3559_v26 = vsel %vm1220_vm3, %v7187_v42, 0.0 }
 0xf1b   : > { %3560 = vadd.xlane.f32.xlu1 %v3559_v26 }
 0xf7a   : > { %v3552_v43 = vpop.xlane.xlu0 %3551 }
 0xf7b   : > { %5028 = vrcp.f32 %v3552_v43  ;;  %v3573_v48 = vand.u32 2147483648, %v3552_v43  ;;  %v3571_v50 = vand.u32 2147483647, %v3552_v43  ;;  %vm3567_vm11 = vweird.f32 %v3552_v43 }
 0xf7d   : > { %v3574_v55 = vor.u32 1.1754944e-38, %v3573_v48  ;;  %vm3572_vm13 = vcmp.eq.f32.partialorder %v3571_v50, 8.507059e+37  ;;  %v4972_v50 = vld [vmem:[%s7646_s10 + $0x2] ss:$0 sm:$0xff] }
 0xf81   : > { %v5029_v44 = vpop.eup %5028 }
 0xf82   : > { %v3563_v45 = vmul.f32 %v5029_v44, %v3552_v43  ;;  %vm3568_vm10 = vweird.f32 %v5029_v44 }
 0xf83   : > { %vm3569_vm12 = vmor %vm3567_vm11, %vm3568_vm10 }
 0xf84   : > { %v3564_v47 = vsub.f32 1.0, %v3563_v45 }
 0xf86   : > { %v3565_v49 = vmul.f32 %v5029_v44, %v3564_v47  ;;  %v3555_v51 = vpop.xlane.xlu1 %3554 }
 0xf87   : > { %5030 = vrcp.f32 %v3555_v51  ;;  %v3558_v52 = vpop.xlane.xlu2 %3557  ;;  %v3588_v1 = vand.u32 2147483648, %v3555_v51  ;;  %v3586_v5 = vand.u32 2147483647, %v3555_v51  ;;  %vm3582_vm0 = vweird.f32 %v3555_v51 }
 0xf88   : > { %v3566_v54 = vadd.f32 %v5029_v44, %v3565_v49  ;;  %5032 = vrcp.f32 %v3558_v52  ;;  %v3603_v6 = vand.u32 2147483648, %v3558_v52  ;;  %v3601_v7 = vand.u32 2147483647, %v3558_v52 }
 0xf89   : > { %v3589_v11 = vor.u32 1.1754944e-38, %v3588_v1  ;;  %vm3597_vm5 = vweird.f32 %v3558_v52  ;;  %vm3587_vm6 = vcmp.eq.f32.partialorder %v3586_v5, 8.507059e+37  ;;  %v4795_v1 = vld [vmem:[%s7649_s13 + $0x2c0] sm:$0xff]  ;;  %v4798_v5 = vld [vmem:[%s7649_s13 + $0x2d8] sm:$0xff] }
 0xf8a   : > { %v3570_v56 = vsel %vm3569_vm12, %v5029_v44, %v3566_v54  ;;  %v3604_v14 = vor.u32 1.1754944e-38, %v3603_v6  ;;  %vm3602_vm8 = vcmp.eq.f32.partialorder %v3601_v7, 8.507059e+37  ;;  %v4791_v6 = vld [vmem:[%s7649_s13 + $0x2a0] sm:$0xff]  ;;  %v4793_v7 = vld [vmem:[%s7649_s13 + $0x2b0] sm:$0xff] }
 0xf8b   : > { %v3575_v57 = vsel %vm3572_vm13, %v3574_v55, %v3570_v56 }
 0xf8c   : > { %v3576_v58 = vmul.f32 %v5021_v27, %v3575_v57 }
 0xf8d   : > { %v5031_v59 = vpop.eup %5030 }
 0xf8e   : > { %v5033_v60 = vpop.eup %5032  ;;  %v3578_v61 = vmul.f32 %v5031_v59, %v3555_v51  ;;  %v3561_v62 = vpop.xlane.xlu1 %3560  ;;  %4752 = vmatmul.msk.f32.vlgmr.msrb.gmra.mxu1 %vm1220_vm3, %v3576_v58  ;;  %vm3583_vm14 = vweird.f32 %v5031_v59 }
 0xf8f   : > { %v3593_v63 = vmul.f32 %v5033_v60, %v3558_v52  ;;  %5034 = vrcp.f32 %v3561_v62  ;;  %vm3598_vm15 = vweird.f32 %v5033_v60  ;;  %vm3584_vm4 = vmor %vm3582_vm0, %vm3583_vm14  ;;  %v3618_v21 = vand.u32 2147483648, %v3561_v62 }
 0xf90   : > { %v3579_v32 = vsub.f32 1.0, %v3578_v61  ;;  %vm3599_vm7 = vmor %vm3597_vm5, %vm3598_vm15  ;;  %v3616_v24 = vand.u32 2147483647, %v3561_v62  ;;  %vm3612_vm10 = vweird.f32 %v3561_v62 }
 0xf91   : > { %v3594_v2 = vsub.f32 1.0, %v3593_v63  ;;  %v3619_v27 = vor.u32 1.1754944e-38, %v3618_v21  ;;  %v4801_v63 = vld [vmem:[%s7649_s13 + $0x2f0] sm:$0xff]  ;;  %v4782_v21 = vld [vmem:[%s7649_s13 + $0x258] sm:$0xff] }
 0xf92   : > { %v3580_v8 = vmul.f32 %v5031_v59, %v3579_v32  ;;  %vm3617_vm12 = vcmp.eq.f32.partialorder %v3616_v24, 8.507059e+37  ;;  %v4802_v32 = vld [vmem:[%s7649_s13 + $0x2f8] sm:$0xff]  ;;  %v4777_v24 = vld [vmem:[%s7649_s13 + $0x230] sm:$0xff] }
 0xf93   : > { %v3595_v53 = vmul.f32 %v5033_v60, %v3594_v2  ;;  %v4796_v2 = vld [vmem:[%s7649_s13 + $0x2c8] sm:$0xff] }
 0xf94   : > { %v3581_v9 = vadd.f32 %v5031_v59, %v3580_v8  ;;  %v4797_v8 = vld [vmem:[%s7649_s13 + $0x2d0] sm:$0xff] }
 0xf95   : > { %v5035_v10 = vpop.eup %5034  ;;  %v3596_v12 = vadd.f32 %v5033_v60, %v3595_v53  ;;  %v4792_v53 = vld [vmem:[%s7649_s13 + $0x2a8] sm:$0xff] }
 0xf96   : > { %v3585_v13 = vsel %vm3584_vm4, %v5031_v59, %v3581_v9  ;;  %v3608_v15 = vmul.f32 %v5035_v10, %v3561_v62  ;;  %vm3613_vm9 = vweird.f32 %v5035_v10  ;;  %v4799_v62 = vld [vmem:[%s7649_s13 + $0x2e0] sm:$0xff]  ;;  %v4794_v9 = vld [vmem:[%s7649_s13 + $0x2b8] sm:$0xff] }
 0xf97   : > { %v3590_v16 = vsel %vm3587_vm6, %v3589_v11, %v3585_v13  ;;  %v3600_v17 = vsel %vm3599_vm7, %v5033_v60, %v3596_v12  ;;  %vm3614_vm11 = vmor %vm3612_vm10, %vm3613_vm9  ;;  %3918 = vmatpush.msrb.mxu1 %v4799_v62  ;;  %v4788_v11 = vld [vmem:[%s7649_s13 + $0x288] sm:$0xff]  ;;  %v4789_v12 = vld [vmem:[%s7649_s13 + $0x290] sm:$0xff] }
 0xf98   : > { %v3605_v18 = vsel %vm3602_vm8, %v3604_v14, %v3600_v17  ;;  %v3609_v19 = vsub.f32 1.0, %v3608_v15  ;;  %v3591_v20 = vmul.f32 %v7179_v3, %v3590_v16  ;;  %v4762_v3 = vld [vmem:[%s7645_s9 + $0xb0] sm:$0xff]  ;;  %v4790_v13 = vld [vmem:[%s7649_s13 + $0x298] sm:$0xff]  ;;  %v4783_v14 = vld [vmem:[%s7649_s13 + $0x260] sm:$0xff] }
 0xf99   : > { %v3606_v22 = vmul.f32 %v7181_v38, %v3605_v18  ;;  %3810 = vmatpush.msra.mxu0 %v4762_v3  ;;  %3919 = vmatpush.msrb.mxu1 %v4795_v1  ;;  %v4784_v15 = vld [vmem:[%s7649_s13 + $0x268] sm:$0xff]  ;;  %v4785_v16 = vld [vmem:[%s7649_s13 + $0x270] sm:$0xff]  ;;  %v4786_v17 = vld [vmem:[%s7649_s13 + $0x278] sm:$0xff] }
 0xf9a   : > { %v3610_v23 = vmul.f32 %v5035_v10, %v3609_v19  ;;  %4753 = vmatmul.msk.f32.vlgmr.msrb.gmra.mxu2 %vm1220_vm3, %v3591_v20  ;;  %v4779_v18 = vld [vmem:[%s7649_s13 + $0x240] sm:$0xff]  ;;  %v4780_v19 = vld [vmem:[%s7649_s13 + $0x248] sm:$0xff]  ;;  %v4781_v20 = vld [vmem:[%s7649_s13 + $0x250] sm:$0xff] }
 0xf9b   : > { %4754 = vmatmul.msk.f32.vlgmr.msra.gmra.mxu3 %vm1220_vm3, %v3606_v22  ;;  %3920 = vmatpush.msrb.mxu1 %v4791_v6  ;;  %v4775_v22 = vld [vmem:[%s7649_s13 + $0x220] sm:$0xff]  ;;  %v4855_v3 = vld [vmem:[%s7651_s15 + $0x578] sm:$0xff]  ;;  %v4833_v62 = vld [vmem:[%s7651_s15 + $0x4c8] sm:$0xff] }
 0xf9c   : > { %v3611_v25 = vadd.f32 %v5035_v10, %v3610_v23  ;;  %3958 = vmatpush.msra.mxu3 %v4801_v63  ;;  %v4776_v23 = vld [vmem:[%s7649_s13 + $0x228] sm:$0xff]  ;;  %v4864_v1 = vld [vmem:[%s7651_s15 + $0x5c0] sm:$0xff]  ;;  %v4815_v6 = vld [vmem:[%s7651_s15 + $0x438] sm:$0xff] }
 0xf9e   : > { %v3615_v28 = vsel %vm3614_vm11, %v5035_v10, %v3611_v25  ;;  %3959 = vmatpush.msra.mxu3 %v4797_v8  ;;  %v4787_v10 = vld [vmem:[%s7649_s13 + $0x280] sm:$0xff]  ;;  %v4778_v25 = vld [vmem:[%s7649_s13 + $0x238] sm:$0xff] }
 0xf9f   : > { %v3620_v29 = vsel %vm3617_vm12, %v3619_v27, %v3615_v28  ;;  %3921 = vmatpush.msrb.mxu1 %v4787_v10  ;;  %v4771_v27 = vld [vmem:[%s7649_s13 + $0x200] sm:$0xff]  ;;  %v4772_v28 = vld [vmem:[%s7649_s13 + $0x208] sm:$0xff] }
 0xfa0   : > { %v3621_v30 = vmul.f32 %v7187_v42, %v3620_v29  ;;  %3960 = vmatpush.msra.mxu3 %v4793_v7  ;;  %v4773_v29 = vld [vmem:[%s7649_s13 + $0x210] sm:$0xff]  ;;  %v4848_v8 = vld [vmem:[%s7651_s15 + $0x540] sm:$0xff]  ;;  %v4831_v7 = vld [vmem:[%s7651_s15 + $0x4b8] sm:$0xff] }
 0xfa1   : > { %3922 = vmatpush.msrb.mxu1 %v4783_v14  ;;  %v4846_v14 = vld [vmem:[%s7651_s15 + $0x530] sm:$0xff] }
 0xfa2   : > { %4755 = vmatmul.msk.f32.vlgmr.msrb.gmra.mxu0 %vm1220_vm3, %v3621_v30  ;;  %3961 = vmatpush.msra.mxu3 %v4789_v12  ;;  %v4774_v30 = vld [vmem:[%s7649_s13 + $0x218] sm:$0xff]  ;;  %v4862_v12 = vld [vmem:[%s7651_s15 + $0x5b0] sm:$0xff] }
 0xfa3   : > { %3978 = vmatpush.msrb.mxu0 %v4802_v32  ;;  %3923 = vmatpush.msrb.mxu1 %v4779_v18  ;;  %v4816_v32 = vld [vmem:[%s7651_s15 + $0x440] sm:$0xff] }
 0xfa4   : > { %3962 = vmatpush.msra.mxu3 %v4785_v16  ;;  %v4813_v16 = vld [vmem:[%s7651_s15 + $0x428] sm:$0xff] }
 0xfa5   : > { %3979 = vmatpush.msrb.mxu0 %v4798_v5  ;;  %3924 = vmatpush.msrb.mxu1 %v4775_v22 }
 0xfa6   : > { %3963 = vmatpush.msra.mxu3 %v4781_v20  ;;  %v4860_v20 = vld [vmem:[%s7651_s15 + $0x5a0] sm:$0xff] }
 0xfa7   : > { %3980 = vmatpush.msrb.mxu0 %v4794_v9  ;;  %3925 = vmatpush.msrb.mxu1 %v4771_v27  ;;  %v4847_v9 = vld [vmem:[%s7651_s15 + $0x538] sm:$0xff]  ;;  %v4974_v27 = vld [vmem:[%s7648_s12 + $0x2] ss:$0 sm:$0xff] }
 0xfa8   : > { %3964 = vmatpush.msra.mxu3 %v4777_v24  ;;  %v4859_v24 = vld [vmem:[%s7651_s15 + $0x598] sm:$0xff] }
 0xfa9   : > { %3981 = vmatpush.msrb.mxu0 %v4790_v13  ;;  %v4830_v13 = vld [vmem:[%s7651_s15 + $0x4b0] sm:$0xff] }
 0xfaa   : > { %3965 = vmatpush.msra.mxu3 %v4773_v29 }
 0xfab   : > { %3982 = vmatpush.msrb.mxu0 %v4786_v17  ;;  %v4861_v17 = vld [vmem:[%s7651_s15 + $0x5a8] sm:$0xff] }
 0xfad   : > { %3983 = vmatpush.msrb.mxu0 %v4782_v21  ;;  %v4973_v21 = vld [vmem:[%s7647_s11 + $0x2] ss:$0 sm:$0xff] }
 0xfaf   : > { %3984 = vmatpush.msrb.mxu0 %v4778_v25 }
 0xfb1   : > { %3985 = vmatpush.msrb.mxu0 %v4774_v30  ;;  %v4829_v30 = vld [vmem:[%s7651_s15 + $0x4a8] sm:$0xff] }
0x100b   : > { %v3642_v37 = vpop.f32.mrf.mxu1 }
0x100c   : > { %4764 = vmatmul.msk.f32.vlgmr.msra.gmra.mxu1 %vm1111_vm2, %v3642_v37 }
0x100d   : > { %4064 = vmatpush.msra.mxu1 %v4823_v31  ;;  %v4845_v31 = vld [vmem:[%s7651_s15 + $0x528] sm:$0xff] }
0x100f   : > { %4065 = vmatpush.msra.mxu1 %v4822_v34  ;;  %v4809_v34 = vld [vmem:[%s7651_s15 + $0x408] sm:$0xff] }
0x101d   : > { %v3665_v38 = vpop.f32.mrf.mxu2 }
0x101e   : > { %v3688_v39 = vpop.f32.mrf.mxu3  ;;  %4765 = vmatmul.msk.f32.vlgmr.msra.gmra.mxu2 %vm1111_vm2, %v3665_v38  ;;  %v4838_v38 = vld [vmem:[%s7651_s15 + $0x4f0] sm:$0xff] }
0x101f   : > { %4766 = vmatmul.msk.f32.vlgmr.msrb.gmra.mxu3 %vm1111_vm2, %v3688_v39  ;;  %v3711_v41 = vpop.f32.mrf.mxu0  ;;  %v4821_v39 = vld [vmem:[%s7651_s15 + $0x468] sm:$0xff] }
0x1020   : > { %4767 = vmatmul.msk.f32.vlgmr.msra.gmra.mxu0 %vm1111_vm2, %v3711_v41  ;;  %v4869_v41 = vld [vmem:[%s7651_s15 + $0x5e8] sm:$0xff]  ;;  %4104 = vmatpush.msrb.mxu3 %v4855_v3  ;;  %v4808_v3 = vld [vmem:[%s7651_s15 + $0x400] sm:$0xff] }
0x1021   : > { %4124 = vmatpush.msra.mxu0 %v4871_v33  ;;  %4066 = vmatpush.msra.mxu1 %v4821_v39  ;;  %v4858_v33 = vld [vmem:[%s7651_s15 + $0x590] sm:$0xff]  ;;  %v4856_v39 = vld [vmem:[%s7651_s15 + $0x580] sm:$0xff] }
0x1023   : > { %4125 = vmatpush.msra.mxu0 %v4870_v40  ;;  %v4844_v40 = vld [vmem:[%s7651_s15 + $0x520] sm:$0xff] }
0x1025   : > { %4126 = vmatpush.msra.mxu0 %v4869_v41  ;;  %v4826_v41 = vld [vmem:[%s7651_s15 + $0x490] sm:$0xff] }
0x1089   : > { %v3743_v42 = vpop.f32.mrf.mxu1 }
0x108a   : > { %v3815_v43 = vsel %vm771_vm1, %v3743_v42, 0.0  ;;  %v4854_v42 = vld [vmem:[%s7651_s15 + $0x570] sm:$0xff] }
0x108b   : > { %4105 = vmatpush.msrb.mxu3 %v4854_v42  ;;  %v4842_v42 = vld [vmem:[%s7651_s15 + $0x510] sm:$0xff] }
0x109d   : > { %v3812_v46 = vpop.f32.mrf.mxu0 }
0x109e   : > { %v3820_v51 = vsel %vm771_vm1, %v3812_v46, 0.0  ;;  %v4868_v46 = vld [vmem:[%s7651_s15 + $0x5e0] sm:$0xff] }
0x109f   : > { %4127 = vmatpush.msra.mxu0 %v4868_v46  ;;  %v4803_v46 = vld [vmem:[%s7650_s14 + $0x8] sm:$0xf] }
0x10a1   : > { %v3766_v26 = vpop.f32.mrf.mxu2 }
0x10a2   : > { %v3816_v44 = vsel %vm771_vm1, %v3766_v26, 0.0  ;;  %v3789_v45 = vpop.f32.mrf.mxu3 }
0x10a3   : > { %v3817_v47 = vadd.f32 %v3816_v44, %v3815_v43  ;;  %v3818_v48 = vsel %vm771_vm1, %v3789_v45, 0.0  ;;  %v4837_v43 = vld [vmem:[%s7651_s15 + $0x4e8] sm:$0xff]  ;;  %v4820_v45 = vld [vmem:[%s7651_s15 + $0x460] sm:$0xff] }
0x10a4   : > { %v4853_v44 = vld [vmem:[%s7651_s15 + $0x568] sm:$0xff]  ;;  %4067 = vmatpush.msra.mxu1 %v4820_v45  ;;  %v4840_v45 = vld [vmem:[%s7651_s15 + $0x500] sm:$0xff] }
0x10a5   : > { %v3819_v49 = vadd.f32 %v3818_v48, %v3817_v47  ;;  %v4836_v47 = vld [vmem:[%s7651_s15 + $0x4e0] sm:$0xff]  ;;  %4106 = vmatpush.msrb.mxu3 %v4853_v44 }
0x10a6   : > { %v4852_v48 = vld [vmem:[%s7651_s15 + $0x560] sm:$0xff] }
0x10a7   : > { %v3821_v52 = vadd.f32 %v3820_v51, %v3819_v49  ;;  %v4819_v49 = vld [vmem:[%s7651_s15 + $0x458] sm:$0xff]  ;;  %4107 = vmatpush.msrb.mxu3 %v4852_v48  ;;  %v4824_v44 = vld [vmem:[%s7651_s15 + $0x480] sm:$0xff]  ;;  %v3902_v48 = vperm.slane %v4803_v46, 3 }
0x10a8   : > { %v4835_v51 = vld [vmem:[%s7651_s15 + $0x4d8] sm:$0xff]  ;;  %4068 = vmatpush.msra.mxu1 %v4819_v49 }
0x10a9   : > { %v3827_v54 = vadd.f32 %v4972_v50, %v3821_v52  ;;  %v4867_v50 = vld [vmem:[%s7651_s15 + $0x5d8] sm:$0xff] }
0x10aa   : > { %v4851_v52 = vld [vmem:[%s7651_s15 + $0x558] sm:$0xff]  ;;  %4128 = vmatpush.msra.mxu0 %v4867_v50 }
0x10ab   : > { %v3828_v55 = vadd.f32 %v3827_v54, %v7008_v4  ;;  %v4800_v4 = vld [vmem:[%s7649_s13 + $0x2e8] sm:$0xff]  ;;  %v4818_v54 = vld [vmem:[%s7651_s15 + $0x450] sm:$0xff]  ;;  %4108 = vmatpush.msrb.mxu3 %v4851_v52 }
0x10ac   : > { %3938 = vmatpush.msrb.mxu2 %v4800_v4  ;;  %4069 = vmatpush.msra.mxu1 %v4818_v54  ;;  %v4849_v4 = vld [vmem:[%s7651_s15 + $0x548] sm:$0xff] }
0x10ad   : > { %v3833_v56 = vsel %vm771_vm1, %v3828_v55, 0.0 }
0x10ae   : > { %3834 = vadd.xlane.f32.xlu2 %v3833_v56  ;;  %3939 = vmatpush.msrb.mxu2 %v4796_v2  ;;  %v4834_v56 = vld [vmem:[%s7651_s15 + $0x4d0] sm:$0xff]  ;;  %v4832_v2 = vld [vmem:[%s7651_s15 + $0x4c0] sm:$0xff] }
0x10b0   : > { %3940 = vmatpush.msrb.mxu2 %v4792_v53  ;;  %v4863_v53 = vld [vmem:[%s7651_s15 + $0x5b8] sm:$0xff] }
0x10b2   : > { %3941 = vmatpush.msrb.mxu2 %v4788_v11  ;;  %v4814_v11 = vld [vmem:[%s7651_s15 + $0x430] sm:$0xff] }
0x10b4   : > { %3942 = vmatpush.msrb.mxu2 %v4784_v15 }
0x10b6   : > { %3943 = vmatpush.msrb.mxu2 %v4780_v19  ;;  %v4812_v19 = vld [vmem:[%s7651_s15 + $0x420] sm:$0xff] }
0x10b8   : > { %3944 = vmatpush.msrb.mxu2 %v4776_v23  ;;  %v4811_v23 = vld [vmem:[%s7651_s15 + $0x418] sm:$0xff] }
0x10ba   : > { %3945 = vmatpush.msrb.mxu2 %v4772_v28 }
0x10bc   : > { %4084 = vmatpush.msra.mxu2 %v4839_v36  ;;  %v4857_v36 = vld [vmem:[%s7651_s15 + $0x588] sm:$0xff] }
0x10be   : > { %4085 = vmatpush.msra.mxu2 %v4838_v38  ;;  %v4843_v38 = vld [vmem:[%s7651_s15 + $0x518] sm:$0xff] }
0x10c0   : > { %4086 = vmatpush.msra.mxu2 %v4837_v43  ;;  %v4841_v43 = vld [vmem:[%s7651_s15 + $0x508] sm:$0xff] }
0x10c2   : > { %4087 = vmatpush.msra.mxu2 %v4836_v47  ;;  %v3899_v47 = vperm.slane %v4803_v46, 0 }
0x10c4   : > { %4088 = vmatpush.msra.mxu2 %v4835_v51 }
0x10c6   : > { %4089 = vmatpush.msra.mxu2 %v4834_v56 }
0x10c8   : > { %4090 = vmatpush.msra.mxu2 %v4833_v62 }
0x10ca   : > { %4091 = vmatpush.msra.mxu2 %v4832_v2 }
0x10cc   : > { %4092 = vmatpush.msra.mxu2 %v4831_v7 }
0x10ce   : > { %4093 = vmatpush.msra.mxu2 %v4830_v13 }
0x10d0   : > { %4094 = vmatpush.msra.mxu2 %v4829_v30  ;;  %v5107_v30 = vmov 8.0  }
0x1121   : > { %v3835_v57 = vpop.xlane.xlu2 %3834 }
0x1122   : > { %v3836_v58 = vmul.f32 %v3835_v57, %v5717_v0  ;;  %v4850_v57 = vld [vmem:[%s7651_s15 + $0x550] sm:$0xff] }
0x1123   : > { %4109 = vmatpush.msrb.mxu3 %v4850_v57  ;;  %v3901_v57 = vperm.slane %v4803_v46, 2 }
0x1124   : > { %v7236_v59 = vsub.f32 %v3828_v55, %v3836_v58  ;;  %v4866_v55 = vld [vmem:[%s7651_s15 + $0x5d0] sm:$0xff]  ;;  %v4817_v58 = vld [vmem:[%s7651_s15 + $0x448] sm:$0xff] }
0x1125   : > { %4129 = vmatpush.msra.mxu0 %v4866_v55  ;;  %4070 = vmatpush.msra.mxu1 %v4817_v58  ;;  %v3900_v55 = vperm.slane %v4803_v46, 1 }
0x1126   : > { %v3838_v60 = vmul.f32 %v7236_v59, %v7236_v59  ;;  %4110 = vmatpush.msrb.mxu3 %v4849_v4 }
0x1127   : > { %4071 = vmatpush.msra.mxu1 %v4816_v32  ;;  %v4975_v32 = vld [vmem:[%s7652_s16 + $0x2] ss:$0 sm:$0xff] }
0x1128   : > { %v3839_v61 = vsel %vm771_vm1, %v3838_v60, 0.0  ;;  %v4865_v60 = vld [vmem:[%s7651_s15 + $0x5c8] sm:$0xff]  ;;  %4111 = vmatpush.msrb.mxu3 %v4848_v8 }
0x1129   : > { %3840 = vadd.xlane.f32.xlu0 %v3839_v61  ;;  %4130 = vmatpush.msra.mxu0 %v4865_v60 }
0x112a   : > { %4072 = vmatpush.msra.mxu1 %v4815_v6  ;;  %4112 = vmatpush.msrb.mxu3 %v4847_v9 }
0x112b   : > { %4131 = vmatpush.msra.mxu0 %v4864_v1 }
0x112c   : > { %4073 = vmatpush.msra.mxu1 %v4814_v11  ;;  %4113 = vmatpush.msrb.mxu3 %v4846_v14 }
0x112d   : > { %4132 = vmatpush.msra.mxu0 %v4863_v53 }
0x112e   : > { %4074 = vmatpush.msra.mxu1 %v4813_v16  ;;  %4114 = vmatpush.msrb.mxu3 %v4845_v31 }
0x112f   : > { %4133 = vmatpush.msra.mxu0 %v4862_v12 }
0x1130   : > { %4075 = vmatpush.msra.mxu1 %v4812_v19  ;;  %4115 = vmatpush.msrb.mxu3 %v4844_v40  ;;  %v4201_v19 = vld [vmem:[%s7655_s19 + $0x30] sm:$0xff]  ;;  %v4976_v40 = vld [vmem:[%s7653_s17 + $0x2] ss:$0 sm:$0xff] }
0x1131   : > { %4134 = vmatpush.msra.mxu0 %v4861_v17  ;;  %v4202_v17 = vld [vmem:[%s7655_s19 + $0x38] sm:$0xff] }
0x1132   : > { %4076 = vmatpush.msra.mxu1 %v4811_v23  ;;  %4116 = vmatpush.msrb.mxu3 %v4843_v38  ;;  %v4199_v23 = vld [vmem:[%s7655_s19 + $0x20] sm:$0xff] }
0x1133   : > { %4135 = vmatpush.msra.mxu0 %v4860_v20 }
0x1134   : > { %4117 = vmatpush.msrb.mxu3 %v4842_v42 }
0x1135   : > { %4136 = vmatpush.msra.mxu0 %v4859_v24  ;;  %v4198_v24 = vld [vmem:[%s7655_s19 + $0x18] sm:$0xff] }
0x1136   : > { %4118 = vmatpush.msrb.mxu3 %v4841_v43 }
0x1137   : > { %4137 = vmatpush.msra.mxu0 %v4858_v33 }
0x1138   : > { %4119 = vmatpush.msrb.mxu3 %v4840_v45 }
0x1139   : > { %4138 = vmatpush.msra.mxu0 %v4857_v36 }
0x113b   : > { %4139 = vmatpush.msra.mxu0 %v4856_v39 }
0x119c   : > { %v3841_v35 = vpop.xlane.xlu0 %3840 }
0x119d   : > { %v3842_v37 = vmul.f32 %v3841_v35, %v5717_v0  ;;  %v4828_v35 = vld [vmem:[%s7651_s15 + $0x4a0] sm:$0xff] }
0x119e   : > { %4095 = vmatpush.msra.mxu2 %v4828_v35 }
0x119f   : > { %v7368_v26 = vadd.f32 1e-05, %v3842_v37  ;;  %v4827_v37 = vld [vmem:[%s7651_s15 + $0x498] sm:$0xff] }
0x11a0   : > { %4096 = vmatpush.msra.mxu2 %v4827_v37 }
0x11a1   : > { %5036 = vrsqrt.f32 %v7368_v26  ;;  %vm3850_vm3 = vweird.f32 %v7368_v26 }
0x11a2   : > { %4097 = vmatpush.msra.mxu2 %v4826_v41 }
0x11a7   : > { %v5037_v61 = vpop.eup %5036 }
0x11a8   : > { %v3845_v63 = vmul.f32 %v5037_v61, %v7368_v26  ;;  %vm3851_vm2 = vweird.f32 %v5037_v61  ;;  %v4825_v26 = vld [vmem:[%s7651_s15 + $0x488] sm:$0xff] }
0x11a9   : > { %vm3852_vm13 = vmor %vm3850_vm3, %vm3851_vm2  ;;  %4098 = vmatpush.msra.mxu2 %v4825_v26 }
0x11aa   : > { %v3846_v5 = vmul.f32 %v5037_v61, %v3845_v63 }
0x11ab   : > { %4099 = vmatpush.msra.mxu2 %v4824_v44 }
0x11ac   : > { %v3847_v10 = vmul.f32 0.5, %v3846_v5 }
0x11ae   : > { %v3848_v15 = vsub.f32 1.5, %v3847_v10 }
0x11b0   : > { %v3849_v18 = vmul.f32 %v5037_v61, %v3848_v15 }
0x11b2   : > { %v3853_v22 = vsel %vm3852_vm13, %v5037_v61, %v3849_v18 }
0x11b3   : > { %v3854_v25 = vmul.f32 %v3853_v22, %v7236_v59  ;;  %v4810_v59 = vld [vmem:[%s7651_s15 + $0x410] sm:$0xff] }
0x11b4   : > { %4077 = vmatpush.msra.mxu1 %v4810_v59 }
0x11b5   : > { %v3858_v28 = vmul.f32 %v4973_v21, %v3854_v25  ;;  %v4200_v21 = vld [vmem:[%s7655_s19 + $0x28] sm:$0xff] }
0x11b6   : > { %4078 = vmatpush.msra.mxu1 %v4809_v34  ;;  %v4196_v25 = vld [vmem:[%s7655_s19 + $0x8] sm:$0xff] }
0x11b7   : > { %v7488_v29 = vadd.f32 %v4974_v27, %v3858_v28  ;;  %v4195_v28 = vld [vmem:[%s7655_s19] sm:$0xff] }
0x11b8   : > { %4079 = vmatpush.msra.mxu1 %v4808_v3  ;;  %v4977_v3 = vld [vmem:[%s7654_s18 + $0x2] ss:$0 sm:$0xff] }
0x11b9   : > { %4804 = vmatmul.msk.f32.vlgmr.msrb.gmra.mxu1 %vm771_vm1, %v7488_v29  ;;  %4805 = vmatmul.msk.f32.vlgmr.msrb.gmra.mxu2 %vm771_vm1, %v7488_v29 }
0x11ba   : > { %4806 = vmatmul.msk.f32.vlgmr.msra.gmra.mxu3 %vm771_vm1, %v7488_v29  ;;  %4807 = vmatmul.msk.f32.vlgmr.msrb.gmra.mxu0 %vm771_vm1, %v7488_v29 }
0x11bb   : > { %4215 = vmatpush.msrb.mxu1 %v4202_v17 }
0x11bd   : > { %4216 = vmatpush.msrb.mxu1 %v4201_v19 }
0x11bf   : > { %4217 = vmatpush.msrb.mxu1 %v4200_v21 }
0x11c1   : > { %4218 = vmatpush.msrb.mxu1 %v4199_v23 }
0x11c3   : > { %4219 = vmatpush.msrb.mxu1 %v4198_v24 }
0x1236   : > { %v3927_v49 = vpop.f32.mrf.mxu1 }
0x1237   : > { %v3928_v50 = vadd.f32 %v3927_v49, %v3899_v47  ;;  %v3987_v51 = vpop.f32.mrf.mxu0 }
0x1238   : > { %v3988_v52 = vadd.f32 %v3987_v51, %v3902_v48 }
0x1239   : > { %v3990_v54 = vmax.f32 %v3928_v50, 0.0 }
0x123a   : > { %v3993_v56 = vmax.f32 %v3988_v52, 0.0 }
0x123b   : > { %4080 = vmatmul.f32.vlgmr.msra.gmra.mxu1 %v3990_v54  ;;  %v5108_v54 = vmov 0  }
0x123c   : > { %4140 = vmatmul.f32.vlgmr.msra.gmra.mxu0 %v3993_v56  ;;  %v3947_v58 = vpop.f32.mrf.mxu2  ;;  %4922 = vset.pattern.permute.xlu0 %v5108_v54 }
0x123d   : > { %v3948_v60 = vadd.f32 %v3947_v58, %v3900_v55  ;;  %v3967_v61 = vpop.f32.mrf.mxu3 }
0x123e   : > { %v3968_v62 = vadd.f32 %v3967_v61, %v3901_v57 }
0x123f   : > { %v3991_v4 = vmax.f32 %v3948_v60, 0.0 }
0x1240   : > { %v3992_v63 = vmax.f32 %v3968_v62, 0.0 }
0x1241   : > { %4100 = vmatmul.f32.vlgmr.msra.gmra.mxu2 %v3991_v4 }
0x1242   : > { %4120 = vmatmul.f32.vlgmr.msrb.gmra.mxu3 %v3992_v63 }
0x12b8   : > { %v4081_v1 = vpop.f32.mrf.mxu1 }
0x12b9   : > { %v4082_v2 = vadd.f32 %v4975_v32, %v4081_v1  ;;  %v4141_v7 = vpop.f32.mrf.mxu0 }
0x12c4   : > { %v4101_v8 = vpop.f32.mrf.mxu2 }
0x12c5   : > { %v4102_v5 = vadd.f32 %v4101_v8, %v4082_v2  ;;  %v4121_v6 = vpop.f32.mrf.mxu3 }
0x12c7   : > { %v4122_v53 = vadd.f32 %v4121_v6, %v4102_v5 }
0x12c9   : > { %v4142_v9 = vadd.f32 %v4141_v7, %v4122_v53 }
0x12cb   : > { %v4144_v10 = vadd.f32 %v4142_v9, %v7488_v29 }
0x12cd   : > { %v4149_v11 = vsel %vm771_vm1, %v4144_v10, 0.0 }
0x12ce   : > { %4150 = vadd.xlane.f32.xlu1 %v4149_v11 }
0x1341   : > { %v4151_v12 = vpop.xlane.xlu1 %4150 }
0x1342   : > { %v4152_v13 = vmul.f32 %v4151_v12, %v5717_v0 }
0x1344   : > { %v4153_v14 = vsub.f32 %v4144_v10, %v4152_v13 }
0x1346   : > { %v4154_v15 = vmul.f32 %v4153_v14, %v4153_v14 }
0x1348   : > { %v4155_v16 = vsel %vm771_vm1, %v4154_v15, 0.0 }
0x1349   : > { %4156 = vadd.xlane.f32.xlu2 %v4155_v16 }
0x13bc   : > { %v4157_v18 = vpop.xlane.xlu2 %4156 }
0x13bd   : > { %v4158_v20 = vmul.f32 %v4157_v18, %v5717_v0  ;;  %v4197_v0 = vld [vmem:[%s7655_s19 + $0x10] sm:$0xff] }
0x13be   : > { %4220 = vmatpush.msrb.mxu1 %v4197_v0 }
0x13bf   : > { %v4159_v22 = vadd.f32 1e-05, %v4158_v20 }
0x13c0   : > { %4221 = vmatpush.msrb.mxu1 %v4196_v25 }
0x13c1   : > { %5038 = vrsqrt.f32 %v4159_v22  ;;  %vm4166_vm15 = vweird.f32 %v4159_v22 }
0x13c2   : > { %4222 = vmatpush.msrb.mxu1 %v4195_v28  ;;  %5040 = vrcp.f32 %v5107_v30 }
0x13c7   : > { %v5039_v27 = vpop.eup %5038 }
0x13c8   : > { %v4161_v29 = vmul.f32 %v5039_v27, %v4159_v22  ;;  %vm4167_vm14 = vweird.f32 %v5039_v27  ;;  %v5041_v34 = vpop.eup %5040 }
0x13c9   : > { %vm4168_vm0 = vmor %vm4166_vm15, %vm4167_vm14  ;;  %v4188_v38 = vmul.f32 8.0, %v5041_v34  ;;  %vm4192_vm4 = vweird.f32 %v5041_v34 }
0x13ca   : > { %v4162_v59 = vmul.f32 %v5039_v27, %v4161_v29 }
0x13cb   : > { %v4189_v42 = vsub.f32 1.0, %v4188_v38 }
0x13cc   : > { %v4163_v31 = vmul.f32 0.5, %v4162_v59 }
0x13cd   : > { %v4190_v44 = vmul.f32 %v5041_v34, %v4189_v42 }
0x13ce   : > { %v4164_v33 = vsub.f32 1.5, %v4163_v31 }
0x13cf   : > { %v4191_v47 = vadd.f32 %v5041_v34, %v4190_v44 }
0x13d0   : > { %v4165_v35 = vmul.f32 %v5039_v27, %v4164_v33 }
0x13d1   : > { %v4193_v50 = vsel %vm4192_vm4, %v5041_v34, %v4191_v47 }
0x13d2   : > { %v4169_v36 = vsel %vm4168_vm0, %v5039_v27, %v4165_v35 }
0x13d3   : > { %v4170_v37 = vmul.f32 %v4169_v36, %v4153_v14 }
0x13d5   : > { %v4174_v39 = vmul.f32 %v4976_v40, %v4170_v37 }
0x13d7   : > { %v4178_v41 = vadd.f32 %v4977_v3, %v4174_v39 }
0x13d9   : > { %v4180_v26 = vsel %vm771_vm1, %v4178_v41, 0.0  ;;  %4179 = vst.msk [vmem:[%s677_s4] sm:$0xff] %vm771_vm1, %v4178_v41 }
0x13da   : > { %v4181_v43 = vrot.slane %v4180_v26, 4 }
0x13dc   : > { %v4182_v45 = vadd.f32 %v4181_v43, %v4180_v26 }
0x13de   : > { %v4183_v46 = vrot.slane %v4182_v45, 2 }
0x13e0   : > { %v4184_v48 = vadd.f32 %v4183_v46, %v4182_v45 }
0x13e2   : > { %v4185_v49 = vrot.slane %v4184_v48, 1 }
0x13e4   : > { %v4186_v51 = vadd.f32 %v4185_v49, %v4184_v48 }
0x13e6   : > { %v4194_v52 = vmul.f32 %v4193_v50, %v4186_v51 }
0x13e8   : > { %4875 = vmatmul.msk.f32.vlgmr.msrb.gmra.mxu1 %vm771_vm1, %v4194_v52 }
0x13e9   : > { %5069 = shalt.err (!%p5066_p3)
}
0x13ea   : > { %s7702_s26 = sld [smem:[#allocation12_spill]]  ;;  %v4203_v55 = vld [vmem:[#allocation2] sm:$0x1]  ;;  %vm4232_vm1 = vcmask 516096  }
0x13eb   : > { %4880 = dma.vmem_to_hbm [thread:$0]  (%p5265_p5), %s4251_s28, 128, %s4253_s22, %s4235_s5  }
0x13ec   : > { %s7703_s7 = sld [smem:[#allocation22_spill]] }
0x13f2   : > { %s689_s6 = scalar_lea.vmem %s7703_s7, %s7702_s26 }
0x1465   : > { %v4224_v56 = vpop.f32.mrf.mxu1 }
0x1466   : > { %v4225_v57 = vadd.f32 %v4224_v56, %v4203_v55 }
0x1468   : > { %4229 = vperm.xlu0 %4922, %v4225_v57  }
0x14da   : > { %v4230_v58 = vpop.permute.xlu0 %4229 }
0x14db   : > { %4233 = vst.msk [vmem:[%s689_s6] sm:$0x1] %vm4232_vm1, %v4230_v58 }
0x14dc PF: > { %s7704_s8 = sld [smem:[#allocation8_spill]] }
0x14dd   : > { %s7705_s3 = sld [smem:[#allocation6_spill]] }
0x14e2   : > { %p4886_p4 = scmp.ge.s32.totalorder %s7704_s8, 2 }
0x14e3   : > { %s4267_s0 = sand.u32 1, %s7705_s3  }
0x14e4   : > { %p4883_p7 = pnand %p4886_p4, %p5269_p6  ;;  %s4268_s25 = scalar_lea.sflag [#allocation4], %s4267_s0 }
0x14e6   : > { %p4884_p5 = pneg %p4883_p7 }
0x14e8   : > { %5087 = dma.done.wait (%p4884_p5), %s4268_s25, 128  }
0x14e9   : > { %5089 = vsyncadd (%p4884_p5), %s4268_s25, 4294967168  ;;  %s7707_s0 = sld [smem:[#allocation9_spill]]  ;;  %s7710_s29 = smov %s5096_s30 }
0x14ea   : > { %s7708_s28 = sld [smem:[#allocation7_spill]] }
0x14eb   : > { %s7709_s4 = sld [smem:[#allocation10_spill]] }
0x14ef   : > { %p35_p8 = scmp.ge.s32.totalorder %s7707_s0, 4  }
0x14f0   : > { %s7711_s30 = smov %s7708_s28 }
0x14f1   :  { %37 = sbr.rel (!%p35_p8) target bundleno = 14 (0xe), region = 183 }
0x14f6   :  { %4280 = vsyncpa [#allocation4], 1 }
0x14f7   :  { %4282 = vsyncpa [#allocation4 + $0x1], 1 }

</bundles_post_ra>
